<compile_context>
chip_gen: v5e
topology: v5e:2x2
jax: 0.10.0
libtpu: 0.0.40
codegen_flags: <defaults>
</compile_context>

<pallas_src>
import functools

import jax
import jax.numpy as jnp
from jax.experimental import pallas as pl
from jax.experimental.pallas import tpu as pltpu

LANE = 128  # channel dims padded to multiples of the TPU lane width


# ---------------------------------------------------------------------------
# Generation-aware knobs
# ---------------------------------------------------------------------------
def _chip_gen():
    try:
        kind = jax.devices()[0].device_kind.lower()
    except Exception:
        return 6
    for g in (7, 6, 5, 4):
        if f"v{g}" in kind:
            return g
    return 6


def _vmem_limit_bytes():
    """~75% of the physical per-core VMEM, conservatively capped."""
    cap = None
    try:
        cap = int(pltpu.get_tpu_info().vmem_capacity_bytes)
    except Exception:
        cap = None
    if not cap or cap <= 0:
        cap = (64 if _chip_gen() >= 7 else 128) * 1024 * 1024
    return min(int(cap * 3 // 4), 64 * 1024 * 1024)


def _max_rows():
    # MXU M-tile target: 256 output rows on v6e/v7x, 128 on v5e and older.
    return 128 if _chip_gen() <= 5 else 256


# ---------------------------------------------------------------------------
# Small helpers
# ---------------------------------------------------------------------------
def _round_up(x, m):
    return (x + m - 1) // m * m


def _fold_bn(gamma, beta, mean, var, eps=1e-5):
    scale = gamma / jnp.sqrt(var + eps)
    bias = beta - mean * scale
    return scale, bias


def _pad_channels(x, cp):
    c = x.shape[-1]
    if cp == c:
        return x
    return jnp.pad(x, ((0, 0),) * (x.ndim - 1) + ((0, cp - c),))


def _phase_stack(x_nhwc, stride, Ho, Wo):
    """Spatial pad=1 + stride-phase decimation + one extra halo row above/below.

    Returns (N*s*s, Ho + 2//s + 2, Wo + 2//s, C) with
      entry [n*s*s + a*s + b, 1 + i, j, c] == x_pad1[n, s*i + a, s*j + b, c],
    so every in-kernel conv1 tap is an unstrided rectangular slice and the fused
    kernel can address conv2's zero-pad halo rows (conv1 rows -1 / Ho) in-bounds.
    """
    N, H, W, C = x_nhwc.shape
    s = stride
    q = 2 // s
    Hq, Wq = Ho + q, Wo + q
    Hp, Wp = s * Hq, s * Wq
    xp = jnp.pad(x_nhwc, ((0, 0), (1, Hp - H - 1), (1, Wp - W - 1), (0, 0)))
    xp = xp.reshape(N, Hq, s, Wq, s, C)
    xp = jnp.transpose(xp, (0, 2, 4, 1, 3, 5))          # (N, s, s, Hq, Wq, C)
    xp = xp.reshape(N * s * s, Hq, Wq, C)
    return jnp.pad(xp, ((0, 0), (1, 1), (0, 0), (0, 0)))  # +1 halo row top/bottom


def _pick_row_tile(Ho, Wo, max_rows):
    """Largest divisor row-tile with th*Wo <= max_rows, preferring 8-aligned th*Wo."""
    cands = [th for th in range(1, Ho + 1) if Ho % th == 0 and th * Wo <= max_rows]
    if not cands:
        return 1
    aligned = [th for th in cands if (th * Wo) % 8 == 0]
    return max(aligned) if aligned else max(cands)


# ---------------------------------------------------------------------------
# Fused kernel bodies
# ---------------------------------------------------------------------------
def _conv1_to_scratch(x_ref, w1_ref, s1_ref, b1_ref, h_ref, acc1_ref, *, stride, th, Wo):
    """conv1(3x3, stride) + folded BN1 + ReLU for a (th+2)-row halo slab.

    Writes the slab into the spatially padded (th+2, Wo+2, Cmid) bf16 VMEM scratch
    that feeds conv2 (border columns / image-edge halo rows zeroed = conv2 padding).
    """
    s = stride
    i = pl.program_id(1)
    row0 = i * th
    m2 = (th + 2) * Wo
    cin = x_ref.shape[-1]
    cmid = h_ref.shape[-1]

    acc1_ref[...] = jnp.zeros_like(acc1_ref)
    for dh in range(3):
        for dw in range(3):
            p = (dh % s) * s + (dw % s)        # phase index (static)
            qh, qw = dh // s, dw // s          # shift inside the phase (static)
            xs = x_ref[p, pl.ds(row0 + qh, th + 2), qw:qw + Wo, :]   # (th+2, Wo, Cin_p)
            acc1_ref[...] += jnp.dot(xs.reshape(m2, cin), w1_ref[dh * 3 + dw],
                                     preferred_element_type=jnp.float32)

    # folded BN1 + ReLU, once in the epilogue.
    # TODO(synk): train-mode dropout mask would be applied here.
    y1 = jnp.maximum(acc1_ref[...] * s1_ref[...] + b1_ref[...], 0.0)
    h_ref[:, 1:Wo + 1, :] = y1.reshape(th + 2, Wo, cmid).astype(h_ref.dtype)

    # conv2 zero-padding: left/right columns always, top/bottom rows at image edges.
    zcol = jnp.zeros((th + 2, 1, cmid), h_ref.dtype)
    h_ref[:, 0:1, :] = zcol
    h_ref[:, Wo + 1:Wo + 2, :] = zcol
    zrow = jnp.zeros((1, Wo + 2, cmid), h_ref.dtype)

    @pl.when(i == 0)
    def _():
        h_ref[0:1, :, :] = zrow

    @pl.when(i == pl.num_programs(1) - 1)
    def _():
        h_ref[th + 1:th + 2, :, :] = zrow


def _conv2_acc(h_ref, w2_ref, acc2_ref, *, th, Wo):
    """conv2(3x3, stride 1) on the VMEM-resident halo slab; f32 accumulation."""
    m = th * Wo
    cmid = h_ref.shape[-1]
    acc2_ref[...] = jnp.zeros_like(acc2_ref)
    for dh in range(3):
        for dw in range(3):
            hs = h_ref[dh:dh + th, dw:dw + Wo, :]           # static slices only
            acc2_ref[...] += jnp.dot(hs.reshape(m, cmid), w2_ref[dh * 3 + dw],
                                     preferred_element_type=jnp.float32)


def _block_identity_kernel(x_ref, w1_ref, s1_ref, b1_ref, w2_ref, s2_ref, b2_ref,
                           res_ref, o_ref, h_ref, acc1_ref, acc2_ref, *, stride, th, Wo):
    _conv1_to_scratch(x_ref, w1_ref, s1_ref, b1_ref, h_ref, acc1_ref,
                      stride=stride, th=th, Wo=Wo)
    _conv2_acc(h_ref, w2_ref, acc2_ref, th=th, Wo=Wo)
    y = acc2_ref[...] * s2_ref[...] + b2_ref[...] + res_ref[0].astype(jnp.float32)
    o_ref[0] = jnp.maximum(y, 0.0).astype(o_ref.dtype)


def _block_downsample_kernel(x_ref, w1_ref, s1_ref, b1_ref, w2_ref, s2_ref, b2_ref,
                             xd_ref, wd_ref, sd_ref, bd_ref, o_ref,
                             h_ref, acc1_ref, acc2_ref, *, stride, th, Wo):
    _conv1_to_scratch(x_ref, w1_ref, s1_ref, b1_ref, h_ref, acc1_ref,
                      stride=stride, th=th, Wo=Wo)
    _conv2_acc(h_ref, w2_ref, acc2_ref, th=th, Wo=Wo)
    # fused 1x1 downsample conv + folded BN on the residual branch
    r = jnp.dot(xd_ref[0], wd_ref[...], preferred_element_type=jnp.float32)
    r = r * sd_ref[...] + bd_ref[...]
    y = acc2_ref[...] * s2_ref[...] + b2_ref[...] + r
    o_ref[0] = jnp.maximum(y, 0.0).astype(o_ref.dtype)


# ---------------------------------------------------------------------------
# Parameters + forward pass (NCHW in / NCHW out, like the PyTorch module)
# ---------------------------------------------------------------------------
def make_params(key, in_channels, out_channels, stride):
    ks = jax.random.split(key, 12)
    p = {
        # conv weights stored HWIO
        "w1": 0.1 * jax.random.normal(ks[0], (3, 3, in_channels, out_channels), jnp.float32),
        "w2": 0.1 * jax.random.normal(ks[1], (3, 3, out_channels, out_channels), jnp.float32),
        "bn1": (1.0 + 0.1 * jax.random.normal(ks[2], (out_channels,), jnp.float32),
                0.1 * jax.random.normal(ks[3], (out_channels,), jnp.float32),
                0.1 * jax.random.normal(ks[4], (out_channels,), jnp.float32),
                jnp.abs(jax.random.normal(ks[5], (out_channels,), jnp.float32)) + 0.5),
        "bn2": (1.0 + 0.1 * jax.random.normal(ks[6], (out_channels,), jnp.float32),
                0.1 * jax.random.normal(ks[7], (out_channels,), jnp.float32),
                0.1 * jax.random.normal(ks[8], (out_channels,), jnp.float32),
                jnp.abs(jax.random.normal(ks[9], (out_channels,), jnp.float32)) + 0.5),
        "wd": None,
        "bnd": None,
    }
    if stride != 1 or in_channels != out_channels:
        p["wd"] = 0.1 * jax.random.normal(ks[10], (in_channels, out_channels), jnp.float32)
        kd = jax.random.split(ks[11], 4)
        p["bnd"] = (1.0 + 0.1 * jax.random.normal(kd[0], (out_channels,), jnp.float32),
                    0.1 * jax.random.normal(kd[1], (out_channels,), jnp.float32),
                    0.1 * jax.random.normal(kd[2], (out_channels,), jnp.float32),
                    jnp.abs(jax.random.normal(kd[3], (out_channels,), jnp.float32)) + 0.5)
    return p


def residual_block_forward(x_nchw, params, stride):
    x = jnp.transpose(x_nchw, (0, 2, 3, 1)).astype(jnp.float32)      # -> NHWC
    N, H, W, Cin = x.shape
    Cout = params["w1"].shape[-1]
    Cin_p, Cout_p = _round_up(Cin, LANE), _round_up(Cout, LANE)
    Ho = (H - 1) // stride + 1
    Wo = (W - 1) // stride + 1

    # conv1 input: channel-pad, cast bf16 early (halves wrapper traffic), phase-stack.
    xb = _pad_channels(x, Cin_p).astype(jnp.bfloat16)
    ph = _phase_stack(xb, stride, Ho, Wo)
    nph = stride * stride
    HqP, Wq = ph.shape[1], ph.shape[2]

    # weights / folded BN (bf16 weights, f32 scale/bias applied in the epilogue)
    s1, b1 = _fold_bn(*params["bn1"])
    s2, b2 = _fold_bn(*params["bn2"])
    w1 = jnp.pad(params["w1"], ((0, 0), (0, 0), (0, Cin_p - Cin), (0, Cout_p - Cout)))
    w1 = w1.reshape(9, Cin_p, Cout_p).astype(jnp.bfloat16)
    w2 = jnp.pad(params["w2"], ((0, 0), (0, 0), (0, Cout_p - Cout), (0, Cout_p - Cout)))
    w2 = w2.reshape(9, Cout_p, Cout_p).astype(jnp.bfloat16)

    def _vec(v):
        return jnp.pad(v, (0, Cout_p - Cout)).reshape(1, Cout_p).astype(jnp.float32)

    # tiling: rows innermost, generation-aware M-tile, output full Cout_p wide
    th = _pick_row_tile(Ho, Wo, _max_rows())
    n_row = Ho // th
    m = th * Wo
    grid = (N, n_row)

    x_spec = pl.BlockSpec((nph, HqP, Wq, Cin_p), lambda n, i: (n, 0, 0, 0))
    w1_spec = pl.BlockSpec((9, Cin_p, Cout_p), lambda n, i: (0, 0, 0))
    w2_spec = pl.BlockSpec((9, Cout_p, Cout_p), lambda n, i: (0, 0, 0))
    vec_spec = pl.BlockSpec((1, Cout_p), lambda n, i: (0, 0))
    o_spec = pl.BlockSpec((1, m, Cout_p), lambda n, i: (n, i, 0))
    scratch = [pltpu.VMEM((th + 2, Wo + 2, Cout_p), jnp.bfloat16),     # conv1->conv2 slab
               pltpu.VMEM(((th + 2) * Wo, Cout_p), jnp.float32),       # conv1 accumulator
               pltpu.VMEM((m, Cout_p), jnp.float32)]                   # conv2 accumulator
    out_shape = jax.ShapeDtypeStruct((N, Ho * Wo, Cout_p), jnp.bfloat16)
    cparams = pltpu.CompilerParams(dimension_semantics=("parallel", "parallel"),
                                   vmem_limit_bytes=_vmem_limit_bytes())

    if params["wd"] is not None:
        sd, bd = _fold_bn(*params["bnd"])
        xd = xb[:, ::stride, ::stride, :].reshape(N, Ho * Wo, Cin_p)   # bf16 residual input
        wd = jnp.pad(params["wd"], ((0, Cin_p - Cin), (0, Cout_p - Cout))).astype(jnp.bfloat16)
        kern = functools.partial(_block_downsample_kernel, stride=stride, th=th, Wo=Wo)
        out = pl.pallas_call(
            kern, out_shape=out_shape, grid=grid,
            in_specs=[x_spec, w1_spec, vec_spec, vec_spec, w2_spec, vec_spec, vec_spec,
                      pl.BlockSpec((1, m, Cin_p), lambda n, i: (n, i, 0)),
                      pl.BlockSpec((Cin_p, Cout_p), lambda n, i: (0, 0)),
                      vec_spec, vec_spec],
            out_specs=o_spec, scratch_shapes=scratch, compiler_params=cparams,
        )(ph, w1, _vec(s1), _vec(b1), w2, _vec(s2), _vec(b2), xd, wd, _vec(sd), _vec(bd))
    else:
        assert stride == 1 and Cin == Cout, "identity path requires stride==1 and Cin==Cout"
        res = xb.reshape(N, H * W, Cout_p)                             # bf16 identity residual
        kern = functools.partial(_block_identity_kernel, stride=stride, th=th, Wo=Wo)
        out = pl.pallas_call(
            kern, out_shape=out_shape, grid=grid,
            in_specs=[x_spec, w1_spec, vec_spec, vec_spec, w2_spec, vec_spec, vec_spec,
                      pl.BlockSpec((1, m, Cout_p), lambda n, i: (n, i, 0))],
            out_specs=o_spec, scratch_shapes=scratch, compiler_params=cparams,
        )(ph, w1, _vec(s1), _vec(b1), w2, _vec(s2), _vec(b2), res)

    out = out[:, :, :Cout].reshape(N, Ho, Wo, Cout).astype(jnp.float32)
    return jnp.transpose(out, (0, 3, 1, 2))                            # -> NCHW


# ---------------------------------------------------------------------------
# Pure-JAX reference (lax convolutions) for the correctness check
# ---------------------------------------------------------------------------
def _ref_forward(x_nchw, params, stride):
    x = jnp.transpose(x_nchw, (0, 2, 3, 1)).astype(jnp.float32)

    def conv(inp, w_hwio, strd, pad):
        return jax.lax.conv_general_dilated(
            inp, w_hwio, (strd, strd), ((pad, pad), (pad, pad)),
            dimension_numbers=("NHWC", "HWIO", "NHWC"))

    s1, b1 = _fold_bn(*params["bn1"])
    y = jnp.maximum(conv(x, params["w1"], stride, 1) * s1 + b1, 0.0)
    s2, b2 = _fold_bn(*params["bn2"])
    y = conv(y, params["w2"], 1, 1) * s2 + b2
    if params["wd"] is not None:
        sd, bd = _fold_bn(*params["bnd"])
        wd = params["wd"].reshape(1, 1, *params["wd"].shape)
        ident = conv(x, wd, stride, 0) * sd + bd
    else:
        ident = x
    out = jnp.maximum(y + ident, 0.0)
    return jnp.transpose(out, (0, 3, 1, 2))


if __name__ == "__main__":
    key = jax.random.PRNGKey(0)
    k_x, k_p, k_x2, k_p2 = jax.random.split(key, 4)

    # --- config 1: downsample branch (stride 2, Cin != Cout) ---
    N, Cin, H, W = 2, 4, 16, 16
    Cout, stride = 8, 2
    x = jax.random.normal(k_x, (N, Cin, H, W), jnp.float32)
    params = make_params(k_p, Cin, Cout, stride)

    fwd = jax.jit(functools.partial(residual_block_forward, stride=stride))
    out = jax.block_until_ready(fwd(x, params))
    ref = _ref_forward(x, params, stride)
    assert out.shape == (N, Cout, H // stride, W // stride), out.shape
    err = float(jnp.max(jnp.abs(out - ref)))
    assert jnp.allclose(out, ref, atol=5e-2, rtol=5e-2), err

    # --- config 2: identity branch (stride 1, Cin == Cout) ---
    C2 = 8
    x2 = jax.random.normal(k_x2, (N, C2, H, W), jnp.float32)
    params2 = make_params(k_p2, C2, C2, 1)
    fwd2 = jax.jit(functools.partial(residual_block_forward, stride=1))
    out2 = jax.block_until_ready(fwd2(x2, params2))
    ref2 = _ref_forward(x2, params2, 1)
    assert out2.shape == (N, C2, H, W), out2.shape
    err2 = float(jnp.max(jnp.abs(out2 - ref2)))
    assert jnp.allclose(out2, ref2, atol=5e-2, rtol=5e-2), err2

    print("KERNEL_OK")
</pallas_src>

<mosaic_0001>
module attributes {stable_mosaic.version = 11 : i64} {
  func.func @_block_downsample_kernel(%arg0: i32, %arg1: i32, %arg2: memref<4x11x9x128xbf16, #tpu.memory_space<vmem>>, %arg3: memref<9x128x128xbf16, #tpu.memory_space<vmem>>, %arg4: memref<1x128xf32, #tpu.memory_space<vmem>>, %arg5: memref<1x128xf32, #tpu.memory_space<vmem>>, %arg6: memref<9x128x128xbf16, #tpu.memory_space<vmem>>, %arg7: memref<1x128xf32, #tpu.memory_space<vmem>>, %arg8: memref<1x128xf32, #tpu.memory_space<vmem>>, %arg9: memref<1x64x128xbf16, #tpu.memory_space<vmem>>, %arg10: memref<128x128xbf16, #tpu.memory_space<vmem>>, %arg11: memref<1x128xf32, #tpu.memory_space<vmem>>, %arg12: memref<1x128xf32, #tpu.memory_space<vmem>>, %arg13: memref<1x64x128xbf16, #tpu.memory_space<vmem>>, %arg14: memref<10x10x128xbf16, #tpu.memory_space<vmem>>, %arg15: memref<80x128xf32, #tpu.memory_space<vmem>>, %arg16: memref<64x128xf32, #tpu.memory_space<vmem>>) attributes {dimension_semantics = [#tpu.dimension_semantics<parallel>, #tpu.dimension_semantics<parallel>], iteration_bounds = array<i64: 2, 1>, scalar_prefetch = 0 : i64, scratch_operands = 3 : i64, tpu.core_type = #tpu.core_type<tc>, window_params = [{transform_indices = @transform_0, window_bounds = array<i64: 4, 11, 9, 128>}, {pipeline_mode = #tpu.pipeline_mode<synchronous>, transform_indices = @transform_1, window_bounds = array<i64: 9, 128, 128>}, {pipeline_mode = #tpu.pipeline_mode<synchronous>, transform_indices = @transform_2, window_bounds = array<i64: 1, 128>}, {pipeline_mode = #tpu.pipeline_mode<synchronous>, transform_indices = @transform_3, window_bounds = array<i64: 1, 128>}, {pipeline_mode = #tpu.pipeline_mode<synchronous>, transform_indices = @transform_4, window_bounds = array<i64: 9, 128, 128>}, {pipeline_mode = #tpu.pipeline_mode<synchronous>, transform_indices = @transform_5, window_bounds = array<i64: 1, 128>}, {pipeline_mode = #tpu.pipeline_mode<synchronous>, transform_indices = @transform_6, window_bounds = array<i64: 1, 128>}, {transform_indices = @transform_7, window_bounds = array<i64: 1, 64, 128>}, {pipeline_mode = #tpu.pipeline_mode<synchronous>, transform_indices = @transform_8, window_bounds = array<i64: 128, 128>}, {pipeline_mode = #tpu.pipeline_mode<synchronous>, transform_indices = @transform_9, window_bounds = array<i64: 1, 128>}, {pipeline_mode = #tpu.pipeline_mode<synchronous>, transform_indices = @transform_10, window_bounds = array<i64: 1, 128>}, {transform_indices = @transform_11, window_bounds = array<i64: 1, 64, 128>}]} {
    %c8_i32 = arith.constant 8 : i32
    %0 = arith.muli %arg1, %c8_i32 : i32
    %cst = arith.constant 0.000000e+00 : f32
    %1 = vector.broadcast %cst : f32 to vector<80x128xf32>
    %c0 = arith.constant 0 : index
    %c0_0 = arith.constant 0 : index
    %2 = vector.load %arg15[%c0, %c0_0] : memref<80x128xf32, #tpu.memory_space<vmem>>, vector<80x128xf32>
    tpu.vector_store %arg15[%c0, %c0_0], %1 {strides = array<i32>} : memref<80x128xf32, #tpu.memory_space<vmem>>, vector<80x128xf32>,
    %c0_i32 = arith.constant 0 : i32
    %3 = arith.addi %0, %c0_i32 : i32
    %c0_1 = arith.constant 0 : index
    %4 = arith.index_cast %3 : i32 to index
    %c0_2 = arith.constant 0 : index
    %c0_3 = arith.constant 0 : index
    %5 = vector.load %arg2[%c0_1, %4, %c0_2, %c0_3] : memref<4x11x9x128xbf16, #tpu.memory_space<vmem>>, vector<1x10x8x128xbf16>
    %6 = vector.shape_cast %5 : vector<1x10x8x128xbf16> to vector<10x8x128xbf16>
    %c0_4 = arith.constant 0 : index
    %c0_5 = arith.constant 0 : index
    %7 = vector.load %arg15[%c0_4, %c0_5] : memref<80x128xf32, #tpu.memory_space<vmem>>, vector<80x128xf32>
    %8 = vector.shape_cast %6 : vector<10x8x128xbf16> to vector<80x128xbf16>
    %c0_6 = arith.constant 0 : index
    %c0_7 = arith.constant 0 : index
    %c0_8 = arith.constant 0 : index
    %9 = vector.load %arg3[%c0_6, %c0_7, %c0_8] : memref<9x128x128xbf16, #tpu.memory_space<vmem>>, vector<1x128x128xbf16>
    %10 = vector.shape_cast %9 : vector<1x128x128xbf16> to vector<128x128xbf16>
    %cst_9 = arith.constant dense<0.000000e+00> : vector<80x128xf32>
    %11 = tpu.matmul %8, %10, %cst_9 {dimension_numbers = #tpu.dot_dimension_numbers<[1], [0], [0], [1], [0, 0, 1, 1], [], []>} : vector<80x128xbf16>, vector<128x128xbf16>, vector<80x128xf32> -> vector<80x128xf32>
    %12 = arith.addf %7, %11 : vector<80x128xf32>
    %c0_10 = arith.constant 0 : index
    %c0_11 = arith.constant 0 : index
    %13 = vector.load %arg15[%c0_10, %c0_11] : memref<80x128xf32, #tpu.memory_space<vmem>>, vector<80x128xf32>
    tpu.vector_store %arg15[%c0_10, %c0_11], %12 {strides = array<i32>} : memref<80x128xf32, #tpu.memory_space<vmem>>, vector<80x128xf32>,
    %c0_i32_12 = arith.constant 0 : i32
    %14 = arith.addi %0, %c0_i32_12 : i32
    %c1 = arith.constant 1 : index
    %15 = arith.index_cast %14 : i32 to index
    %c0_13 = arith.constant 0 : index
    %c0_14 = arith.constant 0 : index
    %16 = vector.load %arg2[%c1, %15, %c0_13, %c0_14] : memref<4x11x9x128xbf16, #tpu.memory_space<vmem>>, vector<1x10x8x128xbf16>
    %17 = vector.shape_cast %16 : vector<1x10x8x128xbf16> to vector<10x8x128xbf16>
    %c0_15 = arith.constant 0 : index
    %c0_16 = arith.constant 0 : index
    %18 = vector.load %arg15[%c0_15, %c0_16] : memref<80x128xf32, #tpu.memory_space<vmem>>, vector<80x128xf32>
    %19 = vector.shape_cast %17 : vector<10x8x128xbf16> to vector<80x128xbf16>
    %c1_17 = arith.constant 1 : index
    %c0_18 = arith.constant 0 : index
    %c0_19 = arith.constant 0 : index
    %20 = vector.load %arg3[%c1_17, %c0_18, %c0_19] : memref<9x128x128xbf16, #tpu.memory_space<vmem>>, vector<1x128x128xbf16>
    %21 = vector.shape_cast %20 : vector<1x128x128xbf16> to vector<128x128xbf16>
    %cst_20 = arith.constant dense<0.000000e+00> : vector<80x128xf32>
    %22 = tpu.matmul %19, %21, %cst_20 {dimension_numbers = #tpu.dot_dimension_numbers<[1], [0], [0], [1], [0, 0, 1, 1], [], []>} : vector<80x128xbf16>, vector<128x128xbf16>, vector<80x128xf32> -> vector<80x128xf32>
    %23 = arith.addf %18, %22 : vector<80x128xf32>
    %c0_21 = arith.constant 0 : index
    %c0_22 = arith.constant 0 : index
    %24 = vector.load %arg15[%c0_21, %c0_22] : memref<80x128xf32, #tpu.memory_space<vmem>>, vector<80x128xf32>
    tpu.vector_store %arg15[%c0_21, %c0_22], %23 {strides = array<i32>} : memref<80x128xf32, #tpu.memory_space<vmem>>, vector<80x128xf32>,
    %c0_i32_23 = arith.constant 0 : i32
    %25 = arith.addi %0, %c0_i32_23 : i32
    %c0_24 = arith.constant 0 : index
    %26 = arith.index_cast %25 : i32 to index
    %c1_25 = arith.constant 1 : index
    %c0_26 = arith.constant 0 : index
    %27 = vector.load %arg2[%c0_24, %26, %c1_25, %c0_26] : memref<4x11x9x128xbf16, #tpu.memory_space<vmem>>, vector<1x10x8x128xbf16>
    %28 = vector.shape_cast %27 : vector<1x10x8x128xbf16> to vector<10x8x128xbf16>
    %c0_27 = arith.constant 0 : index
    %c0_28 = arith.constant 0 : index
    %29 = vector.load %arg15[%c0_27, %c0_28] : memref<80x128xf32, #tpu.memory_space<vmem>>, vector<80x128xf32>
    %30 = vector.shape_cast %28 : vector<10x8x128xbf16> to vector<80x128xbf16>
    %c2 = arith.constant 2 : index
    %c0_29 = arith.constant 0 : index
    %c0_30 = arith.constant 0 : index
    %31 = vector.load %arg3[%c2, %c0_29, %c0_30] : memref<9x128x128xbf16, #tpu.memory_space<vmem>>, vector<1x128x128xbf16>
    %32 = vector.shape_cast %31 : vector<1x128x128xbf16> to vector<128x128xbf16>
    %cst_31 = arith.constant dense<0.000000e+00> : vector<80x128xf32>
    %33 = tpu.matmul %30, %32, %cst_31 {dimension_numbers = #tpu.dot_dimension_numbers<[1], [0], [0], [1], [0, 0, 1, 1], [], []>} : vector<80x128xbf16>, vector<128x128xbf16>, vector<80x128xf32> -> vector<80x128xf32>
    %34 = arith.addf %29, %33 : vector<80x128xf32>
    %c0_32 = arith.constant 0 : index
    %c0_33 = arith.constant 0 : index
    %35 = vector.load %arg15[%c0_32, %c0_33] : memref<80x128xf32, #tpu.memory_space<vmem>>, vector<80x128xf32>
    tpu.vector_store %arg15[%c0_32, %c0_33], %34 {strides = array<i32>} : memref<80x128xf32, #tpu.memory_space<vmem>>, vector<80x128xf32>,
    %c0_i32_34 = arith.constant 0 : i32
    %36 = arith.addi %0, %c0_i32_34 : i32
    %c2_35 = arith.constant 2 : index
    %37 = arith.index_cast %36 : i32 to index
    %c0_36 = arith.constant 0 : index
    %c0_37 = arith.constant 0 : index
    %38 = vector.load %arg2[%c2_35, %37, %c0_36, %c0_37] : memref<4x11x9x128xbf16, #tpu.memory_space<vmem>>, vector<1x10x8x128xbf16>
    %39 = vector.shape_cast %38 : vector<1x10x8x128xbf16> to vector<10x8x128xbf16>
    %c0_38 = arith.constant 0 : index
    %c0_39 = arith.constant 0 : index
    %40 = vector.load %arg15[%c0_38, %c0_39] : memref<80x128xf32, #tpu.memory_space<vmem>>, vector<80x128xf32>
    %41 = vector.shape_cast %39 : vector<10x8x128xbf16> to vector<80x128xbf16>
    %c3 = arith.constant 3 : index
    %c0_40 = arith.constant 0 : index
    %c0_41 = arith.constant 0 : index
    %42 = vector.load %arg3[%c3, %c0_40, %c0_41] : memref<9x128x128xbf16, #tpu.memory_space<vmem>>, vector<1x128x128xbf16>
    %43 = vector.shape_cast %42 : vector<1x128x128xbf16> to vector<128x128xbf16>
    %cst_42 = arith.constant dense<0.000000e+00> : vector<80x128xf32>
    %44 = tpu.matmul %41, %43, %cst_42 {dimension_numbers = #tpu.dot_dimension_numbers<[1], [0], [0], [1], [0, 0, 1, 1], [], []>} : vector<80x128xbf16>, vector<128x128xbf16>, vector<80x128xf32> -> vector<80x128xf32>
    %45 = arith.addf %40, %44 : vector<80x128xf32>
    %c0_43 = arith.constant 0 : index
    %c0_44 = arith.constant 0 : index
    %46 = vector.load %arg15[%c0_43, %c0_44] : memref<80x128xf32, #tpu.memory_space<vmem>>, vector<80x128xf32>
    tpu.vector_store %arg15[%c0_43, %c0_44], %45 {strides = array<i32>} : memref<80x128xf32, #tpu.memory_space<vmem>>, vector<80x128xf32>,
    %c0_i32_45 = arith.constant 0 : i32
    %47 = arith.addi %0, %c0_i32_45 : i32
    %c3_46 = arith.constant 3 : index
    %48 = arith.index_cast %47 : i32 to index
    %c0_47 = arith.constant 0 : index
    %c0_48 = arith.constant 0 : index
    %49 = vector.load %arg2[%c3_46, %48, %c0_47, %c0_48] : memref<4x11x9x128xbf16, #tpu.memory_space<vmem>>, vector<1x10x8x128xbf16>
    %50 = vector.shape_cast %49 : vector<1x10x8x128xbf16> to vector<10x8x128xbf16>
    %c0_49 = arith.constant 0 : index
    %c0_50 = arith.constant 0 : index
    %51 = vector.load %arg15[%c0_49, %c0_50] : memref<80x128xf32, #tpu.memory_space<vmem>>, vector<80x128xf32>
    %52 = vector.shape_cast %50 : vector<10x8x128xbf16> to vector<80x128xbf16>
    %c4 = arith.constant 4 : index
    %c0_51 = arith.constant 0 : index
    %c0_52 = arith.constant 0 : index
    %53 = vector.load %arg3[%c4, %c0_51, %c0_52] : memref<9x128x128xbf16, #tpu.memory_space<vmem>>, vector<1x128x128xbf16>
    %54 = vector.shape_cast %53 : vector<1x128x128xbf16> to vector<128x128xbf16>
    %cst_53 = arith.constant dense<0.000000e+00> : vector<80x128xf32>
    %55 = tpu.matmul %52, %54, %cst_53 {dimension_numbers = #tpu.dot_dimension_numbers<[1], [0], [0], [1], [0, 0, 1, 1], [], []>} : vector<80x128xbf16>, vector<128x128xbf16>, vector<80x128xf32> -> vector<80x128xf32>
    %56 = arith.addf %51, %55 : vector<80x128xf32>
    %c0_54 = arith.constant 0 : index
    %c0_55 = arith.constant 0 : index
    %57 = vector.load %arg15[%c0_54, %c0_55] : memref<80x128xf32, #tpu.memory_space<vmem>>, vector<80x128xf32>
    tpu.vector_store %arg15[%c0_54, %c0_55], %56 {strides = array<i32>} : memref<80x128xf32, #tpu.memory_space<vmem>>, vector<80x128xf32>,
    %c0_i32_56 = arith.constant 0 : i32
    %58 = arith.addi %0, %c0_i32_56 : i32
    %c2_57 = arith.constant 2 : index
    %59 = arith.index_cast %58 : i32 to index
    %c1_58 = arith.constant 1 : index
    %c0_59 = arith.constant 0 : index
    %60 = vector.load %arg2[%c2_57, %59, %c1_58, %c0_59] : memref<4x11x9x128xbf16, #tpu.memory_space<vmem>>, vector<1x10x8x128xbf16>
    %61 = vector.shape_cast %60 : vector<1x10x8x128xbf16> to vector<10x8x128xbf16>
    %c0_60 = arith.constant 0 : index
    %c0_61 = arith.constant 0 : index
    %62 = vector.load %arg15[%c0_60, %c0_61] : memref<80x128xf32, #tpu.memory_space<vmem>>, vector<80x128xf32>
    %63 = vector.shape_cast %61 : vector<10x8x128xbf16> to vector<80x128xbf16>
    %c5 = arith.constant 5 : index
    %c0_62 = arith.constant 0 : index
    %c0_63 = arith.constant 0 : index
    %64 = vector.load %arg3[%c5, %c0_62, %c0_63] : memref<9x128x128xbf16, #tpu.memory_space<vmem>>, vector<1x128x128xbf16>
    %65 = vector.shape_cast %64 : vector<1x128x128xbf16> to vector<128x128xbf16>
    %cst_64 = arith.constant dense<0.000000e+00> : vector<80x128xf32>
    %66 = tpu.matmul %63, %65, %cst_64 {dimension_numbers = #tpu.dot_dimension_numbers<[1], [0], [0], [1], [0, 0, 1, 1], [], []>} : vector<80x128xbf16>, vector<128x128xbf16>, vector<80x128xf32> -> vector<80x128xf32>
    %67 = arith.addf %62, %66 : vector<80x128xf32>
    %c0_65 = arith.constant 0 : index
    %c0_66 = arith.constant 0 : index
    %68 = vector.load %arg15[%c0_65, %c0_66] : memref<80x128xf32, #tpu.memory_space<vmem>>, vector<80x128xf32>
    tpu.vector_store %arg15[%c0_65, %c0_66], %67 {strides = array<i32>} : memref<80x128xf32, #tpu.memory_space<vmem>>, vector<80x128xf32>,
    %c1_i32 = arith.constant 1 : i32
    %69 = arith.addi %0, %c1_i32 : i32
    %c0_67 = arith.constant 0 : index
    %70 = arith.index_cast %69 : i32 to index
    %c0_68 = arith.constant 0 : index
    %c0_69 = arith.constant 0 : index
    %71 = vector.load %arg2[%c0_67, %70, %c0_68, %c0_69] : memref<4x11x9x128xbf16, #tpu.memory_space<vmem>>, vector<1x10x8x128xbf16>
    %72 = vector.shape_cast %71 : vector<1x10x8x128xbf16> to vector<10x8x128xbf16>
    %c0_70 = arith.constant 0 : index
    %c0_71 = arith.constant 0 : index
    %73 = vector.load %arg15[%c0_70, %c0_71] : memref<80x128xf32, #tpu.memory_space<vmem>>, vector<80x128xf32>
    %74 = vector.shape_cast %72 : vector<10x8x128xbf16> to vector<80x128xbf16>
    %c6 = arith.constant 6 : index
    %c0_72 = arith.constant 0 : index
    %c0_73 = arith.constant 0 : index
    %75 = vector.load %arg3[%c6, %c0_72, %c0_73] : memref<9x128x128xbf16, #tpu.memory_space<vmem>>, vector<1x128x128xbf16>
    %76 = vector.shape_cast %75 : vector<1x128x128xbf16> to vector<128x128xbf16>
    %cst_74 = arith.constant dense<0.000000e+00> : vector<80x128xf32>
    %77 = tpu.matmul %74, %76, %cst_74 {dimension_numbers = #tpu.dot_dimension_numbers<[1], [0], [0], [1], [0, 0, 1, 1], [], []>} : vector<80x128xbf16>, vector<128x128xbf16>, vector<80x128xf32> -> vector<80x128xf32>
    %78 = arith.addf %73, %77 : vector<80x128xf32>
    %c0_75 = arith.constant 0 : index
    %c0_76 = arith.constant 0 : index
    %79 = vector.load %arg15[%c0_75, %c0_76] : memref<80x128xf32, #tpu.memory_space<vmem>>, vector<80x128xf32>
    tpu.vector_store %arg15[%c0_75, %c0_76], %78 {strides = array<i32>} : memref<80x128xf32, #tpu.memory_space<vmem>>, vector<80x128xf32>,
    %c1_i32_77 = arith.constant 1 : i32
    %80 = arith.addi %0, %c1_i32_77 : i32
    %c1_78 = arith.constant 1 : index
    %81 = arith.index_cast %80 : i32 to index
    %c0_79 = arith.constant 0 : index
    %c0_80 = arith.constant 0 : index
    %82 = vector.load %arg2[%c1_78, %81, %c0_79, %c0_80] : memref<4x11x9x128xbf16, #tpu.memory_space<vmem>>, vector<1x10x8x128xbf16>
    %83 = vector.shape_cast %82 : vector<1x10x8x128xbf16> to vector<10x8x128xbf16>
    %c0_81 = arith.constant 0 : index
    %c0_82 = arith.constant 0 : index
    %84 = vector.load %arg15[%c0_81, %c0_82] : memref<80x128xf32, #tpu.memory_space<vmem>>, vector<80x128xf32>
    %85 = vector.shape_cast %83 : vector<10x8x128xbf16> to vector<80x128xbf16>
    %c7 = arith.constant 7 : index
    %c0_83 = arith.constant 0 : index
    %c0_84 = arith.constant 0 : index
    %86 = vector.load %arg3[%c7, %c0_83, %c0_84] : memref<9x128x128xbf16, #tpu.memory_space<vmem>>, vector<1x128x128xbf16>
    %87 = vector.shape_cast %86 : vector<1x128x128xbf16> to vector<128x128xbf16>
    %cst_85 = arith.constant dense<0.000000e+00> : vector<80x128xf32>
    %88 = tpu.matmul %85, %87, %cst_85 {dimension_numbers = #tpu.dot_dimension_numbers<[1], [0], [0], [1], [0, 0, 1, 1], [], []>} : vector<80x128xbf16>, vector<128x128xbf16>, vector<80x128xf32> -> vector<80x128xf32>
    %89 = arith.addf %84, %88 : vector<80x128xf32>
    %c0_86 = arith.constant 0 : index
    %c0_87 = arith.constant 0 : index
    %90 = vector.load %arg15[%c0_86, %c0_87] : memref<80x128xf32, #tpu.memory_space<vmem>>, vector<80x128xf32>
    tpu.vector_store %arg15[%c0_86, %c0_87], %89 {strides = array<i32>} : memref<80x128xf32, #tpu.memory_space<vmem>>, vector<80x128xf32>,
    %c1_i32_88 = arith.constant 1 : i32
    %91 = arith.addi %0, %c1_i32_88 : i32
    %c0_89 = arith.constant 0 : index
    %92 = arith.index_cast %91 : i32 to index
    %c1_90 = arith.constant 1 : index
    %c0_91 = arith.constant 0 : index
    %93 = vector.load %arg2[%c0_89, %92, %c1_90, %c0_91] : memref<4x11x9x128xbf16, #tpu.memory_space<vmem>>, vector<1x10x8x128xbf16>
    %94 = vector.shape_cast %93 : vector<1x10x8x128xbf16> to vector<10x8x128xbf16>
    %c0_92 = arith.constant 0 : index
    %c0_93 = arith.constant 0 : index
    %95 = vector.load %arg15[%c0_92, %c0_93] : memref<80x128xf32, #tpu.memory_space<vmem>>, vector<80x128xf32>
    %96 = vector.shape_cast %94 : vector<10x8x128xbf16> to vector<80x128xbf16>
    %c8 = arith.constant 8 : index
    %c0_94 = arith.constant 0 : index
    %c0_95 = arith.constant 0 : index
    %97 = vector.load %arg3[%c8, %c0_94, %c0_95] : memref<9x128x128xbf16, #tpu.memory_space<vmem>>, vector<1x128x128xbf16>
    %98 = vector.shape_cast %97 : vector<1x128x128xbf16> to vector<128x128xbf16>
    %cst_96 = arith.constant dense<0.000000e+00> : vector<80x128xf32>
    %99 = tpu.matmul %96, %98, %cst_96 {dimension_numbers = #tpu.dot_dimension_numbers<[1], [0], [0], [1], [0, 0, 1, 1], [], []>} : vector<80x128xbf16>, vector<128x128xbf16>, vector<80x128xf32> -> vector<80x128xf32>
    %100 = arith.addf %95, %99 : vector<80x128xf32>
    %c0_97 = arith.constant 0 : index
    %c0_98 = arith.constant 0 : index
    %101 = vector.load %arg15[%c0_97, %c0_98] : memref<80x128xf32, #tpu.memory_space<vmem>>, vector<80x128xf32>
    tpu.vector_store %arg15[%c0_97, %c0_98], %100 {strides = array<i32>} : memref<80x128xf32, #tpu.memory_space<vmem>>, vector<80x128xf32>,
    %c0_99 = arith.constant 0 : index
    %c0_100 = arith.constant 0 : index
    %102 = vector.load %arg15[%c0_99, %c0_100] : memref<80x128xf32, #tpu.memory_space<vmem>>, vector<80x128xf32>
    %c0_101 = arith.constant 0 : index
    %c0_102 = arith.constant 0 : index
    %103 = vector.load %arg4[%c0_101, %c0_102] : memref<1x128xf32, #tpu.memory_space<vmem>>, vector<1x128xf32>
    %104 = vector.broadcast %103 : vector<1x128xf32> to vector<80x128xf32>
    %105 = arith.mulf %102, %104 : vector<80x128xf32>
    %c0_103 = arith.constant 0 : index
    %c0_104 = arith.constant 0 : index
    %106 = vector.load %arg5[%c0_103, %c0_104] : memref<1x128xf32, #tpu.memory_space<vmem>>, vector<1x128xf32>
    %107 = vector.broadcast %106 : vector<1x128xf32> to vector<80x128xf32>
    %108 = arith.addf %105, %107 : vector<80x128xf32>
    %cst_105 = arith.constant 0.000000e+00 : f32
    %109 = vector.broadcast %cst_105 : f32 to vector<80x128xf32>
    %110 = arith.maximumf %108, %109 : vector<80x128xf32>
    %111 = vector.shape_cast %110 : vector<80x128xf32> to vector<10x8x128xf32>
    %112 = arith.truncf %111 : vector<10x8x128xf32> to vector<10x8x128xbf16>
    %c0_106 = arith.constant 0 : index
    %c1_107 = arith.constant 1 : index
    %c0_108 = arith.constant 0 : index
    %113 = vector.load %arg14[%c0_106, %c1_107, %c0_108] : memref<10x10x128xbf16, #tpu.memory_space<vmem>>, vector<10x8x128xbf16>
    tpu.vector_store %arg14[%c0_106, %c1_107, %c0_108], %112 {strides = array<i32>} : memref<10x10x128xbf16, #tpu.memory_space<vmem>>, vector<10x8x128xbf16>,
    %cst_109 = arith.constant 0.000000e+00 : bf16
    %114 = vector.broadcast %cst_109 : bf16 to vector<10x1x128xbf16>
    %c0_110 = arith.constant 0 : index
    %c0_111 = arith.constant 0 : index
    %c0_112 = arith.constant 0 : index
    %115 = vector.load %arg14[%c0_110, %c0_111, %c0_112] : memref<10x10x128xbf16, #tpu.memory_space<vmem>>, vector<10x1x128xbf16>
    tpu.vector_store %arg14[%c0_110, %c0_111, %c0_112], %114 {strides = array<i32>} : memref<10x10x128xbf16, #tpu.memory_space<vmem>>, vector<10x1x128xbf16>,
    %c0_113 = arith.constant 0 : index
    %c9 = arith.constant 9 : index
    %c0_114 = arith.constant 0 : index
    %116 = vector.load %arg14[%c0_113, %c9, %c0_114] : memref<10x10x128xbf16, #tpu.memory_space<vmem>>, vector<10x1x128xbf16>
    tpu.vector_store %arg14[%c0_113, %c9, %c0_114], %114 {strides = array<i32>} : memref<10x10x128xbf16, #tpu.memory_space<vmem>>, vector<10x1x128xbf16>,
    %cst_115 = arith.constant 0.000000e+00 : bf16
    %117 = vector.broadcast %cst_115 : bf16 to vector<1x10x128xbf16>
    %c0_i32_116 = arith.constant 0 : i32
    %118 = arith.cmpi eq, %arg1, %c0_i32_116 : i32
    %119 = arith.extui %118 : i1 to i32
    %c0_i32_117 = arith.constant 0 : i32
    %120 = arith.cmpi ne, %119, %c0_i32_117 : i32
    scf.if %120 {
      %c0_242 = arith.constant 0 : index
      %c0_243 = arith.constant 0 : index
      %c0_244 = arith.constant 0 : index
      %222 = vector.load %arg14[%c0_242, %c0_243, %c0_244] : memref<10x10x128xbf16, #tpu.memory_space<vmem>>, vector<1x10x128xbf16>
      tpu.vector_store %arg14[%c0_242, %c0_243, %c0_244], %117 {strides = array<i32>} : memref<10x10x128xbf16, #tpu.memory_space<vmem>>, vector<1x10x128xbf16>,
    } else {
    }
    %c0_i32_118 = arith.constant 0 : i32
    %121 = arith.cmpi eq, %arg1, %c0_i32_118 : i32
    %122 = arith.extui %121 : i1 to i32
    %c0_i32_119 = arith.constant 0 : i32
    %123 = arith.cmpi ne, %122, %c0_i32_119 : i32
    scf.if %123 {
      %c9_242 = arith.constant 9 : index
      %c0_243 = arith.constant 0 : index
      %c0_244 = arith.constant 0 : index
      %222 = vector.load %arg14[%c9_242, %c0_243, %c0_244] : memref<10x10x128xbf16, #tpu.memory_space<vmem>>, vector<1x10x128xbf16>
      tpu.vector_store %arg14[%c9_242, %c0_243, %c0_244], %117 {strides = array<i32>} : memref<10x10x128xbf16, #tpu.memory_space<vmem>>, vector<1x10x128xbf16>,
    } else {
    }
    %cst_120 = arith.constant 0.000000e+00 : f32
    %124 = vector.broadcast %cst_120 : f32 to vector<64x128xf32>
    %c0_121 = arith.constant 0 : index
    %c0_122 = arith.constant 0 : index
    %125 = vector.load %arg16[%c0_121, %c0_122] : memref<64x128xf32, #tpu.memory_space<vmem>>, vector<64x128xf32>
    tpu.vector_store %arg16[%c0_121, %c0_122], %124 {strides = array<i32>} : memref<64x128xf32, #tpu.memory_space<vmem>>, vector<64x128xf32>,
    %c0_123 = arith.constant 0 : index
    %c0_124 = arith.constant 0 : index
    %c0_125 = arith.constant 0 : index
    %126 = vector.load %arg14[%c0_123, %c0_124, %c0_125] : memref<10x10x128xbf16, #tpu.memory_space<vmem>>, vector<8x8x128xbf16>
    %c0_126 = arith.constant 0 : index
    %c0_127 = arith.constant 0 : index
    %127 = vector.load %arg16[%c0_126, %c0_127] : memref<64x128xf32, #tpu.memory_space<vmem>>, vector<64x128xf32>
    %128 = vector.shape_cast %126 : vector<8x8x128xbf16> to vector<64x128xbf16>
    %c0_128 = arith.constant 0 : index
    %c0_129 = arith.constant 0 : index
    %c0_130 = arith.constant 0 : index
    %129 = vector.load %arg6[%c0_128, %c0_129, %c0_130] : memref<9x128x128xbf16, #tpu.memory_space<vmem>>, vector<1x128x128xbf16>
    %130 = vector.shape_cast %129 : vector<1x128x128xbf16> to vector<128x128xbf16>
    %cst_131 = arith.constant dense<0.000000e+00> : vector<64x128xf32>
    %131 = tpu.matmul %128, %130, %cst_131 {dimension_numbers = #tpu.dot_dimension_numbers<[1], [0], [0], [1], [0, 0, 1, 1], [], []>} : vector<64x128xbf16>, vector<128x128xbf16>, vector<64x128xf32> -> vector<64x128xf32>
    %132 = arith.addf %127, %131 : vector<64x128xf32>
    %c0_132 = arith.constant 0 : index
    %c0_133 = arith.constant 0 : index
    %133 = vector.load %arg16[%c0_132, %c0_133] : memref<64x128xf32, #tpu.memory_space<vmem>>, vector<64x128xf32>
    tpu.vector_store %arg16[%c0_132, %c0_133], %132 {strides = array<i32>} : memref<64x128xf32, #tpu.memory_space<vmem>>, vector<64x128xf32>,
    %c0_134 = arith.constant 0 : index
    %c1_135 = arith.constant 1 : index
    %c0_136 = arith.constant 0 : index
    %134 = vector.load %arg14[%c0_134, %c1_135, %c0_136] : memref<10x10x128xbf16, #tpu.memory_space<vmem>>, vector<8x8x128xbf16>
    %c0_137 = arith.constant 0 : index
    %c0_138 = arith.constant 0 : index
    %135 = vector.load %arg16[%c0_137, %c0_138] : memref<64x128xf32, #tpu.memory_space<vmem>>, vector<64x128xf32>
    %136 = vector.shape_cast %134 : vector<8x8x128xbf16> to vector<64x128xbf16>
    %c1_139 = arith.constant 1 : index
    %c0_140 = arith.constant 0 : index
    %c0_141 = arith.constant 0 : index
    %137 = vector.load %arg6[%c1_139, %c0_140, %c0_141] : memref<9x128x128xbf16, #tpu.memory_space<vmem>>, vector<1x128x128xbf16>
    %138 = vector.shape_cast %137 : vector<1x128x128xbf16> to vector<128x128xbf16>
    %cst_142 = arith.constant dense<0.000000e+00> : vector<64x128xf32>
    %139 = tpu.matmul %136, %138, %cst_142 {dimension_numbers = #tpu.dot_dimension_numbers<[1], [0], [0], [1], [0, 0, 1, 1], [], []>} : vector<64x128xbf16>, vector<128x128xbf16>, vector<64x128xf32> -> vector<64x128xf32>
    %140 = arith.addf %135, %139 : vector<64x128xf32>
    %c0_143 = arith.constant 0 : index
    %c0_144 = arith.constant 0 : index
    %141 = vector.load %arg16[%c0_143, %c0_144] : memref<64x128xf32, #tpu.memory_space<vmem>>, vector<64x128xf32>
    tpu.vector_store %arg16[%c0_143, %c0_144], %140 {strides = array<i32>} : memref<64x128xf32, #tpu.memory_space<vmem>>, vector<64x128xf32>,
    %c0_145 = arith.constant 0 : index
    %c2_146 = arith.constant 2 : index
    %c0_147 = arith.constant 0 : index
    %142 = vector.load %arg14[%c0_145, %c2_146, %c0_147] : memref<10x10x128xbf16, #tpu.memory_space<vmem>>, vector<8x8x128xbf16>
    %c0_148 = arith.constant 0 : index
    %c0_149 = arith.constant 0 : index
    %143 = vector.load %arg16[%c0_148, %c0_149] : memref<64x128xf32, #tpu.memory_space<vmem>>, vector<64x128xf32>
    %144 = vector.shape_cast %142 : vector<8x8x128xbf16> to vector<64x128xbf16>
    %c2_150 = arith.constant 2 : index
    %c0_151 = arith.constant 0 : index
    %c0_152 = arith.constant 0 : index
    %145 = vector.load %arg6[%c2_150, %c0_151, %c0_152] : memref<9x128x128xbf16, #tpu.memory_space<vmem>>, vector<1x128x128xbf16>
    %146 = vector.shape_cast %145 : vector<1x128x128xbf16> to vector<128x128xbf16>
    %cst_153 = arith.constant dense<0.000000e+00> : vector<64x128xf32>
    %147 = tpu.matmul %144, %146, %cst_153 {dimension_numbers = #tpu.dot_dimension_numbers<[1], [0], [0], [1], [0, 0, 1, 1], [], []>} : vector<64x128xbf16>, vector<128x128xbf16>, vector<64x128xf32> -> vector<64x128xf32>
    %148 = arith.addf %143, %147 : vector<64x128xf32>
    %c0_154 = arith.constant 0 : index
    %c0_155 = arith.constant 0 : index
    %149 = vector.load %arg16[%c0_154, %c0_155] : memref<64x128xf32, #tpu.memory_space<vmem>>, vector<64x128xf32>
    tpu.vector_store %arg16[%c0_154, %c0_155], %148 {strides = array<i32>} : memref<64x128xf32, #tpu.memory_space<vmem>>, vector<64x128xf32>,
    %c1_156 = arith.constant 1 : index
    %c0_157 = arith.constant 0 : index
    %c0_158 = arith.constant 0 : index
    %150 = vector.load %arg14[%c1_156, %c0_157, %c0_158] : memref<10x10x128xbf16, #tpu.memory_space<vmem>>, vector<8x8x128xbf16>
    %c0_159 = arith.constant 0 : index
    %c0_160 = arith.constant 0 : index
    %151 = vector.load %arg16[%c0_159, %c0_160] : memref<64x128xf32, #tpu.memory_space<vmem>>, vector<64x128xf32>
    %152 = vector.shape_cast %150 : vector<8x8x128xbf16> to vector<64x128xbf16>
    %c3_161 = arith.constant 3 : index
    %c0_162 = arith.constant 0 : index
    %c0_163 = arith.constant 0 : index
    %153 = vector.load %arg6[%c3_161, %c0_162, %c0_163] : memref<9x128x128xbf16, #tpu.memory_space<vmem>>, vector<1x128x128xbf16>
    %154 = vector.shape_cast %153 : vector<1x128x128xbf16> to vector<128x128xbf16>
    %cst_164 = arith.constant dense<0.000000e+00> : vector<64x128xf32>
    %155 = tpu.matmul %152, %154, %cst_164 {dimension_numbers = #tpu.dot_dimension_numbers<[1], [0], [0], [1], [0, 0, 1, 1], [], []>} : vector<64x128xbf16>, vector<128x128xbf16>, vector<64x128xf32> -> vector<64x128xf32>
    %156 = arith.addf %151, %155 : vector<64x128xf32>
    %c0_165 = arith.constant 0 : index
    %c0_166 = arith.constant 0 : index
    %157 = vector.load %arg16[%c0_165, %c0_166] : memref<64x128xf32, #tpu.memory_space<vmem>>, vector<64x128xf32>
    tpu.vector_store %arg16[%c0_165, %c0_166], %156 {strides = array<i32>} : memref<64x128xf32, #tpu.memory_space<vmem>>, vector<64x128xf32>,
    %c1_167 = arith.constant 1 : index
    %c1_168 = arith.constant 1 : index
    %c0_169 = arith.constant 0 : index
    %158 = vector.load %arg14[%c1_167, %c1_168, %c0_169] : memref<10x10x128xbf16, #tpu.memory_space<vmem>>, vector<8x8x128xbf16>
    %c0_170 = arith.constant 0 : index
    %c0_171 = arith.constant 0 : index
    %159 = vector.load %arg16[%c0_170, %c0_171] : memref<64x128xf32, #tpu.memory_space<vmem>>, vector<64x128xf32>
    %160 = vector.shape_cast %158 : vector<8x8x128xbf16> to vector<64x128xbf16>
    %c4_172 = arith.constant 4 : index
    %c0_173 = arith.constant 0 : index
    %c0_174 = arith.constant 0 : index
    %161 = vector.load %arg6[%c4_172, %c0_173, %c0_174] : memref<9x128x128xbf16, #tpu.memory_space<vmem>>, vector<1x128x128xbf16>
    %162 = vector.shape_cast %161 : vector<1x128x128xbf16> to vector<128x128xbf16>
    %cst_175 = arith.constant dense<0.000000e+00> : vector<64x128xf32>
    %163 = tpu.matmul %160, %162, %cst_175 {dimension_numbers = #tpu.dot_dimension_numbers<[1], [0], [0], [1], [0, 0, 1, 1], [], []>} : vector<64x128xbf16>, vector<128x128xbf16>, vector<64x128xf32> -> vector<64x128xf32>
    %164 = arith.addf %159, %163 : vector<64x128xf32>
    %c0_176 = arith.constant 0 : index
    %c0_177 = arith.constant 0 : index
    %165 = vector.load %arg16[%c0_176, %c0_177] : memref<64x128xf32, #tpu.memory_space<vmem>>, vector<64x128xf32>
    tpu.vector_store %arg16[%c0_176, %c0_177], %164 {strides = array<i32>} : memref<64x128xf32, #tpu.memory_space<vmem>>, vector<64x128xf32>,
    %c1_178 = arith.constant 1 : index
    %c2_179 = arith.constant 2 : index
    %c0_180 = arith.constant 0 : index
    %166 = vector.load %arg14[%c1_178, %c2_179, %c0_180] : memref<10x10x128xbf16, #tpu.memory_space<vmem>>, vector<8x8x128xbf16>
    %c0_181 = arith.constant 0 : index
    %c0_182 = arith.constant 0 : index
    %167 = vector.load %arg16[%c0_181, %c0_182] : memref<64x128xf32, #tpu.memory_space<vmem>>, vector<64x128xf32>
    %168 = vector.shape_cast %166 : vector<8x8x128xbf16> to vector<64x128xbf16>
    %c5_183 = arith.constant 5 : index
    %c0_184 = arith.constant 0 : index
    %c0_185 = arith.constant 0 : index
    %169 = vector.load %arg6[%c5_183, %c0_184, %c0_185] : memref<9x128x128xbf16, #tpu.memory_space<vmem>>, vector<1x128x128xbf16>
    %170 = vector.shape_cast %169 : vector<1x128x128xbf16> to vector<128x128xbf16>
    %cst_186 = arith.constant dense<0.000000e+00> : vector<64x128xf32>
    %171 = tpu.matmul %168, %170, %cst_186 {dimension_numbers = #tpu.dot_dimension_numbers<[1], [0], [0], [1], [0, 0, 1, 1], [], []>} : vector<64x128xbf16>, vector<128x128xbf16>, vector<64x128xf32> -> vector<64x128xf32>
    %172 = arith.addf %167, %171 : vector<64x128xf32>
    %c0_187 = arith.constant 0 : index
    %c0_188 = arith.constant 0 : index
    %173 = vector.load %arg16[%c0_187, %c0_188] : memref<64x128xf32, #tpu.memory_space<vmem>>, vector<64x128xf32>
    tpu.vector_store %arg16[%c0_187, %c0_188], %172 {strides = array<i32>} : memref<64x128xf32, #tpu.memory_space<vmem>>, vector<64x128xf32>,
    %c2_189 = arith.constant 2 : index
    %c0_190 = arith.constant 0 : index
    %c0_191 = arith.constant 0 : index
    %174 = vector.load %arg14[%c2_189, %c0_190, %c0_191] : memref<10x10x128xbf16, #tpu.memory_space<vmem>>, vector<8x8x128xbf16>
    %c0_192 = arith.constant 0 : index
    %c0_193 = arith.constant 0 : index
    %175 = vector.load %arg16[%c0_192, %c0_193] : memref<64x128xf32, #tpu.memory_space<vmem>>, vector<64x128xf32>
    %176 = vector.shape_cast %174 : vector<8x8x128xbf16> to vector<64x128xbf16>
    %c6_194 = arith.constant 6 : index
    %c0_195 = arith.constant 0 : index
    %c0_196 = arith.constant 0 : index
    %177 = vector.load %arg6[%c6_194, %c0_195, %c0_196] : memref<9x128x128xbf16, #tpu.memory_space<vmem>>, vector<1x128x128xbf16>
    %178 = vector.shape_cast %177 : vector<1x128x128xbf16> to vector<128x128xbf16>
    %cst_197 = arith.constant dense<0.000000e+00> : vector<64x128xf32>
    %179 = tpu.matmul %176, %178, %cst_197 {dimension_numbers = #tpu.dot_dimension_numbers<[1], [0], [0], [1], [0, 0, 1, 1], [], []>} : vector<64x128xbf16>, vector<128x128xbf16>, vector<64x128xf32> -> vector<64x128xf32>
    %180 = arith.addf %175, %179 : vector<64x128xf32>
    %c0_198 = arith.constant 0 : index
    %c0_199 = arith.constant 0 : index
    %181 = vector.load %arg16[%c0_198, %c0_199] : memref<64x128xf32, #tpu.memory_space<vmem>>, vector<64x128xf32>
    tpu.vector_store %arg16[%c0_198, %c0_199], %180 {strides = array<i32>} : memref<64x128xf32, #tpu.memory_space<vmem>>, vector<64x128xf32>,
    %c2_200 = arith.constant 2 : index
    %c1_201 = arith.constant 1 : index
    %c0_202 = arith.constant 0 : index
    %182 = vector.load %arg14[%c2_200, %c1_201, %c0_202] : memref<10x10x128xbf16, #tpu.memory_space<vmem>>, vector<8x8x128xbf16>
    %c0_203 = arith.constant 0 : index
    %c0_204 = arith.constant 0 : index
    %183 = vector.load %arg16[%c0_203, %c0_204] : memref<64x128xf32, #tpu.memory_space<vmem>>, vector<64x128xf32>
    %184 = vector.shape_cast %182 : vector<8x8x128xbf16> to vector<64x128xbf16>
    %c7_205 = arith.constant 7 : index
    %c0_206 = arith.constant 0 : index
    %c0_207 = arith.constant 0 : index
    %185 = vector.load %arg6[%c7_205, %c0_206, %c0_207] : memref<9x128x128xbf16, #tpu.memory_space<vmem>>, vector<1x128x128xbf16>
    %186 = vector.shape_cast %185 : vector<1x128x128xbf16> to vector<128x128xbf16>
    %cst_208 = arith.constant dense<0.000000e+00> : vector<64x128xf32>
    %187 = tpu.matmul %184, %186, %cst_208 {dimension_numbers = #tpu.dot_dimension_numbers<[1], [0], [0], [1], [0, 0, 1, 1], [], []>} : vector<64x128xbf16>, vector<128x128xbf16>, vector<64x128xf32> -> vector<64x128xf32>
    %188 = arith.addf %183, %187 : vector<64x128xf32>
    %c0_209 = arith.constant 0 : index
    %c0_210 = arith.constant 0 : index
    %189 = vector.load %arg16[%c0_209, %c0_210] : memref<64x128xf32, #tpu.memory_space<vmem>>, vector<64x128xf32>
    tpu.vector_store %arg16[%c0_209, %c0_210], %188 {strides = array<i32>} : memref<64x128xf32, #tpu.memory_space<vmem>>, vector<64x128xf32>,
    %c2_211 = arith.constant 2 : index
    %c2_212 = arith.constant 2 : index
    %c0_213 = arith.constant 0 : index
    %190 = vector.load %arg14[%c2_211, %c2_212, %c0_213] : memref<10x10x128xbf16, #tpu.memory_space<vmem>>, vector<8x8x128xbf16>
    %c0_214 = arith.constant 0 : index
    %c0_215 = arith.constant 0 : index
    %191 = vector.load %arg16[%c0_214, %c0_215] : memref<64x128xf32, #tpu.memory_space<vmem>>, vector<64x128xf32>
    %192 = vector.shape_cast %190 : vector<8x8x128xbf16> to vector<64x128xbf16>
    %c8_216 = arith.constant 8 : index
    %c0_217 = arith.constant 0 : index
    %c0_218 = arith.constant 0 : index
    %193 = vector.load %arg6[%c8_216, %c0_217, %c0_218] : memref<9x128x128xbf16, #tpu.memory_space<vmem>>, vector<1x128x128xbf16>
    %194 = vector.shape_cast %193 : vector<1x128x128xbf16> to vector<128x128xbf16>
    %cst_219 = arith.constant dense<0.000000e+00> : vector<64x128xf32>
    %195 = tpu.matmul %192, %194, %cst_219 {dimension_numbers = #tpu.dot_dimension_numbers<[1], [0], [0], [1], [0, 0, 1, 1], [], []>} : vector<64x128xbf16>, vector<128x128xbf16>, vector<64x128xf32> -> vector<64x128xf32>
    %196 = arith.addf %191, %195 : vector<64x128xf32>
    %c0_220 = arith.constant 0 : index
    %c0_221 = arith.constant 0 : index
    %197 = vector.load %arg16[%c0_220, %c0_221] : memref<64x128xf32, #tpu.memory_space<vmem>>, vector<64x128xf32>
    tpu.vector_store %arg16[%c0_220, %c0_221], %196 {strides = array<i32>} : memref<64x128xf32, #tpu.memory_space<vmem>>, vector<64x128xf32>,
    %c0_222 = arith.constant 0 : index
    %c0_223 = arith.constant 0 : index
    %c0_224 = arith.constant 0 : index
    %198 = vector.load %arg9[%c0_222, %c0_223, %c0_224] : memref<1x64x128xbf16, #tpu.memory_space<vmem>>, vector<1x64x128xbf16>
    %199 = vector.shape_cast %198 : vector<1x64x128xbf16> to vector<64x128xbf16>
    %c0_225 = arith.constant 0 : index
    %c0_226 = arith.constant 0 : index
    %200 = vector.load %arg10[%c0_225, %c0_226] : memref<128x128xbf16, #tpu.memory_space<vmem>>, vector<128x128xbf16>
    %cst_227 = arith.constant dense<0.000000e+00> : vector<64x128xf32>
    %201 = tpu.matmul %199, %200, %cst_227 {dimension_numbers = #tpu.dot_dimension_numbers<[1], [0], [0], [1], [0, 0, 1, 1], [], []>} : vector<64x128xbf16>, vector<128x128xbf16>, vector<64x128xf32> -> vector<64x128xf32>
    %c0_228 = arith.constant 0 : index
    %c0_229 = arith.constant 0 : index
    %202 = vector.load %arg11[%c0_228, %c0_229] : memref<1x128xf32, #tpu.memory_space<vmem>>, vector<1x128xf32>
    %203 = vector.broadcast %202 : vector<1x128xf32> to vector<64x128xf32>
    %204 = arith.mulf %201, %203 : vector<64x128xf32>
    %c0_230 = arith.constant 0 : index
    %c0_231 = arith.constant 0 : index
    %205 = vector.load %arg12[%c0_230, %c0_231] : memref<1x128xf32, #tpu.memory_space<vmem>>, vector<1x128xf32>
    %206 = vector.broadcast %205 : vector<1x128xf32> to vector<64x128xf32>
    %207 = arith.addf %204, %206 : vector<64x128xf32>
    %c0_232 = arith.constant 0 : index
    %c0_233 = arith.constant 0 : index
    %208 = vector.load %arg16[%c0_232, %c0_233] : memref<64x128xf32, #tpu.memory_space<vmem>>, vector<64x128xf32>
    %c0_234 = arith.constant 0 : index
    %c0_235 = arith.constant 0 : index
    %209 = vector.load %arg7[%c0_234, %c0_235] : memref<1x128xf32, #tpu.memory_space<vmem>>, vector<1x128xf32>
    %210 = vector.broadcast %209 : vector<1x128xf32> to vector<64x128xf32>
    %211 = arith.mulf %208, %210 : vector<64x128xf32>
    %c0_236 = arith.constant 0 : index
    %c0_237 = arith.constant 0 : index
    %212 = vector.load %arg8[%c0_236, %c0_237] : memref<1x128xf32, #tpu.memory_space<vmem>>, vector<1x128xf32>
    %213 = vector.broadcast %212 : vector<1x128xf32> to vector<64x128xf32>
    %214 = arith.addf %211, %213 : vector<64x128xf32>
    %215 = arith.addf %214, %207 : vector<64x128xf32>
    %cst_238 = arith.constant 0.000000e+00 : f32
    %216 = vector.broadcast %cst_238 : f32 to vector<64x128xf32>
    %217 = arith.maximumf %215, %216 : vector<64x128xf32>
    %218 = arith.truncf %217 : vector<64x128xf32> to vector<64x128xbf16>
    %c0_239 = arith.constant 0 : index
    %c0_240 = arith.constant 0 : index
    %c0_241 = arith.constant 0 : index
    %219 = vector.load %arg13[%c0_239, %c0_240, %c0_241] : memref<1x64x128xbf16, #tpu.memory_space<vmem>>, vector<1x64x128xbf16>
    %220 = vector.shape_cast %219 : vector<1x64x128xbf16> to vector<64x128xbf16>
    %221 = vector.shape_cast %218 : vector<64x128xbf16> to vector<1x64x128xbf16>
    tpu.vector_store %arg13[%c0_239, %c0_240, %c0_241], %221 {strides = array<i32>} : memref<1x64x128xbf16, #tpu.memory_space<vmem>>, vector<1x64x128xbf16>,
    return
  }
  func.func @transform_0(%arg0: i32, %arg1: i32) -> (i32, i32, i32, i32) {
    %c0_i32 = arith.constant 0 : i32
    %c0_i32_0 = arith.constant 0 : i32
    %c0_i32_1 = arith.constant 0 : i32
    %c0_i32_2 = arith.constant 0 : i32
    return %arg0, %c0_i32, %c0_i32_0, %c0_i32_1 : i32, i32, i32, i32
  }
  func.func @transform_1(%arg0: i32, %arg1: i32) -> (i32, i32, i32) {
    %c0_i32 = arith.constant 0 : i32
    %c0_i32_0 = arith.constant 0 : i32
    %c0_i32_1 = arith.constant 0 : i32
    %c0_i32_2 = arith.constant 0 : i32
    return %c0_i32, %c0_i32_0, %c0_i32_1 : i32, i32, i32
  }
  func.func @transform_2(%arg0: i32, %arg1: i32) -> (i32, i32) {
    %c0_i32 = arith.constant 0 : i32
    %c0_i32_0 = arith.constant 0 : i32
    %c0_i32_1 = arith.constant 0 : i32
    return %c0_i32, %c0_i32_0 : i32, i32
  }
  func.func @transform_3(%arg0: i32, %arg1: i32) -> (i32, i32) {
    %c0_i32 = arith.constant 0 : i32
    %c0_i32_0 = arith.constant 0 : i32
    %c0_i32_1 = arith.constant 0 : i32
    return %c0_i32, %c0_i32_0 : i32, i32
  }
  func.func @transform_4(%arg0: i32, %arg1: i32) -> (i32, i32, i32) {
    %c0_i32 = arith.constant 0 : i32
    %c0_i32_0 = arith.constant 0 : i32
    %c0_i32_1 = arith.constant 0 : i32
    %c0_i32_2 = arith.constant 0 : i32
    return %c0_i32, %c0_i32_0, %c0_i32_1 : i32, i32, i32
  }
  func.func @transform_5(%arg0: i32, %arg1: i32) -> (i32, i32) {
    %c0_i32 = arith.constant 0 : i32
    %c0_i32_0 = arith.constant 0 : i32
    %c0_i32_1 = arith.constant 0 : i32
    return %c0_i32, %c0_i32_0 : i32, i32
  }
  func.func @transform_6(%arg0: i32, %arg1: i32) -> (i32, i32) {
    %c0_i32 = arith.constant 0 : i32
    %c0_i32_0 = arith.constant 0 : i32
    %c0_i32_1 = arith.constant 0 : i32
    return %c0_i32, %c0_i32_0 : i32, i32
  }
  func.func @transform_7(%arg0: i32, %arg1: i32) -> (i32, i32, i32) {
    %c0_i32 = arith.constant 0 : i32
    %c0_i32_0 = arith.constant 0 : i32
    return %arg0, %arg1, %c0_i32 : i32, i32, i32
  }
  func.func @transform_8(%arg0: i32, %arg1: i32) -> (i32, i32) {
    %c0_i32 = arith.constant 0 : i32
    %c0_i32_0 = arith.constant 0 : i32
    %c0_i32_1 = arith.constant 0 : i32
    return %c0_i32, %c0_i32_0 : i32, i32
  }
  func.func @transform_9(%arg0: i32, %arg1: i32) -> (i32, i32) {
    %c0_i32 = arith.constant 0 : i32
    %c0_i32_0 = arith.constant 0 : i32
    %c0_i32_1 = arith.constant 0 : i32
    return %c0_i32, %c0_i32_0 : i32, i32
  }
  func.func @transform_10(%arg0: i32, %arg1: i32) -> (i32, i32) {
    %c0_i32 = arith.constant 0 : i32
    %c0_i32_0 = arith.constant 0 : i32
    %c0_i32_1 = arith.constant 0 : i32
    return %c0_i32, %c0_i32_0 : i32, i32
  }
  func.func @transform_11(%arg0: i32, %arg1: i32) -> (i32, i32, i32) {
    %c0_i32 = arith.constant 0 : i32
    %c0_i32_0 = arith.constant 0 : i32
    return %arg0, %arg1, %c0_i32 : i32, i32, i32
  }
}

</mosaic_0001>

<bundles_post_ra>
// kernel: residual_block_forward.1
= control target key start
LH: loop header
LB: loop body
LE: loop exit
PB: predicated region body
PF: predicated region fallthrough
CT: control target
= control target key end

     0   :  { %s6419_s17 = smov 0   ;;  %s6421_s18 = smov 0   ;;  %s7599_s0 = inlined_call_operand.vmem [shape: bf16[8,11,9,128], index: 0, kind: input, shape index: {}]   ;;  %s7600_s1 = inlined_call_operand.vmem [shape: bf16[9,128,128], index: 1, kind: input, shape index: {}]   ;;  %s7601_s2 = inlined_call_operand.vmem [shape: f32[1,128], index: 2, kind: input, shape index: {}]   ;;  %s7602_s3 = inlined_call_operand.vmem [shape: f32[1,128], index: 3, kind: input, shape index: {}]   ;;  %s7603_s4 = inlined_call_operand.vmem [shape: bf16[9,128,128], index: 4, kind: input, shape index: {}]   ;;  %s7604_s5 = inlined_call_operand.vmem [shape: f32[1,128], index: 5, kind: input, shape index: {}]   ;;  %s7605_s6 = inlined_call_operand.vmem [shape: f32[1,128], index: 6, kind: input, shape index: {}]   ;;  %s7606_s7 = inlined_call_operand.vmem [shape: bf16[2,64,128], index: 7, kind: input, shape index: {}]   ;;  %s7607_s8 = inlined_call_operand.vmem [shape: bf16[128,128], index: 8, kind: input, shape index: {}]   ;;  %s7608_s9 = inlined_call_operand.vmem [shape: f32[1,128], index: 9, kind: input, shape index: {}]   ;;  %s7609_s10 = inlined_call_operand.vmem [shape: f32[1,128], index: 10, kind: input, shape index: {}]   ;;  %s7610_s11 = inlined_call_operand.vmem [shape: bf16[2,64,128], index: 11, kind: output, shape index: {}]  }
   0x1   :  { %s6423_s19 = smov 0  }
   0x2 LB: > { %s33_s20 = sadd.s32 1, %s6352_s18  ;;  %p4900_p0 = scmp.ge.s32.totalorder %s6356_s19, 1  ;;  %s6356_s19 = sphi %s6423_s19, %s21_s19   ;;  %s6352_s18 = sphi %s6421_s18, %s7622_s18   ;;  %s6348_s17 = sphi %s6419_s17, %s7621_s17  }
   0x3   : > { %p35_p1 = scmp.ge.s32.totalorder %s33_s20, 2  ;;  %p370_p2 = scmp.lt.s32.totalorder %s6356_s19, 3 }
   0x5   : > { %s7624_s20 = smov (%p35_p1, %s33_s20), 0  ;;  %p371_p3 = pnand %p4900_p0, %p370_p2 }
   0x6   : > { %s4901_s27 = sshll.u32 (!%p371_p3), %s6348_s17, 2  ;;  %p432_p5 = scmp.lt.s32.totalorder (!%p371_p3), %s6348_s17, 1 }
   0x7   : > { %374 = sbr.rel (%p371_p3) target bundleno = 722 (0x2d2), region = 64  ;;  %p425_p4 = scmp.lt.s32.totalorder (!%p371_p3), %s4901_s27, 7 }
   0xc   : > { %v6085_v0 = vld [vmem:[%s7600_s1 + $0x38] sm:$0xff]  ;;  %v6084_v4 = vld [vmem:[%s7600_s1 + $0x30] sm:$0xff]  ;;  %s7626_s27 = smov (!%p425_p4, %s4901_s27), 7  ;;  %v6083_v8 = vld [vmem:[%s7600_s1 + $0x28] sm:$0xff]  ;;  %vm836_vm0 = vsmask.f32 3328 }
   0xd   : > { %v6098_v1 = vld [vmem:[%s7600_s1 + $0x78] sm:$0xff]  ;;  %580 = vmatpush.bf16.msra.mxu0 %v6085_v0  ;;  %v6097_v5 = vld [vmem:[%s7600_s1 + $0x70] sm:$0xff]  ;;  %s6302_s23 = smul.u32 88, %s7626_s27  ;;  %v6096_v9 = vld [vmem:[%s7600_s1 + $0x68] sm:$0xff]  ;;  %vm837_vm1 = vsmask.f32 7440 }
   0xe   : > { %v6106_v2 = vld [vmem:[%s7600_s1 + $0xb8] sm:$0xff]  ;;  %752 = vmatpush.bf16.msra.mxu1 %v6098_v1  ;;  %v6105_v6 = vld [vmem:[%s7600_s1 + $0xb0] sm:$0xff]  ;;  %v6104_v10 = vld [vmem:[%s7600_s1 + $0xa8] sm:$0xff]  ;;  %vm2583_vm3 = vcmask 1043456   ;;  %vm2584_vm4 = vsmask.f32 7938 }
   0xf   : > { %v6119_v3 = vld [vmem:[%s7600_s1 + $0xf8] sm:$0xff]  ;;  %1064 = vmatpush.bf16.msra.mxu2 %v6106_v2  ;;  %v6118_v7 = vld [vmem:[%s7600_s1 + $0xf0] sm:$0xff]  ;;  %v6117_v11 = vld [vmem:[%s7600_s1 + $0xe8] sm:$0xff]  ;;  %s6479_s15 = scalar_lea.vmem %s7599_s0, %s6302_s23  ;;  %vm2589_vm5 = vcmask 1040384   ;;  %vm2590_vm6 = vsmask.f32 256 }
  0x10   : > { %1236 = vmatpush.bf16.msra.mxu3 %v6119_v3  ;;  %v6082_v12 = vld [vmem:[%s7600_s1 + $0x20] sm:$0xff]  ;;  %v808_v18 = vld [vmem:[%s6479_s15 + $0x8] sm:$0xf]  ;;  %v809_v19 = vld [vmem:[%s6479_s15 + $0xc] sm:$0x1]  ;;  %vm3178_vm10 = vcmask 1042432  }
  0x11   : > { %581 = vmatpush.bf16.msra.mxu0 %v6084_v4  ;;  %v6095_v13 = vld [vmem:[%s7600_s1 + $0x60] sm:$0xff]  ;;  %v854_v22 = vshrl.u32 %v808_v18, 16  ;;  %v6081_v23 = vld [vmem:[%s7600_s1 + $0x18] sm:$0xff]  ;;  %v857_v26 = vshll.u32 %v808_v18, 16  ;;  %v863_v32 = vshll.u32 %v809_v19, 16  ;;  %v6080_v35 = vld [vmem:[%s7600_s1 + $0x10] sm:$0xff] }
  0x12   : > { %753 = vmatpush.bf16.msra.mxu1 %v6097_v5  ;;  %v6103_v14 = vld [vmem:[%s7600_s1 + $0xa0] sm:$0xff]  ;;  %v6094_v24 = vld [vmem:[%s7600_s1 + $0x58] sm:$0xff]  ;;  %v6093_v36 = vld [vmem:[%s7600_s1 + $0x50] sm:$0xff]  ;;  %vm3179_vm11 = vcmask 1046532   ;;  %s7628_s17 = smov (!%p432_p5, %s6348_s17), 1 }
  0x13   : > { %1065 = vmatpush.bf16.msra.mxu2 %v6105_v6  ;;  %v6116_v15 = vld [vmem:[%s7600_s1 + $0xe0] sm:$0xff]  ;;  %v6102_v27 = vld [vmem:[%s7600_s1 + $0x98] sm:$0xff]  ;;  %v856_v31 = vrot.slane %v854_v22, 4  ;;  %v859_v33 = vrot.slane %v857_v26, 5  ;;  %v6101_v37 = vld [vmem:[%s7600_s1 + $0x90] sm:$0xff]  ;;  %v865_v42 = vrot.slane %v863_v32, 5 }
  0x14   : > { %1237 = vmatpush.bf16.msra.mxu3 %v6118_v7  ;;  %v806_v16 = vld [vmem:[%s6479_s15] sm:$0xf]  ;;  %v807_v17 = vld [vmem:[%s6479_s15 + $0x4] sm:$0x1]  ;;  %v6115_v28 = vld [vmem:[%s7600_s1 + $0xd8] sm:$0xff]  ;;  %s6071_s28 = sshll.u32 %s7628_s17, 5 }
  0x15   : > { %582 = vmatpush.bf16.msra.mxu0 %v6083_v8  ;;  %v840_v20 = vshrl.u32 %v806_v16, 16  ;;  %v843_v21 = vshll.u32 %v806_v16, 16  ;;  %v849_v25 = vshll.u32 %v807_v17, 16  ;;  %v860_v38 = vor.u32 %v859_v33, %v856_v31  ;;  %v6114_v39 = vld [vmem:[%s7600_s1 + $0xd0] sm:$0xff]  ;;  %vm6524_vm2 = vmor %vm836_vm0, %vm837_vm1  ;;  %v812_v46 = vld [vmem:[%s6479_s15 + $0x18] sm:$0xf]  ;;  %s7448_s30 = scalar_lea.vmem %s7606_s7, %s6071_s28  ;;  %s7550_s23 = scalar_lea.vmem %s7610_s11, %s6071_s28 }
  0x16   : > { %754 = vmatpush.bf16.msra.mxu1 %v6096_v9  ;;  %v810_v43 = vld [vmem:[%s6479_s15 + $0x10] sm:$0xf]  ;;  %v6079_v47 = vld [vmem:[%s7600_s1 + $0x8] sm:$0xff]  ;;  %v882_v55 = vshrl.u32 %v812_v46, 16  ;;  %v885_v56 = vshll.u32 %v812_v46, 16  ;;  %v6078_v57 = vld [vmem:[%s7600_s1] sm:$0xff] }
  0x17   : > { %1066 = vmatpush.bf16.msra.mxu2 %v6104_v10  ;;  %v842_v29 = vrot.slane %v840_v20, 4  ;;  %v845_v30 = vrot.slane %v843_v21, 5  ;;  %v851_v41 = vrot.slane %v849_v25, 5  ;;  %v861_v45 = vrot.slane %v860_v38, 4  ;;  %v6092_v48 = vld [vmem:[%s7600_s1 + $0x48] sm:$0xff]  ;;  %v6091_v58 = vld [vmem:[%s7600_s1 + $0x40] sm:$0xff]  ;;  %vm7006_vm7 = vmand %vm2583_vm3, %vm2584_vm4 }
  0x18   : > { %1238 = vmatpush.bf16.msra.mxu3 %v6117_v11  ;;  %v868_v49 = vshrl.u32 %v810_v43, 16  ;;  %v871_v50 = vshll.u32 %v810_v43, 16  ;;  %v6100_v51 = vld [vmem:[%s7600_s1 + $0x88] sm:$0xff]  ;;  %v4909_v59 = vld [vmem:[%s6479_s15] sm:$0xf]  ;;  %v6132_v4 = vld [vmem:[%s7600_s1 + $0x138] sm:$0xff] }
  0x19   : > { %583 = vmatpush.bf16.msra.mxu0 %v6082_v12  ;;  %v846_v34 = vor.u32 %v845_v30, %v842_v29  ;;  %v6113_v52 = vld [vmem:[%s7600_s1 + $0xc8] sm:$0xff]  ;;  %v866_v54 = vsel %vm6524_vm2, %v861_v45, %v865_v42  ;;  %v4987_v61 = vld [vmem:[%s6479_s15 + $0x58] sm:$0xf]  ;;  %v6099_v62 = vld [vmem:[%s7600_s1 + $0x80] sm:$0xff]  ;;  %v884_v9 = vrot.slane %v882_v55, 4  ;;  %v887_v10 = vrot.slane %v885_v56, 5 }
  0x1a   : > { %755 = vmatpush.bf16.msra.mxu1 %v6095_v13  ;;  %v6073_v60 = vld [vmem:[%s6479_s15 + $0x4] sm:$0xf0]  ;;  %v6112_v63 = vld [vmem:[%s7600_s1 + $0xc0] sm:$0xff]  ;;  %v5113_v1 = vld [vmem:[%s6479_s15 + $0xb0] sm:$0xf]  ;;  %v997_v3 = vunpack.c.l.b16 %v866_v54  ;;  %v870_v7 = vrot.slane %v868_v49, 4 }
  0x1b   : > { %1067 = vmatpush.bf16.msra.mxu2 %v6103_v14  ;;  %v847_v40 = vrot.slane %v846_v34, 4  ;;  %v6086_v0 = vld [vmem:[%s6479_s15 + $0x5c] sm:$0xf0]  ;;  %v6107_v5 = vld [vmem:[%s6479_s15 + $0xb4] sm:$0xf0]  ;;  %v873_v8 = vrot.slane %v871_v50, 5  ;;  %v4910_v12 = vor.u32 %v6073_v60, %v4909_v59  ;;  %v888_v18 = vor.u32 %v887_v10, %v884_v9  ;;  %vm7015_vm8 = vmand %vm2589_vm5, %vm2590_vm6 }
  0x1c   : > { %1239 = vmatpush.bf16.msra.mxu3 %v6116_v15  ;;  %v811_v6 = vld [vmem:[%s6479_s15 + $0x14] sm:$0x1]  ;;  %v813_v11 = vld [vmem:[%s6479_s15 + $0x1c] sm:$0x1]  ;;  %v4988_v13 = vor.u32 %v6086_v0, %v4987_v61  ;;  %v5114_v15 = vor.u32 %v6107_v5, %v5113_v1  ;;  %v814_v25 = vld [vmem:[%s6479_s15 + $0x20] sm:$0xf] }
  0x1d   : > { %584 = vmatpush.bf16.msra.mxu0 %v6081_v23  ;;  %v852_v53 = vsel %vm6524_vm2, %v847_v40, %v851_v41  ;;  %v874_v16 = vor.u32 %v873_v8, %v870_v7  ;;  %v877_v17 = vshll.u32 %v811_v6, 16  ;;  %v891_v19 = vshll.u32 %v813_v11, 16  ;;  %v6131_v20 = vld [vmem:[%s7600_s1 + $0x130] sm:$0xff]  ;;  %v6130_v26 = vld [vmem:[%s7600_s1 + $0x128] sm:$0xff]  ;;  %v6129_v34 = vld [vmem:[%s7600_s1 + $0x120] sm:$0xff] }
  0x1e   : > { %756 = vmatpush.bf16.msra.mxu1 %v6094_v24  ;;  %v996_v2 = vunpack.c.l.b16 %v852_v53  ;;  %v889_v23 = vrot.slane %v888_v18, 4  ;;  %v899_v29 = vshll.u32 %v814_v25, 16  ;;  %v6087_v38 = vld [vmem:[%s6479_s15 + $0x6c] sm:$0xf0]  ;;  %v5117_v41 = vld [vmem:[%s6479_s15 + $0xc0] sm:$0xf]  ;;  %vm7058_vm9 = vmand %vm2589_vm5, %vm2584_vm4 }
  0x1f   : > { %1068 = vmatpush.bf16.msra.mxu2 %v6102_v27  ;;  %v875_v21 = vrot.slane %v874_v16, 4  ;;  %v879_v22 = vrot.slane %v877_v17, 5  ;;  %v893_v24 = vrot.slane %v891_v19, 5  ;;  %v816_v27 = vld [vmem:[%s6479_s15 + $0x28] sm:$0xf]  ;;  %v6128_v50 = vld [vmem:[%s7600_s1 + $0x118] sm:$0xff]  ;;  %vm7115_vm12 = vmor %vm3178_vm10, %vm3179_vm11 }
  0x20   : > { %1240 = vmatpush.bf16.msra.mxu3 %v6115_v28  ;;  %v1006_v14 = vpack.c.b16 %v997_v3, %v996_v2  ;;  %v896_v28 = vshrl.u32 %v814_v25, 16  ;;  %v910_v32 = vshrl.u32 %v816_v27, 16  ;;  %v913_v33 = vshll.u32 %v816_v27, 16  ;;  %v6108_v42 = vld [vmem:[%s6479_s15 + $0xc4] sm:$0xf0]  ;;  %v6153_v59 = vld [vmem:[%s7600_s1 + $0x1b8] sm:$0xff] }
  0x21   : > { %585 = vmatpush.bf16.msra.mxu0 %v6080_v35  ;;  %v880_v30 = vsel %vm6524_vm2, %v875_v21, %v879_v22  ;;  %v894_v31 = vsel %vm6524_vm2, %v889_v23, %v893_v24  ;;  %v4913_v35 = vld [vmem:[%s6479_s15 + $0x10] sm:$0xf]  ;;  %v815_v43 = vld [vmem:[%s6479_s15 + $0x24] sm:$0x1]  ;;  %v901_v46 = vrot.slane %v899_v29, 5  ;;  %v5118_v54 = vor.u32 %v6108_v42, %v5117_v41  ;;  %v6126_v8 = vld [vmem:[%s7600_s1 + $0x108] sm:$0xff] }
  0x22   : > { %757 = vmatpush.bf16.msra.mxu1 %v6093_v36  ;;  %v6074_v36 = vld [vmem:[%s6479_s15 + $0x14] sm:$0xf0]  ;;  %v999_v40 = vunpack.c.l.b16 %v894_v31  ;;  %v898_v45 = vrot.slane %v896_v28, 4  ;;  %v817_v49 = vld [vmem:[%s6479_s15 + $0x2c] sm:$0x1]  ;;  %v905_v55 = vshll.u32 %v815_v43, 16 }
  0x23   : > { %1069 = vmatpush.bf16.msra.mxu2 %v6101_v37  ;;  %v4991_v37 = vld [vmem:[%s6479_s15 + $0x68] sm:$0xf]  ;;  %v6127_v61 = vld [vmem:[%s7600_s1 + $0x110] sm:$0xff]  ;;  %v820_v5 = vld [vmem:[%s6479_s15 + $0x38] sm:$0xf] }
  0x24   : > { %1241 = vmatpush.bf16.msra.mxu3 %v6114_v39  ;;  %v998_v39 = vunpack.c.l.b16 %v880_v30  ;;  %v902_v56 = vor.u32 %v901_v46, %v898_v45  ;;  %v907_v60 = vrot.slane %v905_v55, 5  ;;  %v818_v3 = vld [vmem:[%s6479_s15 + $0x30] sm:$0xf]  ;;  %v4917_v16 = vld [vmem:[%s6479_s15 + $0x20] sm:$0xf]  ;;  %v6138_v17 = vld [vmem:[%s7600_s1 + $0x168] sm:$0xff] }
  0x25   : > { %586 = vmatpush.bf16.msra.mxu0 %v6079_v47  ;;  %v912_v47 = vrot.slane %v910_v32, 4  ;;  %v6139_v6 = vld [vmem:[%s7600_s1 + $0x170] sm:$0xff]  ;;  %v924_v9 = vshrl.u32 %v818_v3, 16  ;;  %v927_v10 = vshll.u32 %v818_v3, 16  ;;  %v6075_v18 = vld [vmem:[%s6479_s15 + $0x24] sm:$0xf0] }
  0x26   : > { %758 = vmatpush.bf16.msra.mxu1 %v6092_v48  ;;  %v915_v48 = vrot.slane %v913_v33, 5  ;;  %v1007_v53 = vpack.c.b16 %v999_v40, %v998_v39  ;;  %v903_v0 = vrot.slane %v902_v56, 4  ;;  %v6165_v7 = vld [vmem:[%s7600_s1 + $0x1f0] sm:$0xff]  ;;  %v4995_v19 = vld [vmem:[%s6479_s15 + $0x78] sm:$0xf]  ;;  %v6150_v30 = vld [vmem:[%s7600_s1 + $0x1a0] sm:$0xff] }
  0x27   : > { %1070 = vmatpush.bf16.msra.mxu2 %v6100_v51  ;;  %v4914_v51 = vor.u32 %v6074_v36, %v4913_v35  ;;  %v6088_v21 = vld [vmem:[%s6479_s15 + $0x7c] sm:$0xf0]  ;;  %v5121_v24 = vld [vmem:[%s6479_s15 + $0xd0] sm:$0xf]  ;;  %v926_v25 = vrot.slane %v924_v9, 4  ;;  %v6149_v43 = vld [vmem:[%s7600_s1 + $0x198] sm:$0xff] }
  0x28   : > { %1242 = vmatpush.bf16.msra.mxu3 %v6113_v52  ;;  %v4992_v52 = vor.u32 %v6087_v38, %v4991_v37  ;;  %v908_v11 = vsel %vm6524_vm2, %v903_v0, %v907_v60  ;;  %v6109_v27 = vld [vmem:[%s6479_s15 + $0xd4] sm:$0xf0]  ;;  %v819_v31 = vld [vmem:[%s6479_s15 + $0x34] sm:$0x1]  ;;  %v821_v32 = vld [vmem:[%s6479_s15 + $0x3c] sm:$0x1]  ;;  %v4996_v35 = vor.u32 %v6088_v21, %v4995_v19 }
  0x29   : > { %587 = vmatpush.bf16.msra.mxu0 %v6078_v57  ;;  %v916_v57 = vor.u32 %v915_v48, %v912_v47  ;;  %v1000_v22 = vunpack.c.l.b16 %v908_v11  ;;  %v6137_v33 = vld [vmem:[%s7600_s1 + $0x160] sm:$0xff]  ;;  %v5122_v37 = vor.u32 %v6109_v27, %v5121_v24  ;;  %v933_v39 = vshll.u32 %v819_v31, 16  ;;  %v824_v47 = vld [vmem:[%s6479_s15 + $0x48] sm:$0xf]  ;;  %v6136_v48 = vld [vmem:[%s7600_s1 + $0x158] sm:$0xff] }
  0x2a   : > { %759 = vmatpush.bf16.msra.mxu1 %v6091_v58  ;;  %v919_v58 = vshll.u32 %v817_v49, 16  ;;  %v947_v41 = vshll.u32 %v821_v32, 16  ;;  %v6163_v42 = vld [vmem:[%s7600_s1 + $0x1e0] sm:$0xff]  ;;  %v6135_v55 = vld [vmem:[%s7600_s1 + $0x150] sm:$0xff]  ;;  %v6147_v0 = vld [vmem:[%s7600_s1 + $0x188] sm:$0xff] }
  0x2b   : > { %1071 = vmatpush.bf16.msra.mxu2 %v6099_v62  ;;  %v6140_v62 = vld [vmem:[%s7600_s1 + $0x178] sm:$0xff]  ;;  %v917_v1 = vrot.slane %v916_v57, 4  ;;  %v822_v46 = vld [vmem:[%s6479_s15 + $0x40] sm:$0xf]  ;;  %v935_v49 = vrot.slane %v933_v39, 5  ;;  %v6134_v3 = vld [vmem:[%s7600_s1 + $0x148] sm:$0xff] }
  0x2c   : > { %1243 = vmatpush.bf16.msra.mxu3 %v6112_v63  ;;  %588 = vmatmul.bf16.vlgmr.msra.gmra.mxu0 %v4910_v12  ;;  %v6166_v63 = vld [vmem:[%s7600_s1 + $0x1f8] sm:$0xff]  ;;  %v921_v2 = vrot.slane %v919_v58, 5  ;;  %v952_v56 = vshrl.u32 %v822_v46, 16  ;;  %v955_v57 = vshll.u32 %v822_v46, 16  ;;  %v966_v58 = vshrl.u32 %v824_v47, 16  ;;  %v6133_v19 = vld [vmem:[%s7600_s1 + $0x140] sm:$0xff] }
  0x2d   : > { %1408 = vmatpush.bf16.msrb.mxu0 %v6132_v4  ;;  %760 = vmatmul.bf16.vlgmr.msra.gmra.mxu1 %v4988_v13  ;;  %v6152_v4 = vld [vmem:[%s7600_s1 + $0x1b0] sm:$0xff]  ;;  %v938_v13 = vshrl.u32 %v820_v5, 16  ;;  %v5125_v11 = vld [vmem:[%s6479_s15 + $0xe0] sm:$0xf]  ;;  %v6174_v31 = vld [vmem:[%s7600_s1 + $0x238] sm:$0xff] }
  0x2e   : > { %1072 = vmatmul.bf16.vlgmr.msra.gmra.mxu2 %v1006_v14  ;;  %1717 = vmatpush.bf16.msrb.mxu1 %v6140_v62  ;;  %v922_v12 = vsel %vm6524_vm2, %v917_v1, %v921_v2  ;;  %v941_v14 = vshll.u32 %v820_v5, 16  ;;  %v4921_v60 = vld [vmem:[%s6479_s15 + $0x30] sm:$0xf]  ;;  %v6076_v1 = vld [vmem:[%s6479_s15 + $0x34] sm:$0xf0]  ;;  %v954_v5 = vrot.slane %v952_v56, 4 }
  0x2f   : > { %1244 = vmatmul.bf16.vlgmr.msra.gmra.mxu3 %v5114_v15  ;;  %1890 = vmatpush.bf16.msrb.mxu2 %v6153_v59  ;;  %v6151_v15 = vld [vmem:[%s7600_s1 + $0x1a8] sm:$0xff]  ;;  %v1001_v23 = vunpack.c.l.b16 %v922_v12  ;;  %v940_v28 = vrot.slane %v938_v13, 4  ;;  %v969_v59 = vshll.u32 %v824_v47, 16  ;;  %v823_v12 = vld [vmem:[%s6479_s15 + $0x44] sm:$0x1] }
  0x30   : > { %2062 = vmatpush.bf16.msrb.mxu3 %v6166_v63  ;;  %v943_v29 = vrot.slane %v941_v14, 5  ;;  %v6161_v63 = vld [vmem:[%s7600_s1 + $0x1d0] sm:$0xff]  ;;  %v4999_v2 = vld [vmem:[%s6479_s15 + $0x88] sm:$0xf]  ;;  %v825_v13 = vld [vmem:[%s6479_s15 + $0x4c] sm:$0x1] }
  0x31   : > { %1409 = vmatpush.bf16.msrb.mxu0 %v6131_v20  ;;  %v6164_v20 = vld [vmem:[%s7600_s1 + $0x1e8] sm:$0xff]  ;;  %v1008_v36 = vpack.c.b16 %v1001_v23, %v1000_v22  ;;  %v961_v21 = vshll.u32 %v823_v12, 16  ;;  %v975_v23 = vshll.u32 %v825_v13, 16  ;;  %v5241_v32 = vld [vmem:[%s6479_s15 + $0xb0] sm:$0xf] }
  0x32   : > { %1718 = vmatpush.bf16.msrb.mxu1 %v6139_v6  ;;  %v944_v40 = vor.u32 %v943_v29, %v940_v28  ;;  %v957_v6 = vrot.slane %v955_v57, 5  ;;  %v6110_v14 = vld [vmem:[%s6479_s15 + $0xe4] sm:$0xf0] }
  0x33   : > { %1891 = vmatpush.bf16.msrb.mxu2 %v6152_v4  ;;  %v6089_v4 = vld [vmem:[%s6479_s15 + $0x8c] sm:$0xf0]  ;;  %v963_v28 = vrot.slane %v961_v21, 5  ;;  %v5248_v21 = vld [vmem:[%s6479_s15 + $0xcc] sm:$0x1] }
  0x34   : > { %2063 = vmatpush.bf16.msrb.mxu3 %v6165_v7  ;;  %v968_v7 = vrot.slane %v966_v58, 4 }
  0x35   : > { %1410 = vmatpush.bf16.msrb.mxu0 %v6130_v26  ;;  %v929_v26 = vrot.slane %v927_v10, 5 }
  0x36   : > { %1719 = vmatpush.bf16.msrb.mxu1 %v6138_v17  ;;  %v4922_v17 = vor.u32 %v6076_v1, %v4921_v60  ;;  %v5247_v1 = vld [vmem:[%s6479_s15 + $0xc8] sm:$0xf] }
  0x37   : > { %1892 = vmatpush.bf16.msrb.mxu2 %v6151_v15  ;;  %v930_v38 = vor.u32 %v929_v26, %v926_v25  ;;  %v6160_v15 = vld [vmem:[%s7600_s1 + $0x1c8] sm:$0xff]  ;;  %v5126_v25 = vor.u32 %v6110_v14, %v5125_v11  ;;  %v6159_v26 = vld [vmem:[%s7600_s1 + $0x1c0] sm:$0xff] }
  0x38   : > { %2064 = vmatpush.bf16.msrb.mxu3 %v6164_v20  ;;  %v958_v20 = vor.u32 %v957_v6, %v954_v5  ;;  %v6172_v6 = vld [vmem:[%s7600_s1 + $0x228] sm:$0xff]  ;;  %v6171_v11 = vld [vmem:[%s7600_s1 + $0x220] sm:$0xff] }
  0x39   : > { %1411 = vmatpush.bf16.msrb.mxu0 %v6129_v34  ;;  %v4918_v34 = vor.u32 %v6075_v18, %v4917_v16  ;;  %v931_v45 = vrot.slane %v930_v38, 4  ;;  %v6146_v16 = vld [vmem:[%s7600_s1 + $0x180] sm:$0xff]  ;;  %v5000_v18 = vor.u32 %v6089_v4, %v4999_v2  ;;  %v1496_v38 = vshll.u32 %v5241_v32, 16 }
  0x3a   : > { %1720 = vmatpush.bf16.msrb.mxu1 %v6137_v33  ;;  %v959_v27 = vrot.slane %v958_v20, 4  ;;  %v5243_v33 = vld [vmem:[%s6479_s15 + $0xb8] sm:$0xf]  ;;  %v5246_v20 = vld [vmem:[%s6479_s15 + $0xc4] sm:$0x1] }
  0x3b   : > { %1893 = vmatpush.bf16.msrb.mxu2 %v6150_v30  ;;  %v977_v30 = vrot.slane %v975_v23, 5  ;;  %v1507_v39 = vshrl.u32 %v5243_v33, 16  ;;  %v6120_v23 = vld [vmem:[%s6479_s15 + $0x10c] sm:$0xf0] }
  0x3c   : > { %593 = vmatmul.bf16.gmra.mxu0 %v4914_v51  ;;  %v949_v51 = vrot.slane %v947_v41, 5  ;;  %2065 = vmatpush.bf16.msrb.mxu3 %v6163_v42  ;;  %v4925_v41 = vld [vmem:[%s6479_s15 + $0x40] sm:$0xf]  ;;  %v6077_v42 = vld [vmem:[%s6479_s15 + $0x44] sm:$0xf0] }
  0x3d   : > { %1412 = vmatpush.bf16.msrb.mxu0 %v6128_v50  ;;  %765 = vmatmul.bf16.gmra.mxu1 %v4992_v52  ;;  %v945_v50 = vrot.slane %v944_v40, 4  ;;  %v6162_v52 = vld [vmem:[%s7600_s1 + $0x1d8] sm:$0xff]  ;;  %v1510_v40 = vshll.u32 %v5243_v33, 16  ;;  %v4926_v56 = vor.u32 %v6077_v42, %v4925_v41 }
  0x3e   : > { %1077 = vmatmul.bf16.gmra.mxu2 %v1007_v53  ;;  %v6148_v53 = vld [vmem:[%s7600_s1 + $0x190] sm:$0xff]  ;;  %1721 = vmatpush.bf16.msrb.mxu1 %v6136_v48  ;;  %v5251_v41 = vld [vmem:[%s6479_s15 + $0xd8] sm:$0xf] }
  0x3f   : > { %1249 = vmatmul.bf16.gmra.mxu3 %v5118_v54  ;;  %1894 = vmatpush.bf16.msrb.mxu2 %v6149_v43  ;;  %v6125_v54 = vld [vmem:[%s7600_s1 + $0x100] sm:$0xff]  ;;  %v950_v62 = vsel %vm6524_vm2, %v945_v50, %v949_v51  ;;  %v5003_v43 = vld [vmem:[%s6479_s15 + $0x98] sm:$0xf]  ;;  %v5129_v48 = vld [vmem:[%s6479_s15 + $0xf0] sm:$0xf]  ;;  %v1498_v51 = vrot.slane %v1496_v38, 5 }
  0x40   : > { %2066 = vmatpush.bf16.msrb.mxu3 %v6162_v52  ;;  %v1003_v10 = vunpack.c.l.b16 %v950_v62  ;;  %v1509_v52 = vrot.slane %v1507_v39, 4  ;;  %v6170_v42 = vld [vmem:[%s7600_s1 + $0x218] sm:$0xff] }
  0x41   : > { %1413 = vmatpush.bf16.msrb.mxu0 %v6127_v61  ;;  %v936_v61 = vsel %vm6524_vm2, %v931_v45, %v935_v49  ;;  %v6090_v45 = vld [vmem:[%s6479_s15 + $0x9c] sm:$0xf0]  ;;  %v6111_v49 = vld [vmem:[%s6479_s15 + $0xf4] sm:$0xf0] }
  0x42   : > { %1722 = vmatpush.bf16.msrb.mxu1 %v6135_v55  ;;  %v1002_v9 = vunpack.c.l.b16 %v936_v61  ;;  %v5244_v55 = vld [vmem:[%s6479_s15 + $0xbc] sm:$0x1]  ;;  %v5004_v57 = vor.u32 %v6090_v45, %v5003_v43 }
  0x43   : > { %1895 = vmatpush.bf16.msrb.mxu2 %v6148_v53  ;;  %v1512_v53 = vrot.slane %v1510_v40, 5  ;;  %v5249_v40 = vld [vmem:[%s6479_s15 + $0xd0] sm:$0xf] }
  0x44   : > { %2067 = vmatpush.bf16.msrb.mxu3 %v6161_v63  ;;  %v1009_v24 = vpack.c.b16 %v1003_v10, %v1002_v9  ;;  %v1516_v63 = vshll.u32 %v5244_v55, 16  ;;  %v1535_v9 = vshrl.u32 %v5247_v1, 16  ;;  %v1538_v10 = vshll.u32 %v5247_v1, 16 }
  0x45   : > { %1414 = vmatpush.bf16.msrb.mxu0 %v6126_v8  ;;  %v971_v8 = vrot.slane %v969_v59, 5  ;;  %v5130_v59 = vor.u32 %v6111_v49, %v5129_v48  ;;  %v1513_v62 = vor.u32 %v1512_v53, %v1509_v52  ;;  %v1563_v48 = vshrl.u32 %v5251_v41, 16  ;;  %v6121_v53 = vld [vmem:[%s6479_s15 + $0x11c] sm:$0xf0] }
  0x46   : > { %1723 = vmatpush.bf16.msrb.mxu1 %v6134_v3  ;;  %v1518_v5 = vrot.slane %v1516_v63, 5  ;;  %v1566_v49 = vshll.u32 %v5251_v41, 16  ;;  %v6155_v63 = vld [vmem:[%s6479_s15 + $0x74] sm:$0xf0] }
  0x47   : > { %1896 = vmatpush.bf16.msrb.mxu2 %v6147_v0  ;;  %v972_v22 = vor.u32 %v971_v8, %v968_v7  ;;  %v5245_v0 = vld [vmem:[%s6479_s15 + $0xc0] sm:$0xf]  ;;  %v1514_v4 = vrot.slane %v1513_v62, 4  ;;  %v5419_v62 = vld [vmem:[%s6479_s15 + $0x70] sm:$0xf] }
  0x48   : > { %2068 = vmatpush.bf16.msrb.mxu3 %v6160_v15  ;;  %v1521_v7 = vshrl.u32 %v5245_v0, 16  ;;  %v1524_v8 = vshll.u32 %v5245_v0, 16 }
  0x49   : > { %1415 = vmatpush.bf16.msrb.mxu0 %v6125_v54  ;;  %v973_v29 = vrot.slane %v972_v22, 4  ;;  %v5242_v54 = vld [vmem:[%s6479_s15 + $0xb4] sm:$0x1]  ;;  %v1519_v13 = vsel %vm6524_vm2, %v1514_v4, %v1518_v5  ;;  %v5191_v22 = vld [vmem:[%s6479_s15 + $0x108] sm:$0xf] }
  0x4a   : > { %1724 = vmatpush.bf16.msrb.mxu1 %v6133_v19  ;;  %v1502_v61 = vshll.u32 %v5242_v54, 16  ;;  %v1523_v14 = vrot.slane %v1521_v7, 4  ;;  %v1526_v15 = vrot.slane %v1524_v8, 5  ;;  %v1650_v19 = vunpack.c.l.b16 %v1519_v13  ;;  %v5253_v13 = vld [vmem:[%s6479_s15 + $0xe0] sm:$0xf] }
  0x4b   : > { %1897 = vmatpush.bf16.msrb.mxu2 %v6146_v16  ;;  %v1537_v16 = vrot.slane %v1535_v9, 4  ;;  %v5420_v7 = vor.u32 %v6155_v63, %v5419_v62 }
  0x4c   : > { %598 = vmatmul.bf16.gmra.mxu0 %v4918_v34  ;;  %2069 = vmatpush.bf16.msrb.mxu3 %v6159_v26  ;;  %v6173_v34 = vld [vmem:[%s7600_s1 + $0x230] sm:$0xff]  ;;  %v1504_v3 = vrot.slane %v1502_v61, 5  ;;  %v5415_v26 = vld [vmem:[%s6479_s15 + $0x60] sm:$0xf] }
  0x4d   : > { %770 = vmatmul.bf16.gmra.mxu1 %v4996_v35  ;;  %2371 = vmatpush.bf16.msra.mxu0 %v6174_v31  ;;  %v964_v35 = vsel %vm6524_vm2, %v959_v27, %v963_v28  ;;  %v6154_v27 = vld [vmem:[%s6479_s15 + $0x64] sm:$0xf0]  ;;  %v1527_v28 = vor.u32 %v1526_v15, %v1523_v14  ;;  %v1544_v31 = vshll.u32 %v5248_v21, 16  ;;  %v6142_v61 = vld [vmem:[%s6479_s15 + $0x1c] sm:$0xf0] }
  0x4e   : > { %1082 = vmatmul.bf16.gmra.mxu2 %v1008_v36  ;;  %v978_v36 = vsel %vm6524_vm2, %v973_v29, %v977_v30  ;;  %v1004_v46 = vunpack.c.l.b16 %v964_v35  ;;  %v1530_v29 = vshll.u32 %v5246_v20, 16  ;;  %v5416_v35 = vor.u32 %v6154_v27, %v5415_v26  ;;  %v5255_v14 = vld [vmem:[%s6479_s15 + $0xe8] sm:$0xf]  ;;  %v5423_v27 = vld [vmem:[%s6479_s15 + $0x80] sm:$0xf] }
  0x4f   : > { %1254 = vmatmul.bf16.gmra.mxu3 %v5122_v37  ;;  %v1493_v37 = vshrl.u32 %v5241_v32, 16  ;;  %v1005_v47 = vunpack.c.l.b16 %v978_v36  ;;  %v5192_v32 = vor.u32 %v6120_v23, %v5191_v22  ;;  %v1528_v36 = vrot.slane %v1527_v28, 4  ;;  %v5199_v21 = vld [vmem:[%s6479_s15 + $0x128] sm:$0xf]  ;;  %v6122_v22 = vld [vmem:[%s6479_s15 + $0x12c] sm:$0xf0] }
  0x50   : > { %v1546_v39 = vrot.slane %v1544_v31, 5  ;;  %v1594_v20 = vshll.u32 %v5255_v14, 16  ;;  %v5345_v23 = vld [vmem:[%s6479_s15 + $0x28] sm:$0xf] }
  0x51   : > { %2372 = vmatpush.bf16.msra.mxu0 %v6173_v34  ;;  %v1495_v50 = vrot.slane %v1493_v37, 4  ;;  %v1010_v58 = vpack.c.b16 %v1005_v47, %v1004_v46  ;;  %v1532_v37 = vrot.slane %v1530_v29, 5  ;;  %v1549_v46 = vshrl.u32 %v5249_v40, 16  ;;  %v6156_v28 = vld [vmem:[%s6479_s15 + $0x84] sm:$0xf0] }
  0x52   : > { %v1552_v47 = vshll.u32 %v5249_v40, 16 }
  0x53   : > { %v1499_v60 = vor.u32 %v1498_v51, %v1495_v50  ;;  %v1533_v43 = vsel %vm6524_vm2, %v1528_v36, %v1532_v37  ;;  %v5195_v50 = vld [vmem:[%s6479_s15 + $0x118] sm:$0xf]  ;;  %v1551_v54 = vrot.slane %v1549_v46, 4 }
  0x54   : > { %v1651_v51 = vunpack.c.l.b16 %v1533_v43  ;;  %v1554_v55 = vrot.slane %v1552_v47, 5  ;;  %v5196_v0 = vor.u32 %v6121_v53, %v5195_v50  ;;  %v6168_v43 = vld [vmem:[%s7600_s1 + $0x208] sm:$0xff]  ;;  %v5259_v46 = vld [vmem:[%s6479_s15 + $0xf8] sm:$0xf] }
  0x55   : > { %v1500_v2 = vrot.slane %v1499_v60, 4  ;;  %2373 = vmatpush.bf16.msra.mxu0 %v6172_v6  ;;  %v5252_v60 = vld [vmem:[%s6479_s15 + $0xdc] sm:$0x1]  ;;  %v1619_v53 = vshrl.u32 %v5259_v46, 16 }
  0x56   : > { %v1572_v5 = vshll.u32 %v5252_v60, 16 }
  0x57   : > { %v1505_v12 = vsel %vm6524_vm2, %v1500_v2, %v1504_v3  ;;  %v1555_v2 = vor.u32 %v1554_v55, %v1551_v54  ;;  %v1622_v54 = vshll.u32 %v5259_v46, 16  ;;  %v5353_v46 = vld [vmem:[%s6479_s15 + $0x48] sm:$0xf] }
  0x59   : > { %2374 = vmatpush.bf16.msra.mxu0 %v6171_v11  ;;  %v1556_v8 = vrot.slane %v1555_v2, 4  ;;  %v1574_v11 = vrot.slane %v1572_v5, 5  ;;  %v1624_v60 = vrot.slane %v1622_v54, 5  ;;  %v5203_v2 = vld [vmem:[%s6479_s15 + $0x138] sm:$0xf] }
  0x5a   : > { %v6144_v5 = vld [vmem:[%s6479_s15 + $0x3c] sm:$0xf0] }
  0x5c   : > { %603 = vmatmul.bf16.gmra.mxu0 %v4922_v17  ;;  %v1540_v17 = vrot.slane %v1538_v10, 5 }
  0x5d   : > { %775 = vmatmul.bf16.gmra.mxu1 %v5000_v18  ;;  %v1649_v18 = vunpack.c.l.b16 %v1505_v12  ;;  %2375 = vmatpush.bf16.msra.mxu0 %v6170_v42  ;;  %v6169_v12 = vld [vmem:[%s7600_s1 + $0x210] sm:$0xff] }
  0x5e   : > { %1087 = vmatmul.bf16.gmra.mxu2 %v1009_v24  ;;  %v5337_v24 = vld [vmem:[%s6479_s15 + $0x8] sm:$0xf]  ;;  %v1541_v30 = vor.u32 %v1540_v17, %v1537_v16  ;;  %v1577_v17 = vshrl.u32 %v5253_v13, 16 }
  0x5f   : > { %1259 = vmatmul.bf16.gmra.mxu3 %v5126_v25  ;;  %v6141_v25 = vld [vmem:[%s6479_s15 + $0xc] sm:$0xf0]  ;;  %v1659_v33 = vpack.c.b16 %v1650_v19, %v1649_v18  ;;  %v1580_v18 = vshll.u32 %v5253_v13, 16  ;;  %v1591_v19 = vshrl.u32 %v5255_v14, 16 }
  0x60   : > { %v5338_v34 = vor.u32 %v6141_v25, %v5337_v24  ;;  %v1542_v38 = vrot.slane %v1541_v30, 4  ;;  %v6143_v24 = vld [vmem:[%s6479_s15 + $0x2c] sm:$0xf0]  ;;  %v1579_v29 = vrot.slane %v1577_v17, 4 }
  0x61   : > { %2376 = vmatpush.bf16.msra.mxu0 %v6169_v12  ;;  %v1582_v30 = vrot.slane %v1580_v18, 5  ;;  %v1593_v31 = vrot.slane %v1591_v19, 4  ;;  %v5346_v36 = vor.u32 %v6143_v24, %v5345_v23  ;;  %v5465_v23 = vld [vmem:[%s6479_s15 + $0x8] sm:$0xf]  ;;  %v5467_v24 = vld [vmem:[%s6479_s15 + $0x10] sm:$0xf] }
  0x62   : > { %v1547_v45 = vsel %vm6524_vm2, %v1542_v38, %v1546_v39  ;;  %v5424_v38 = vor.u32 %v6156_v28, %v5423_v27 }
  0x63   : > { %v1652_v52 = vunpack.c.l.b16 %v1547_v45  ;;  %v1583_v39 = vor.u32 %v1582_v30, %v1579_v29  ;;  %v5257_v45 = vld [vmem:[%s6479_s15 + $0xf0] sm:$0xf]  ;;  %v2147_v29 = vshrl.u32 %v5465_v23, 16  ;;  %v2150_v30 = vshll.u32 %v5465_v23, 16 }
  0x65   : > { %v1660_v1 = vpack.c.b16 %v1652_v52, %v1651_v51  ;;  %2377 = vmatpush.bf16.msra.mxu0 %v6168_v43  ;;  %v1584_v47 = vrot.slane %v1583_v39, 4  ;;  %v1605_v51 = vshrl.u32 %v5257_v45, 16  ;;  %v1608_v52 = vshll.u32 %v5257_v45, 16 }
  0x6c   : > { %608 = vmatmul.bf16.gmra.mxu0 %v4926_v56  ;;  %v1565_v56 = vrot.slane %v1563_v48, 4 }
  0x6d   : > { %780 = vmatmul.bf16.gmra.mxu1 %v5004_v57  ;;  %v1568_v57 = vrot.slane %v1566_v49, 5 }
  0x6e   : > { %1092 = vmatmul.bf16.gmra.mxu2 %v1010_v58  ;;  %v5341_v58 = vld [vmem:[%s6479_s15 + $0x18] sm:$0xf] }
  0x6f   : > { %1264 = vmatmul.bf16.gmra.mxu3 %v5130_v59  ;;  %v5250_v59 = vld [vmem:[%s6479_s15 + $0xd4] sm:$0x1]  ;;  %v1569_v4 = vor.u32 %v1568_v57, %v1565_v56  ;;  %v5342_v6 = vor.u32 %v6142_v61, %v5341_v58  ;;  %v1607_v57 = vrot.slane %v1605_v51, 4  ;;  %v1610_v58 = vrot.slane %v1608_v52, 5  ;;  %v6167_v61 = vld [vmem:[%s7600_s1 + $0x200] sm:$0xff] }
  0x70   : > { %v1558_v3 = vshll.u32 %v5250_v59, 16  ;;  %v1621_v59 = vrot.slane %v1619_v53, 4  ;;  %2378 = vmatpush.bf16.msra.mxu0 %v6167_v61  ;;  %v6158_v51 = vld [vmem:[%s6479_s15 + $0xa4] sm:$0xf0] }
  0x71   : > { %v1570_v10 = vrot.slane %v1569_v4, 4  ;;  %v5349_v4 = vld [vmem:[%s6479_s15 + $0x38] sm:$0xf] }
  0x72   : > { %v1560_v9 = vrot.slane %v1558_v3, 5  ;;  %v6123_v3 = vld [vmem:[%s6479_s15 + $0x13c] sm:$0xf0] }
  0x73   : > { %v1575_v16 = vsel %vm6524_vm2, %v1570_v10, %v1574_v11  ;;  %v1625_v10 = vor.u32 %v1624_v60, %v1621_v59  ;;  %v5204_v12 = vor.u32 %v6123_v3, %v5203_v2 }
  0x74   : > { %v1561_v15 = vsel %vm6524_vm2, %v1556_v8, %v1560_v9  ;;  %v1654_v26 = vunpack.c.l.b16 %v1575_v16  ;;  %v1611_v8 = vor.u32 %v1610_v58, %v1607_v57  ;;  %v5350_v16 = vor.u32 %v6144_v5, %v5349_v4  ;;  %v5469_v5 = vld [vmem:[%s6479_s15 + $0x18] sm:$0xf] }
  0x75   : > { %v1653_v25 = vunpack.c.l.b16 %v1561_v15 }
  0x76   : > { %v1612_v19 = vrot.slane %v1611_v8, 4 }
  0x77   : > { %v1661_v37 = vpack.c.b16 %v1654_v26, %v1653_v25 }
  0x7c   : > { %1416 = vmatmul.bf16.vlgmr.msrb.gmra.mxu0 %v5192_v32  ;;  %v1596_v32 = vrot.slane %v1594_v20, 5 }
  0x7d   : > { %1725 = vmatmul.bf16.vlgmr.msrb.gmra.mxu1 %v1659_v33  ;;  %v5254_v33 = vld [vmem:[%s6479_s15 + $0xe4] sm:$0x1] }
  0x7e   : > { %1898 = vmatmul.bf16.vlgmr.msrb.gmra.mxu2 %v5338_v34  ;;  %v5256_v34 = vld [vmem:[%s6479_s15 + $0xec] sm:$0x1]  ;;  %v1586_v40 = vshll.u32 %v5254_v33, 16  ;;  %v1597_v41 = vor.u32 %v1596_v32, %v1593_v31  ;;  %v2161_v31 = vshrl.u32 %v5467_v24, 16  ;;  %v2164_v32 = vshll.u32 %v5467_v24, 16 }
  0x7f   : > { %2070 = vmatmul.bf16.vlgmr.msrb.gmra.mxu3 %v5416_v35  ;;  %v5200_v35 = vor.u32 %v6122_v22, %v5199_v21  ;;  %v1600_v42 = vshll.u32 %v5256_v34, 16  ;;  %v1626_v21 = vrot.slane %v1625_v10, 4 }
  0x80   : > { %v1588_v48 = vrot.slane %v1586_v40, 5  ;;  %v1598_v49 = vrot.slane %v1597_v41, 4  ;;  %v6124_v40 = vld [vmem:[%s6479_s15 + $0x14c] sm:$0xf0]  ;;  %v2149_v41 = vrot.slane %v2147_v29, 4  ;;  %v2163_v43 = vrot.slane %v2161_v31, 4 }
  0x81   : > { %v1602_v50 = vrot.slane %v1600_v42, 5  ;;  %v2152_v42 = vrot.slane %v2150_v30, 5  ;;  %v2166_v45 = vrot.slane %v2164_v32, 5 }
  0x82   : > { %v1589_v55 = vsel %vm6524_vm2, %v1584_v47, %v1588_v48  ;;  %v5466_v47 = vld [vmem:[%s6479_s15 + $0xc] sm:$0x1]  ;;  %v5468_v48 = vld [vmem:[%s6479_s15 + $0x14] sm:$0x1] }
  0x83   : > { %v1603_v56 = vsel %vm6524_vm2, %v1598_v49, %v1602_v50  ;;  %v1655_v62 = vunpack.c.l.b16 %v1589_v55  ;;  %v6145_v49 = vld [vmem:[%s6479_s15 + $0x4c] sm:$0xf0]  ;;  %v5431_v50 = vld [vmem:[%s6479_s15 + $0xa0] sm:$0xf]  ;;  %v2156_v57 = vshll.u32 %v5466_v47, 16  ;;  %v2167_v58 = vor.u32 %v2166_v45, %v2163_v43 }
  0x84   : > { %v1656_v63 = vunpack.c.l.b16 %v1603_v56  ;;  %v2153_v56 = vor.u32 %v2152_v42, %v2149_v41  ;;  %v2170_v59 = vshll.u32 %v5468_v48, 16  ;;  %v5475_v41 = vld [vmem:[%s6479_s15 + $0x30] sm:$0xf] }
  0x85   : > { %v2158_v2 = vrot.slane %v2156_v57, 5  ;;  %v2168_v3 = vrot.slane %v2167_v58, 4 }
  0x86   : > { %v1662_v13 = vpack.c.b16 %v1656_v63, %v1655_v62  ;;  %v5354_v62 = vor.u32 %v6145_v49, %v5353_v46  ;;  %v5432_v63 = vor.u32 %v6158_v51, %v5431_v50  ;;  %v2172_v4 = vrot.slane %v2170_v59, 5 }
  0x87   : > { %v2217_v49 = vshrl.u32 %v5475_v41, 16  ;;  %v2220_v50 = vshll.u32 %v5475_v41, 16 }
  0x88   : > { %v2173_v10 = vsel %vm6524_vm2, %v2168_v3, %v2172_v4  ;;  %v5474_v3 = vld [vmem:[%s6479_s15 + $0x2c] sm:$0x1]  ;;  %v5476_v4 = vld [vmem:[%s6479_s15 + $0x34] sm:$0x1] }
  0x8c   : > { %1421 = vmatmul.bf16.gmra.mxu0 %v5196_v0  ;;  %v5258_v0 = vld [vmem:[%s6479_s15 + $0xf4] sm:$0x1] }
  0x8d   : > { %1730 = vmatmul.bf16.gmra.mxu1 %v1660_v1  ;;  %v5260_v1 = vld [vmem:[%s6479_s15 + $0xfc] sm:$0x1]  ;;  %v1614_v9 = vshll.u32 %v5258_v0, 16 }
  0x8e   : > { %1903 = vmatmul.bf16.gmra.mxu2 %v5342_v6  ;;  %v5427_v6 = vld [vmem:[%s6479_s15 + $0x90] sm:$0xf]  ;;  %v1628_v11 = vshll.u32 %v5260_v1, 16  ;;  %v2154_v1 = vrot.slane %v2153_v56, 4 }
  0x8f   : > { %2075 = vmatmul.bf16.gmra.mxu3 %v5420_v7  ;;  %v6157_v7 = vld [vmem:[%s6479_s15 + $0x94] sm:$0xf0]  ;;  %v1616_v20 = vrot.slane %v1614_v9, 5 }
  0x90   : > { %v5428_v17 = vor.u32 %v6157_v7, %v5427_v6  ;;  %v1630_v22 = vrot.slane %v1628_v11, 5  ;;  %v5471_v6 = vld [vmem:[%s6479_s15 + $0x20] sm:$0xf]  ;;  %v2159_v9 = vsel %vm6524_vm2, %v2154_v1, %v2158_v2  ;;  %v2175_v11 = vshrl.u32 %v5469_v5, 16 }
  0x91   : > { %v1617_v25 = vsel %vm6524_vm2, %v1612_v19, %v1616_v20  ;;  %v2303_v19 = vunpack.c.l.b16 %v2159_v9  ;;  %v2304_v20 = vunpack.c.l.b16 %v2173_v10 }
  0x92   : > { %v1631_v26 = vsel %vm6524_vm2, %v1626_v21, %v1630_v22  ;;  %v2177_v21 = vrot.slane %v2175_v11, 4 }
  0x93   : > { %v1658_v39 = vunpack.c.l.b16 %v1631_v26  ;;  %v5472_v26 = vld [vmem:[%s6479_s15 + $0x24] sm:$0x1]  ;;  %v2313_v29 = vpack.c.b16 %v2304_v20, %v2303_v19 }
  0x9c   : > { %1426 = vmatmul.bf16.gmra.mxu0 %v5200_v35 }
  0x9d   : > { %1735 = vmatmul.bf16.gmra.mxu1 %v1661_v37  ;;  %v5207_v37 = vld [vmem:[%s6479_s15 + $0x148] sm:$0xf] }
  0x9e   : > { %1908 = vmatmul.bf16.gmra.mxu2 %v5346_v36  ;;  %v5208_v52 = vor.u32 %v6124_v40, %v5207_v37  ;;  %v5473_v40 = vld [vmem:[%s6479_s15 + $0x28] sm:$0xf] }
  0x9f   : > { %2080 = vmatmul.bf16.gmra.mxu3 %v5424_v38  ;;  %v1657_v38 = vunpack.c.l.b16 %v1617_v25  ;;  %v5470_v25 = vld [vmem:[%s6479_s15 + $0x1c] sm:$0x1]  ;;  %v2203_v47 = vshrl.u32 %v5473_v40, 16  ;;  %v2206_v48 = vshll.u32 %v5473_v40, 16 }
  0xa1   : > { %v1663_v53 = vpack.c.b16 %v1658_v39, %v1657_v38  ;;  %v2198_v38 = vshll.u32 %v5472_v26, 16 }
  0xa3   : > { %v2200_v46 = vrot.slane %v2198_v38, 5 }
  0xa9   : > { %v589_v14 = vpop.f32.mrf.mxu0 }
  0xaa   : > { %v761_v15 = vpop.f32.mrf.mxu1 }
  0xab   : > { %v786_v18 = vadd.f32 %v761_v15, %v589_v14  ;;  %v2178_v15 = vshll.u32 %v5469_v5, 16 }
  0xac   : > { %1431 = vmatmul.bf16.gmra.mxu0 %v5204_v12 }
  0xad   : > { %1740 = vmatmul.bf16.gmra.mxu1 %v1662_v13  ;;  %v2180_v22 = vrot.slane %v2178_v15, 5 }
  0xae   : > { %1913 = vmatmul.bf16.gmra.mxu2 %v5350_v16  ;;  %v2189_v16 = vshrl.u32 %v5471_v6, 16 }
  0xaf   : > { %2085 = vmatmul.bf16.gmra.mxu3 %v5428_v17  ;;  %v2192_v17 = vshll.u32 %v5471_v6, 16  ;;  %v2181_v32 = vor.u32 %v2180_v22, %v2177_v21  ;;  %v2212_v6 = vshll.u32 %v5474_v3, 16  ;;  %v5477_v22 = vld [vmem:[%s6479_s15 + $0x38] sm:$0xf] }
  0xb0   : > { %v2191_v23 = vrot.slane %v2189_v16, 4 }
  0xb1   : > { %v1073_v27 = vpop.f32.mrf.mxu2  ;;  %v6803_v34 = vpop.f32.mrf.mxu0  ;;  %v2194_v24 = vrot.slane %v2192_v17, 5  ;;  %v2182_v42 = vrot.slane %v2181_v32, 4  ;;  %v2214_v19 = vrot.slane %v2212_v6, 5  ;;  %v5483_v6 = vld [vmem:[%s6479_s15 + $0x50] sm:$0xf] }
  0xb2   : > { %v1245_v28 = vpop.f32.mrf.mxu3  ;;  %v1098_v33 = vadd.f32 %v1073_v27, %v786_v18  ;;  %v6805_v35 = vpop.f32.mrf.mxu1 }
  0xb3   : > { %v2195_v37 = vor.u32 %v2194_v24, %v2191_v23  ;;  %v5479_v23 = vld [vmem:[%s6479_s15 + $0x40] sm:$0xf] }
  0xb4   : > { %v6807_v36 = vadd.f32 %v1245_v28, %v1098_v33  ;;  %v2184_v33 = vshll.u32 %v5470_v25, 16  ;;  %v2245_v32 = vshrl.u32 %v5479_v23, 16 }
  0xb5   : > { %v2196_v45 = vrot.slane %v2195_v37, 4 }
  0xb6   : > { %v2186_v43 = vrot.slane %v2184_v33, 5  ;;  %v2248_v33 = vshll.u32 %v5479_v23, 16 }
  0xb7   : > { %v2201_v59 = vsel %vm6524_vm2, %v2196_v45, %v2200_v46  ;;  %v2247_v46 = vrot.slane %v2245_v32, 4  ;;  %v5484_v32 = vld [vmem:[%s6479_s15 + $0x54] sm:$0x1] }
  0xb8   : > { %v2187_v58 = vsel %vm6524_vm2, %v2182_v42, %v2186_v43  ;;  %v2306_v2 = vunpack.c.l.b16 %v2201_v59 }
  0xb9   : > { %v6817_v54 = vpop.f32.mrf.mxu2  ;;  %v594_v60 = vpop.f32.mrf.mxu0  ;;  %v2305_v1 = vunpack.c.l.b16 %v2187_v58 }
  0xba   : > { %v6819_v55 = vpop.f32.mrf.mxu3  ;;  %v766_v61 = vpop.f32.mrf.mxu1 }
  0xbb   : > { %v788_v0 = vadd.f32 %v766_v61, %v594_v60  ;;  %v2205_v60 = vrot.slane %v2203_v47, 4  ;;  %v2314_v11 = vpack.c.b16 %v2306_v2, %v2305_v1  ;;  %v2250_v47 = vrot.slane %v2248_v33, 5 }
  0xbc   : > { %1436 = vmatmul.bf16.gmra.mxu0 %v5208_v52 }
  0xbd   : > { %1745 = vmatmul.bf16.gmra.mxu1 %v1663_v53  ;;  %v2251_v59 = vor.u32 %v2250_v47, %v2247_v46 }
  0xbe   : > { %1918 = vmatmul.bf16.gmra.mxu2 %v5354_v62  ;;  %v2208_v62 = vrot.slane %v2206_v48, 5  ;;  %v5478_v48 = vld [vmem:[%s6479_s15 + $0x3c] sm:$0x1] }
  0xbf   : > { %2090 = vmatmul.bf16.gmra.mxu3 %v5432_v63  ;;  %v2219_v63 = vrot.slane %v2217_v49, 4  ;;  %v5480_v49 = vld [vmem:[%s6479_s15 + $0x44] sm:$0x1]  ;;  %v2240_v58 = vshll.u32 %v5478_v48, 16  ;;  %v2252_v3 = vrot.slane %v2251_v59, 4 }
  0xc0   : > { %v2209_v5 = vor.u32 %v2208_v62, %v2205_v60  ;;  %v2254_v60 = vshll.u32 %v5480_v49, 16 }
  0xc1   : > { %v1078_v7 = vpop.f32.mrf.mxu2  ;;  %v6827_v13 = vpop.f32.mrf.mxu0  ;;  %v2242_v2 = vrot.slane %v2240_v58, 5 }
  0xc2   : > { %v1250_v8 = vpop.f32.mrf.mxu3  ;;  %v1100_v12 = vadd.f32 %v1078_v7, %v788_v0  ;;  %v6829_v14 = vpop.f32.mrf.mxu1  ;;  %v2222_v0 = vrot.slane %v2220_v50, 5  ;;  %v2210_v17 = vrot.slane %v2209_v5, 4  ;;  %v5481_v5 = vld [vmem:[%s6479_s15 + $0x48] sm:$0xf] }
  0xc4   : > { %v6831_v18 = vadd.f32 %v1250_v8, %v1100_v12  ;;  %v2223_v7 = vor.u32 %v2222_v0, %v2219_v63  ;;  %v2226_v8 = vshll.u32 %v5476_v4, 16  ;;  %v2215_v24 = vsel %vm6524_vm2, %v2210_v17, %v2214_v19 }
  0xc5   : > { %v2307_v41 = vunpack.c.l.b16 %v2215_v24  ;;  %v2256_v4 = vrot.slane %v2254_v60, 5  ;;  %v2262_v19 = vshll.u32 %v5481_v5, 16 }
  0xc6   : > { %v2224_v20 = vrot.slane %v2223_v7, 4  ;;  %v2228_v21 = vrot.slane %v2226_v8, 5 }
  0xc8   : > { %v2229_v25 = vsel %vm6524_vm2, %v2224_v20, %v2228_v21  ;;  %v2273_v20 = vshrl.u32 %v5483_v6, 16  ;;  %v2276_v21 = vshll.u32 %v5483_v6, 16  ;;  %v6201_v6 = vld [vmem:[%s7603_s4 + $0xb0] sm:$0xff] }
  0xc9   : > { %v6835_v27 = vpop.f32.mrf.mxu2  ;;  %v599_v30 = vpop.f32.mrf.mxu0  ;;  %v2308_v42 = vunpack.c.l.b16 %v2229_v25 }
  0xca   : > { %v6837_v28 = vpop.f32.mrf.mxu3  ;;  %v771_v31 = vpop.f32.mrf.mxu1 }
  0xcb   : > { %v790_v39 = vadd.f32 %v771_v31, %v599_v30  ;;  %v2231_v30 = vshrl.u32 %v5477_v22, 16  ;;  %v2234_v31 = vshll.u32 %v5477_v22, 16  ;;  %v2315_v50 = vpack.c.b16 %v2308_v42, %v2307_v41 }
  0xcc   : > { %2379 = vmatmul.bf16.vlgmr.msra.gmra.mxu0 %v2313_v29 }
  0xcd   : > { %v2233_v43 = vrot.slane %v2231_v30, 4  ;;  %v2236_v45 = vrot.slane %v2234_v31, 5  ;;  %v2278_v30 = vrot.slane %v2276_v21, 5  ;;  %v5482_v31 = vld [vmem:[%s6479_s15 + $0x4c] sm:$0x1] }
  0xce   : > { %v2268_v42 = vshll.u32 %v5482_v31, 16  ;;  %v6186_v31 = vld [vmem:[%s7603_s4 + $0x38] sm:$0xff] }
  0xcf   : > { %6294 = vmatpush.bf16.msra.mxu1 %v6186_v31  ;;  %2831 = vmatpush.bf16.msrb.mxu0 %v6186_v31 }
  0xd0   : > { %v2270_v48 = vrot.slane %v2268_v42, 5 }
  0xd1   : > { %v1083_v51 = vpop.f32.mrf.mxu2  ;;  %v6841_v56 = vpop.f32.mrf.mxu0 }
  0xd2   : > { %v1255_v52 = vpop.f32.mrf.mxu3  ;;  %v1102_v53 = vadd.f32 %v1083_v51, %v790_v39  ;;  %v6843_v57 = vpop.f32.mrf.mxu1 }
  0xd4   : > { %v6849_v61 = vadd.f32 %v1255_v52, %v1102_v53  ;;  %v2237_v53 = vor.u32 %v2236_v45, %v2233_v43  ;;  %v2282_v45 = vshll.u32 %v5484_v32, 16 }
  0xd6   : > { %v2238_v1 = vrot.slane %v2237_v53, 4 }
  0xd9   : > { %v6853_v9 = vpop.f32.mrf.mxu2  ;;  %v604_v12 = vpop.f32.mrf.mxu0 }
  0xda   : > { %v6855_v10 = vpop.f32.mrf.mxu3  ;;  %v776_v15 = vpop.f32.mrf.mxu1 }
  0xdb   : > { %v792_v16 = vadd.f32 %v776_v15, %v604_v12  ;;  %v2257_v12 = vsel %vm6524_vm2, %v2252_v3, %v2256_v4  ;;  %v2259_v15 = vshrl.u32 %v5481_v5, 16  ;;  %v6202_v3 = vld [vmem:[%s7603_s4 + $0xb8] sm:$0xff] }
  0xdc   : > { %2384 = vmatmul.bf16.gmra.mxu0 %v2314_v11  ;;  %v2243_v11 = vsel %vm6524_vm2, %v2238_v1, %v2242_v2  ;;  %v2310_v24 = vunpack.c.l.b16 %v2257_v12  ;;  %v6194_v2 = vld [vmem:[%s7603_s4 + $0x78] sm:$0xff]  ;;  %3294 = vmatpush.bf16.msra.mxu3 %v6202_v3 }
  0xdd   : > { %v2309_v23 = vunpack.c.l.b16 %v2243_v11  ;;  %v2261_v25 = vrot.slane %v2259_v15, 4  ;;  %3093 = vmatpush.bf16.msra.mxu2 %v6194_v2 }
  0xdf   : > { %v2316_v33 = vpack.c.b16 %v2310_v24, %v2309_v23 }
  0xe0   : > { %3295 = vmatpush.bf16.msra.mxu3 %v6201_v6  ;;  %v6181_v6 = vld [vmem:[%s7603_s4 + $0x10] sm:$0xff] }
  0xe1   : > { %v1088_v26 = vpop.f32.mrf.mxu2  ;;  %v6863_v38 = vpop.f32.mrf.mxu0 }
  0xe2   : > { %v1260_v29 = vpop.f32.mrf.mxu3  ;;  %v1104_v37 = vadd.f32 %v1088_v26, %v792_v16  ;;  %v6865_v39 = vpop.f32.mrf.mxu1  ;;  %v2264_v26 = vrot.slane %v2262_v19, 5  ;;  %v6200_v19 = vld [vmem:[%s7603_s4 + $0xa8] sm:$0xff] }
  0xe4   : > { %v6867_v40 = vadd.f32 %v1260_v29, %v1104_v37  ;;  %v2275_v29 = vrot.slane %v2273_v20, 4  ;;  %v2265_v41 = vor.u32 %v2264_v26, %v2261_v25  ;;  %3296 = vmatpush.bf16.msra.mxu3 %v6200_v19 }
  0xe6   : > { %v2279_v43 = vor.u32 %v2278_v30, %v2275_v29  ;;  %v2266_v47 = vrot.slane %v2265_v41, 4 }
  0xe8   : > { %v2280_v49 = vrot.slane %v2279_v43, 4  ;;  %v2271_v58 = vsel %vm6524_vm2, %v2266_v47, %v2270_v48 }
  0xe9   : > { %v6871_v51 = vpop.f32.mrf.mxu2  ;;  %v609_v62 = vpop.f32.mrf.mxu0  ;;  %v2311_v60 = vunpack.c.l.b16 %v2271_v58 }
  0xea   : > { %v6873_v52 = vpop.f32.mrf.mxu3  ;;  %v781_v63 = vpop.f32.mrf.mxu1 }
  0xeb   : > { %v794_v0 = vadd.f32 %v781_v63, %v609_v62 }
  0xec   : > { %2389 = vmatmul.bf16.gmra.mxu0 %v2315_v50  ;;  %v2284_v50 = vrot.slane %v2282_v45, 5  ;;  %v6184_v45 = vld [vmem:[%s7603_s4 + $0x28] sm:$0xff] }
  0xee   : > { %v2285_v59 = vsel %vm6524_vm2, %v2280_v49, %v2284_v50 }
  0xef   : > { %v2312_v62 = vunpack.c.l.b16 %v2285_v59 }
  0xf1   : > { %v1093_v7 = vpop.f32.mrf.mxu2  ;;  %v6881_v17 = vpop.f32.mrf.mxu0  ;;  %v2317_v63 = vpack.c.b16 %v2312_v62, %v2311_v60  ;;  %v6966_v62 = vld [vmem:[%s7602_s3] ss:$0 sm:$0xff] }
  0xf2   : > { %v1265_v8 = vpop.f32.mrf.mxu3  ;;  %v1106_v16 = vadd.f32 %v1093_v7, %v794_v0  ;;  %v6910_v7 = vpop.f32.mrf.mxu1 }
  0xf4   : > { %v1278_v22 = vadd.f32 %v1265_v8, %v1106_v16 }
  0xf9   : > { %v1417_v37 = vpop.f32.mrf.mxu0  ;;  %v6914_v11 = vpop.f32.mrf.mxu2 }
  0xfa   : > { %v1442_v46 = vadd.f32 %v1417_v37, %v6807_v36  ;;  %v6919_v12 = vpop.f32.mrf.mxu3  ;;  %v1726_v15 = vpop.f32.mrf.mxu1  ;;  %v6185_v37 = vld [vmem:[%s7603_s4 + $0x30] sm:$0xff] }
  0xfb   : > { %2832 = vmatpush.bf16.msrb.mxu0 %v6185_v37  ;;  %6295 = vmatpush.bf16.msra.mxu1 %v6185_v37 }
  0xfc   : > { %2394 = vmatmul.bf16.gmra.mxu0 %v2316_v33  ;;  %v1751_v43 = vadd.f32 %v1726_v15, %v1442_v46  ;;  %v6191_v46 = vld [vmem:[%s7603_s4 + $0x60] sm:$0xff]  ;;  %v6198_v15 = vld [vmem:[%s7603_s4 + $0x98] sm:$0xff] }
  0xff   : > { %2833 = vmatpush.bf16.msrb.mxu0 %v6184_v45  ;;  %6296 = vmatpush.bf16.msra.mxu1 %v6184_v45  ;;  %v2586_v45 = vld [vmem:[#allocation2] sm:$0xf] }
 0x101   : > { %v1419_v53 = vpop.f32.mrf.mxu0  ;;  %v1899_v21 = vpop.f32.mrf.mxu2 }
 0x102   : > { %v2071_v24 = vpop.f32.mrf.mxu3  ;;  %v1728_v25 = vpop.f32.mrf.mxu1  ;;  %v1924_v48 = vadd.f32 %v1899_v21, %v1751_v43 }
 0x104   : > { %v2096_v50 = vadd.f32 %v2071_v24, %v1924_v48  ;;  %v6270_v48 = vld [vmem:[%s7607_s8 + $0x38] sm:$0xff] }
 0x109   : > { %v1422_v0 = vpop.f32.mrf.mxu0  ;;  %v1901_v26 = vpop.f32.mrf.mxu2 }
 0x10a   : > { %v6891_v1 = vadd.f32 %v1422_v0, %v6831_v18  ;;  %v6193_v18 = vld [vmem:[%s7603_s4 + $0x70] sm:$0xff]  ;;  %v2073_v32 = vpop.f32.mrf.mxu3  ;;  %v1731_v33 = vpop.f32.mrf.mxu1  ;;  %v6199_v0 = vld [vmem:[%s7603_s4 + $0xa0] sm:$0xff] }
 0x10b   : > { %3094 = vmatpush.bf16.msra.mxu2 %v6193_v18  ;;  %3297 = vmatpush.bf16.msra.mxu3 %v6199_v0  ;;  %v6189_v0 = vld [vmem:[%s7603_s4 + $0x50] sm:$0xff] }
 0x10c   : > { %2399 = vmatmul.bf16.gmra.mxu0 %v2317_v63  ;;  %v6182_v63 = vld [vmem:[%s7603_s4 + $0x18] sm:$0xff] }
 0x10f   : > { %3298 = vmatpush.bf16.msra.mxu3 %v6198_v15 }
 0x111   : > { %v6893_v36 = vpop.f32.mrf.mxu0  ;;  %v1904_v42 = vpop.f32.mrf.mxu2 }
 0x112   : > { %v6951_v49 = vpop.f32.mrf.mxu1 }
 0x119   : > { %v1427_v4 = vpop.f32.mrf.mxu0  ;;  %v6961_v59 = vpop.f32.mrf.mxu2 }
 0x11a   : > { %v6902_v5 = vadd.f32 %v1427_v4, %v6849_v61  ;;  %v6192_v61 = vld [vmem:[%s7603_s4 + $0x68] sm:$0xff]  ;;  %v789_v4 = vadd.f32 %v6829_v14, %v6827_v13  ;;  %v1753_v13 = vadd.f32 %v1731_v33, %v6891_v1  ;;  %v6988_v14 = vpop.f32.mrf.mxu1 }
 0x11b   : > { %3095 = vmatpush.bf16.msra.mxu2 %v6192_v61 }
 0x11c   : > { %v1101_v61 = vadd.f32 %v6835_v27, %v789_v4  ;;  %v6180_v27 = vld [vmem:[%s7603_s4 + $0x8] sm:$0xff]  ;;  %v1926_v31 = vadd.f32 %v1904_v42, %v1753_v13  ;;  %v791_v13 = vadd.f32 %v6843_v57, %v6841_v56 }
 0x11f   : > { %3096 = vmatpush.bf16.msra.mxu2 %v6191_v46 }
 0x121   : > { %v6912_v8 = vpop.f32.mrf.mxu0  ;;  %v6997_v1 = vpop.f32.mrf.mxu2 }
 0x129   : > { %v1432_v16 = vpop.f32.mrf.mxu0 }
 0x12a   : > { %v6925_v20 = vadd.f32 %v1432_v16, %v6867_v40  ;;  %v787_v40 = vadd.f32 %v6805_v35, %v6803_v34  ;;  %v6946_v35 = vpop.f32.mrf.mxu3 }
 0x12b   : > { %v2098_v46 = vadd.f32 %v6946_v35, %v1926_v31  ;;  %v1103_v31 = vadd.f32 %v6853_v9, %v791_v13  ;;  %v1755_v9 = vadd.f32 %v6988_v14, %v6902_v5 }
 0x12c   : > { %v1099_v41 = vadd.f32 %v6817_v54, %v787_v40  ;;  %v6183_v54 = vld [vmem:[%s7603_s4 + $0x20] sm:$0xff] }
 0x12d   : > { %2834 = vmatpush.bf16.msrb.mxu0 %v6183_v54  ;;  %6297 = vmatpush.bf16.msra.mxu1 %v6183_v54  ;;  %v6196_v54 = vld [vmem:[%s7603_s4 + $0x88] sm:$0xff]  ;;  %v1928_v5 = vadd.f32 %v6997_v1, %v1755_v9  ;;  %v6358_v1 = vmov 0  }
 0x12e   : > { %v1271_v47 = vadd.f32 %v6819_v55, %v1099_v41  ;;  %v6959_v55 = vld [vmem:[%s7601_s2] ss:$0 sm:$0xff] }
 0x130   : > { %v1443_v34 = vadd.f32 %v1419_v53, %v1271_v47 }
 0x131   : > { %v6927_v23 = vpop.f32.mrf.mxu0  ;;  %2835 = vmatpush.bf16.msrb.mxu0 %v6182_v63  ;;  %6298 = vmatpush.bf16.msra.mxu1 %v6182_v63 }
 0x132   : > { %v1752_v58 = vadd.f32 %v1728_v25, %v1443_v34  ;;  %v6985_v19 = vpop.f32.mrf.mxu3  ;;  %v2592_v34 = vld [vmem:[#allocation2 + $0x4] sm:$0x1] }
 0x134   : > { %v1925_v2 = vadd.f32 %v1901_v26, %v1752_v58 }
 0x135   : > { %2836 = vmatpush.bf16.msrb.mxu0 %v6181_v6  ;;  %6299 = vmatpush.bf16.msra.mxu1 %v6181_v6  ;;  %v7036_v6 = vpop.f32.mrf.mxu1 }
 0x136   : > { %v2097_v16 = vadd.f32 %v2073_v32, %v1925_v2  ;;  %v6197_v32 = vld [vmem:[%s7603_s4 + $0x90] sm:$0xff] }
 0x137   : > { %3299 = vmatpush.bf16.msra.mxu3 %v6197_v32  ;;  %v2595_v32 = vld [vmem:[#allocation2 + $0x8] sm:$0xf] }
 0x139   : > { %v1437_v29 = vpop.f32.mrf.mxu0  ;;  %2837 = vmatpush.bf16.msrb.mxu0 %v6180_v27  ;;  %6300 = vmatpush.bf16.msra.mxu1 %v6180_v27 }
 0x13a   : > { %v6929_v30 = vadd.f32 %v1437_v29, %v1278_v22  ;;  %v1273_v29 = vadd.f32 %v6837_v28, %v1101_v61  ;;  %v6190_v28 = vld [vmem:[%s7603_s4 + $0x58] sm:$0xff]  ;;  %v7027_v2 = vpop.f32.mrf.mxu3  ;;  %v6195_v61 = vld [vmem:[%s7603_s4 + $0x80] sm:$0xff] }
 0x13b   : > { %3097 = vmatpush.bf16.msra.mxu2 %v6190_v28  ;;  %3300 = vmatpush.bf16.msra.mxu3 %v6196_v54  ;;  %v1275_v54 = vadd.f32 %v6855_v10, %v1103_v31  ;;  %v793_v10 = vadd.f32 %v6865_v39, %v6863_v38  ;;  %v2604_v38 = vld [vmem:[#allocation2 + $0x14] sm:$0x1]  ;;  %v2100_v39 = vadd.f32 %v7027_v2, %v1928_v5  ;;  %v6239_v2 = vld [vmem:[%s7603_s4 + $0x1a0] sm:$0xff] }
 0x13c   : > { %v1445_v37 = vadd.f32 %v6893_v36, %v1273_v29  ;;  %v6179_v36 = vld [vmem:[%s7603_s4] sm:$0xff] }
 0x13d   : > { %2838 = vmatpush.bf16.msrb.mxu0 %v6179_v36  ;;  %6301 = vmatpush.bf16.msra.mxu1 %v6179_v36 }
 0x13f   : > { %3098 = vmatpush.bf16.msra.mxu2 %v6189_v0  ;;  %3301 = vmatpush.bf16.msra.mxu3 %v6195_v61  ;;  %v1741_v0 = vpop.f32.mrf.mxu1  ;;  %v2601_v61 = vld [vmem:[#allocation2 + $0x10] sm:$0xf] }
 0x141   : > { %v6940_v22 = vpop.f32.mrf.mxu0 }
 0x142   : > { %v2083_v14 = vpop.f32.mrf.mxu3 }
 0x149   : > { %v2380_v53 = vpop.f32.mrf.mxu0 }
 0x14a   : > { %v2405_v60 = vadd.f32 %v2380_v53, %v2096_v50 }
 0x14c   : > { %v2439_v3 = vmul.f32 %v6959_v55, %v2405_v60  ;;  %v1754_v60 = vadd.f32 %v6951_v49, %v1445_v37  ;;  %v6242_v49 = vld [vmem:[%s7603_s4 + $0x1b8] sm:$0xff] }
 0x14d   : > { %4056 = vmatpush.bf16.msra.mxu0 %v6242_v49  ;;  %v1105_v49 = vadd.f32 %v6871_v51, %v793_v10 }
 0x14e   : > { %v2453_v18 = vadd.f32 %v6966_v62, %v2439_v3  ;;  %v1927_v15 = vadd.f32 %v6961_v59, %v1754_v60  ;;  %v6241_v59 = vld [vmem:[%s7603_s4 + $0x1b0] sm:$0xff] }
 0x150   : > { %v2463_v21 = vmax.f32 %v2453_v18, 0.0  ;;  %v2099_v56 = vadd.f32 %v6985_v19, %v1927_v15 }
 0x151   : > { %v2382_v24 = vpop.f32.mrf.mxu0  ;;  %4057 = vmatpush.bf16.msra.mxu0 %v6241_v59 }
 0x152   : > { %v2473_v25 = vpack.c.bf16 %v2463_v21, %v2463_v21  ;;  %v2406_v26 = vadd.f32 %v2382_v24, %v2097_v16  ;;  %v6188_v24 = vld [vmem:[%s7603_s4 + $0x48] sm:$0xff] }
 0x153   : > { %3099 = vmatpush.bf16.msra.mxu2 %v6188_v24 }
 0x154   : > { %v2484_v33 = vshrl.u32 %v2473_v25, 16  ;;  %v2440_v40 = vmul.f32 %v6959_v55, %v2406_v26  ;;  %v2487_v42 = vshll.u32 %v2473_v25, 16  ;;  %v7048_v25 = vpop.f32.mrf.mxu2 }
 0x156   : > { %v2486_v41 = vrot.slane %v2484_v33, 7  ;;  %v2454_v47 = vadd.f32 %v6966_v62, %v2440_v40 }
 0x158   : > { %v2489_v50 = vor.u32 %v2487_v42, %v2486_v41  ;;  %v2490_v53 = vrot.slane %v2486_v41, 4  ;;  %v2464_v58 = vmax.f32 %v2454_v47, 0.0  ;;  %v6187_v41 = vld [vmem:[%s7603_s4 + $0x40] sm:$0xff] }
 0x159   : > { %v2385_v63 = vpop.f32.mrf.mxu0  ;;  %3100 = vmatpush.bf16.msra.mxu2 %v6187_v41 }
 0x15a   : > { %v2587_v3 = vsel %vm7006_vm7, %v2489_v50, %v2586_v45  ;;  %v2593_v35 = vsel %vm7015_vm8, %v2490_v53, %v2592_v34  ;;  %v2474_v4 = vpack.c.bf16 %v2464_v58, %v2464_v58  ;;  %v2407_v18 = vadd.f32 %v2385_v63, %v2098_v46  ;;  %v2598_v45 = vld [vmem:[#allocation2 + $0xc] sm:$0x1] }
 0x15b   : > { %2588 = vst [vmem:[#allocation2] sm:$0xf] %v2587_v3  ;;  %v6240_v34 = vld [vmem:[%s7603_s4 + $0x1a8] sm:$0xff]  ;;  %v1447_v63 = vadd.f32 %v6912_v8, %v1275_v54 }
 0x15c   : > { %2594 = vst [vmem:[#allocation2 + $0x4] sm:$0x1] %v2593_v35  ;;  %v2492_v16 = vshrl.u32 %v2474_v4, 16  ;;  %v2441_v21 = vmul.f32 %v6959_v55, %v2407_v18  ;;  %v2495_v27 = vshll.u32 %v2474_v4, 16  ;;  %4058 = vmatpush.bf16.msra.mxu0 %v6240_v34  ;;  %v1914_v8 = vpop.f32.mrf.mxu2 }
 0x15d   : > { %v1756_v13 = vadd.f32 %v7036_v6, %v1447_v63  ;;  %v1277_v6 = vadd.f32 %v6873_v52, %v1105_v49 }
 0x15e   : > { %v2494_v26 = vrot.slane %v2492_v16, 7  ;;  %v2455_v29 = vadd.f32 %v6966_v62, %v2441_v21 }
 0x15f   : > { %v1929_v31 = vadd.f32 %v7048_v25, %v1756_v13  ;;  %v2086_v25 = vpop.f32.mrf.mxu3 }
 0x160   : > { %v2497_v57 = vor.u32 %v2495_v27, %v2494_v26  ;;  %v2465_v33 = vmax.f32 %v2455_v29, 0.0  ;;  %v2498_v37 = vrot.slane %v2494_v26, 4  ;;  %4059 = vmatpush.bf16.msra.mxu0 %v6239_v2 }
 0x161   : > { %v2387_v28 = vpop.f32.mrf.mxu0 }
 0x162   : > { %v2649_v42 = vld [vmem:[#allocation2] sm:$0x1]  ;;  %v2596_v19 = vsel %vm7006_vm7, %v2497_v57, %v2595_v32  ;;  %v2475_v47 = vpack.c.bf16 %v2465_v33, %v2465_v33  ;;  %v2408_v36 = vadd.f32 %v2387_v28, %v2099_v56  ;;  %v2599_v3 = vsel %vm7015_vm8, %v2498_v37, %v2598_v45  ;;  %v2607_v28 = vld [vmem:[#allocation2 + $0x18] sm:$0xf] }
 0x163   : > { %v2650_v46 = vsel %vm7015_vm8, 0, %v2649_v42  ;;  %v2680_v50 = vld [vmem:[#allocation2 + $0x4] sm:$0x1]  ;;  %2597 = vst [vmem:[#allocation2 + $0x8] sm:$0xf] %v2596_v19  ;;  %v795_v33 = vadd.f32 %v6910_v7, %v6881_v17  ;;  %v1757_v37 = vadd.f32 %v1741_v0, %v6925_v20  ;;  %v1449_v17 = vadd.f32 %v6927_v23, %v1277_v6  ;;  %v1743_v7 = vpop.f32.mrf.mxu1 }
 0x164   : > { %2651 = vst [vmem:[#allocation2] sm:$0x1] %v2650_v46  ;;  %v2681_v53 = vsel %vm7058_vm9, 0, %v2680_v50  ;;  %v2500_v58 = vshrl.u32 %v2475_v47, 16  ;;  %v2442_v60 = vmul.f32 %v6959_v55, %v2408_v36  ;;  %v2503_v4 = vshll.u32 %v2475_v47, 16 }
 0x165   : > { %2682 = vst [vmem:[#allocation2 + $0x4] sm:$0x1] %v2681_v53  ;;  %v2610_v19 = vld [vmem:[#allocation2 + $0x1c] sm:$0x1]  ;;  %v1107_v47 = vadd.f32 %v6914_v11, %v795_v33  ;;  %v2101_v36 = vadd.f32 %v2083_v14, %v1929_v31  ;;  %v1930_v34 = vadd.f32 %v1914_v8, %v1757_v37  ;;  %v2613_v6 = vld [vmem:[#allocation2 + $0x20] sm:$0xf] }
 0x166   : > { %2714 = vst [vmem:[#allocation2] sm:$0xf] %v6358_v1  ;;  %v2502_v35 = vrot.slane %v2500_v58, 7  ;;  %v2456_v18 = vadd.f32 %v6966_v62, %v2442_v60  ;;  %v6238_v11 = vld [vmem:[%s7603_s4 + $0x198] sm:$0xff] }
 0x167   : > { %2715 = vst [vmem:[#allocation2 + $0x4] sm:$0x1] %v6358_v1  ;;  %4060 = vmatpush.bf16.msra.mxu0 %v6238_v11  ;;  %v2102_v31 = vadd.f32 %v2086_v25, %v1930_v34 }
 0x168   : > { %2600 = vst [vmem:[#allocation2 + $0xc] sm:$0x1] %v2599_v3  ;;  %v2505_v15 = vor.u32 %v2503_v4, %v2502_v35  ;;  %v2506_v16 = vrot.slane %v2502_v35, 4  ;;  %v2466_v21 = vmax.f32 %v2456_v18, 0.0  ;;  %v1916_v4 = vpop.f32.mrf.mxu2 }
 0x169   : > { %v2390_v24 = vpop.f32.mrf.mxu0 }
 0x16a   : > { %v2652_v26 = vld [vmem:[#allocation2 + $0x8] sm:$0x1]  ;;  %v2602_v27 = vsel %vm7006_vm7, %v2505_v15, %v2601_v61  ;;  %v2605_v51 = vsel %vm7015_vm8, %v2506_v16, %v2604_v38  ;;  %v2476_v29 = vpack.c.bf16 %v2466_v21, %v2466_v21  ;;  %v2409_v59 = vadd.f32 %v2390_v24, %v2100_v39  ;;  %v3140_v8 = vld [vmem:[#allocation2 + $0x8] sm:$0xe]  ;;  %v6237_v15 = vld [vmem:[%s7603_s4 + $0x190] sm:$0xff] }
 0x16b   : > { %v2653_v32 = vsel %vm7015_vm8, 0, %v2652_v26  ;;  %2603 = vst [vmem:[#allocation2 + $0x10] sm:$0xf] %v2602_v27  ;;  %v7127_v16 = vadd.f32 %v6919_v12, %v1107_v47  ;;  %v1758_v21 = vadd.f32 %v1743_v7, %v1449_v17  ;;  %4061 = vmatpush.bf16.msra.mxu0 %v6237_v15  ;;  %v2088_v47 = vpop.f32.mrf.mxu3 }
 0x16c   : > { %2654 = vst [vmem:[#allocation2 + $0x8] sm:$0x1] %v2653_v32  ;;  %v2508_v56 = vshrl.u32 %v2476_v29, 16  ;;  %v2443_v57 = vmul.f32 %v6959_v55, %v2409_v59  ;;  %v2511_v42 = vshll.u32 %v2476_v29, 16 }
 0x16d   : > { %2606 = vst [vmem:[#allocation2 + $0x14] sm:$0x1] %v2605_v51  ;;  %v3138_v41 = vld [vmem:[#allocation2] sm:$0xe]  ;;  %v1931_v12 = vadd.f32 %v1916_v4, %v1758_v21 }
 0x16e   : > { %v2510_v9 = vrot.slane %v2508_v56, 7  ;;  %v2457_v52 = vadd.f32 %v6966_v62, %v2443_v57  ;;  %v5629_v45 = vrot.slane %v3138_v41, 9  ;;  %v5535_v54 = vld [vmem:[#allocation2] sm:$0xf]  ;;  %v3139_v46 = vld [vmem:[#allocation2 + $0x4] sm:$0x1] }
 0x16f   : > { %v2683_v20 = vld [vmem:[#allocation2 + $0xc] sm:$0x1]  ;;  %v2876_v50 = vld [vmem:[#allocation2] sm:$0xf]  ;;  %v2877_v10 = vld [vmem:[#allocation2 + $0x4] sm:$0x1]  ;;  %v2103_v4 = vadd.f32 %v2088_v47, %v1931_v12 }
 0x170   : > { %v2684_v5 = vsel %vm7058_vm9, 0, %v2683_v20  ;;  %v2513_v53 = vor.u32 %v2511_v42, %v2510_v9  ;;  %v2514_v58 = vrot.slane %v2510_v9, 4  ;;  %v2467_v60 = vmax.f32 %v2457_v52, 0.0  ;;  %v2616_v9 = vld [vmem:[#allocation2 + $0x24] sm:$0x1]  ;;  %v6222_v12 = vld [vmem:[%s7603_s4 + $0x138] sm:$0xff] }
 0x171   : > { %2685 = vst [vmem:[#allocation2 + $0xc] sm:$0x1] %v2684_v5  ;;  %v2392_v14 = vpop.f32.mrf.mxu0  ;;  %v3183_v63 = vrot.slane %v3139_v46, 5  ;;  %v2901_v0 = vshrl.u32 %v2876_v50, 16  ;;  %v2904_v3 = vshll.u32 %v2876_v50, 16  ;;  %v2910_v35 = vshll.u32 %v2877_v10, 16  ;;  %3707 = vmatpush.bf16.msrb.mxu2 %v6222_v12 }
 0x172   : > { %v2655_v18 = vld [vmem:[#allocation2 + $0x10] sm:$0x1]  ;;  %v2608_v49 = vsel %vm7006_vm7, %v2513_v53, %v2607_v28  ;;  %v2611_v61 = vsel %vm7015_vm8, %v2514_v58, %v2610_v19  ;;  %v2477_v38 = vpack.c.bf16 %v2467_v60, %v2467_v60  ;;  %v2410_v39 = vadd.f32 %v2392_v14, %v2101_v36 }
 0x173   : > { %v2656_v13 = vsel %vm7015_vm8, 0, %v2655_v18  ;;  %2609 = vst [vmem:[#allocation2 + $0x18] sm:$0xf] %v2608_v49  ;;  %v6175_v24 = vld [vmem:[#allocation2 + $0x4] sm:$0xf0]  ;;  %v2903_v26 = vrot.slane %v2901_v0, 4  ;;  %v7134_v2 = vsel %vm7115_vm12, %v5629_v45, %v3183_v63 }
 0x174   : > { %2657 = vst [vmem:[#allocation2 + $0x10] sm:$0x1] %v2656_v13  ;;  %v2686_v27 = vld [vmem:[#allocation2 + $0x14] sm:$0x1]  ;;  %v2516_v51 = vshrl.u32 %v2477_v38, 16  ;;  %v2444_v29 = vmul.f32 %v6959_v55, %v2410_v39  ;;  %v5536_v59 = vor.u32 %v6175_v24, %v5535_v54  ;;  %v2906_v57 = vrot.slane %v2904_v3, 5  ;;  %v1746_v54 = vpop.f32.mrf.mxu1  ;;  %v1919_v39 = vpop.f32.mrf.mxu2 }
 0x175   : > { %v2687_v32 = vsel %vm7058_vm9, 0, %v2686_v27  ;;  %2612 = vst [vmem:[#allocation2 + $0x1c] sm:$0x1] %v2611_v61  ;;  %v2878_v56 = vld [vmem:[#allocation2 + $0x8] sm:$0xf]  ;;  %v2519_v37 = vshll.u32 %v2477_v38, 16  ;;  %v3230_v42 = vunpack.c.l.b16 %v7134_v2  ;;  %v1759_v38 = vadd.f32 %v1746_v54, %v6929_v30 }
 0x176   : > { %2688 = vst [vmem:[#allocation2 + $0x14] sm:$0x1] %v2687_v32  ;;  %v2518_v33 = vrot.slane %v2516_v51, 7  ;;  %v2458_v28 = vadd.f32 %v6966_v62, %v2444_v29  ;;  %2839 = vmatmul.bf16.vlgmr.msrb.gmra.mxu0 %v5536_v59  ;;  %v5630_v41 = vrot.slane %v3140_v8, 9  ;;  %v2907_v19 = vor.u32 %v2906_v57, %v2903_v26  ;;  %v6236_v45 = vld [vmem:[%s7603_s4 + $0x188] sm:$0xff]  ;;  %v6230_v32 = vld [vmem:[%s7603_s4 + $0x178] sm:$0xff] }
 0x177   : > { %v2915_v25 = vshrl.u32 %v2878_v56, 16  ;;  %v2918_v52 = vshll.u32 %v2878_v56, 16  ;;  %v2912_v20 = vrot.slane %v2910_v35, 5  ;;  %v7147_v3 = vld [vmem:[#allocation2 + $0x10] sm:$0xe]  ;;  %4062 = vmatpush.bf16.msra.mxu0 %v6236_v45  ;;  %3905 = vmatpush.bf16.msrb.mxu3 %v6230_v32 }
 0x178   : > { %v2521_v36 = vor.u32 %v2519_v37, %v2518_v33  ;;  %v2522_v34 = vrot.slane %v2518_v33, 4  ;;  %v2468_v17 = vmax.f32 %v2458_v28, 0.0  ;;  %v3141_v7 = vld [vmem:[#allocation2 + $0xc] sm:$0x1]  ;;  %v2908_v5 = vrot.slane %v2907_v19, 4  ;;  %v6235_v28 = vld [vmem:[%s7603_s4 + $0x180] sm:$0xff] }
 0x179   : > { %v2395_v46 = vpop.f32.mrf.mxu0  ;;  %v3187_v50 = vrot.slane %v3141_v7, 5  ;;  %v2917_v53 = vrot.slane %v2915_v25, 4  ;;  %v2920_v58 = vrot.slane %v2918_v52, 5  ;;  %v2879_v0 = vld [vmem:[#allocation2 + $0xc] sm:$0x1]  ;;  %v5631_v33 = vrot.slane %v7147_v3, 9  ;;  %v2091_v7 = vpop.f32.mrf.mxu3 }
 0x17a   : > { %v2658_v60 = vld [vmem:[#allocation2 + $0x18] sm:$0x1]  ;;  %v2614_v10 = vsel %vm7006_vm7, %v2521_v36, %v2613_v6  ;;  %v2617_v11 = vsel %vm7015_vm8, %v2522_v34, %v2616_v9  ;;  %v2478_v14 = vpack.c.bf16 %v2468_v17, %v2468_v17  ;;  %v2411_v63 = vadd.f32 %v2395_v46, %v2102_v31  ;;  %v7153_v61 = vld [vmem:[#allocation2 + $0x18] sm:$0xe]  ;;  %v2619_v26 = vld [vmem:[#allocation2 + $0x28] sm:$0xf] }
 0x17b   : > { %v2659_v35 = vsel %vm7015_vm8, 0, %v2658_v60  ;;  %2615 = vst [vmem:[#allocation2 + $0x20] sm:$0xf] %v2614_v10  ;;  %v3188_v18 = vsel %vm7115_vm12, %v5630_v41, %v3187_v50  ;;  %v2921_v49 = vor.u32 %v2920_v58, %v2917_v53  ;;  %v2913_v27 = vsel %vm6524_vm2, %v2908_v5, %v2912_v20  ;;  %v2622_v56 = vld [vmem:[#allocation2 + $0x2c] sm:$0x1]  ;;  %4063 = vmatpush.bf16.msra.mxu0 %v6235_v28  ;;  %v6214_v58 = vld [vmem:[%s7603_s4 + $0xf8] sm:$0xff] }
 0x17c   : > { %2660 = vst [vmem:[#allocation2 + $0x18] sm:$0x1] %v2659_v35  ;;  %v2689_v8 = vld [vmem:[#allocation2 + $0x1c] sm:$0x1]  ;;  %v2524_v15 = vshrl.u32 %v2478_v14, 16  ;;  %v2445_v21 = vmul.f32 %v6959_v55, %v2411_v63  ;;  %v3231_v13 = vunpack.c.l.b16 %v3188_v18  ;;  %v2924_v29 = vshll.u32 %v2879_v0, 16  ;;  %v1748_v0 = vpop.f32.mrf.mxu1  ;;  %3445 = vmatpush.bf16.msrb.mxu1 %v6214_v58  ;;  %v1921_v12 = vpop.f32.mrf.mxu2 }
 0x17d   : > { %v2690_v24 = vsel %vm7058_vm9, 0, %v2689_v8  ;;  %2618 = vst [vmem:[#allocation2 + $0x24] sm:$0x1] %v2617_v11  ;;  %v2922_v51 = vrot.slane %v2921_v49, 4  ;;  %v2527_v30 = vshll.u32 %v2478_v14, 16  ;;  %v1932_v6 = vadd.f32 %v1919_v39, %v1759_v38 }
 0x17e   : > { %2691 = vst [vmem:[#allocation2 + $0x1c] sm:$0x1] %v2690_v24  ;;  %v2526_v59 = vrot.slane %v2524_v15, 7  ;;  %v2459_v2 = vadd.f32 %v6966_v62, %v2445_v21  ;;  %v3238_v31 = vpack.c.b16 %v3231_v13, %v3230_v42  ;;  %v2926_v57 = vrot.slane %v2924_v29, 5  ;;  %v3143_v25 = vld [vmem:[#allocation2 + $0x14] sm:$0x1] }
 0x17f   : > { %v5632_v37 = vrot.slane %v7153_v61, 9  ;;  %v3029_v19 = vunpack.c.l.b16 %v2913_v27  ;;  %v2880_v52 = vld [vmem:[#allocation2 + $0x10] sm:$0xf]  ;;  %v3191_v36 = vrot.slane %v3143_v25, 5  ;;  %v1451_v60 = vadd.f32 %v6940_v22, %v7127_v16  ;;  %v7187_v38 = vld [vmem:[#allocation2 + $0x14] sm:$0x1] }
 0x180   : > { %v2529_v41 = vor.u32 %v2527_v30, %v2526_v59  ;;  %v2530_v9 = vrot.slane %v2526_v59, 4  ;;  %v2469_v42 = vmax.f32 %v2459_v2, 0.0  ;;  %3302 = vmatmul.bf16.vlgmr.msra.gmra.mxu3 %v3238_v31  ;;  %v2927_v47 = vsel %vm6524_vm2, %v2922_v51, %v2926_v57  ;;  %v5539_v53 = vld [vmem:[#allocation2 + $0x10] sm:$0xf]  ;;  %v2628_v30 = vld [vmem:[#allocation2 + $0x34] sm:$0x1] }
 0x181   : > { %v2397_v45 = vpop.f32.mrf.mxu0  ;;  %v2929_v34 = vshrl.u32 %v2880_v52, 16  ;;  %v2932_v17 = vshll.u32 %v2880_v52, 16  ;;  %v3030_v11 = vunpack.c.l.b16 %v2927_v47  ;;  %v6221_v13 = vld [vmem:[%s7603_s4 + $0x130] sm:$0xff]  ;;  %v3192_v24 = vsel %vm7115_vm12, %v5631_v33, %v3191_v36 }
 0x182   : > { %v2661_v20 = vld [vmem:[#allocation2 + $0x20] sm:$0x1]  ;;  %v2620_v54 = vsel %vm7006_vm7, %v2529_v41, %v2619_v26  ;;  %v2623_v46 = vsel %vm7015_vm8, %v2530_v9, %v2622_v56  ;;  %v2479_v50 = vpack.c.bf16 %v2469_v42, %v2469_v42  ;;  %v2412_v5 = vadd.f32 %v2397_v45, %v2103_v4  ;;  %v6229_v27 = vld [vmem:[%s7603_s4 + $0x170] sm:$0xff]  ;;  %3708 = vmatpush.bf16.msrb.mxu2 %v6221_v13 }
 0x183   : > { %v2662_v10 = vsel %vm7015_vm8, 0, %v2661_v20  ;;  %2621 = vst [vmem:[#allocation2 + $0x28] sm:$0xf] %v2620_v54  ;;  %v6176_v14 = vld [vmem:[#allocation2 + $0x14] sm:$0xf0]  ;;  %v2931_v63 = vrot.slane %v2929_v34, 4  ;;  %v3037_v16 = vpack.c.b16 %v3030_v11, %v3029_v19  ;;  %v2104_v51 = vadd.f32 %v2091_v7, %v1932_v6  ;;  %3906 = vmatpush.bf16.msrb.mxu3 %v6229_v27  ;;  %v2093_v7 = vpop.f32.mrf.mxu3 }
 0x184   : > { %2663 = vst [vmem:[#allocation2 + $0x20] sm:$0x1] %v2662_v10  ;;  %v2692_v3 = vld [vmem:[#allocation2 + $0x24] sm:$0x1]  ;;  %v2532_v35 = vshrl.u32 %v2479_v50, 16  ;;  %v2535_v4 = vshll.u32 %v2479_v50, 16  ;;  %v2446_v18 = vmul.f32 %v6959_v55, %v2412_v5  ;;  %v5540_v49 = vor.u32 %v6176_v14, %v5539_v53 }
 0x185   : > { %v2693_v22 = vsel %vm7058_vm9, 0, %v2692_v3  ;;  %2624 = vst [vmem:[#allocation2 + $0x2c] sm:$0x1] %v2623_v46  ;;  %v3145_v39 = vld [vmem:[#allocation2 + $0x1c] sm:$0x1]  ;;  %v2934_v8 = vrot.slane %v2932_v17, 5  ;;  %v1760_v29 = vadd.f32 %v1748_v0, %v1451_v60  ;;  %3101 = vmatmul.bf16.vlgmr.msra.gmra.mxu2 %v3037_v16  ;;  %v3232_v41 = vunpack.c.l.b16 %v3192_v24 }
 0x186   : > { %2694 = vst [vmem:[#allocation2 + $0x24] sm:$0x1] %v2693_v22  ;;  %v2534_v15 = vrot.slane %v2532_v35, 7  ;;  %v2460_v21 = vadd.f32 %v6966_v62, %v2446_v18  ;;  %2844 = vmatmul.bf16.gmra.mxu0 %v5540_v49  ;;  %v3195_v26 = vrot.slane %v3145_v39, 5  ;;  %v2625_v59 = vld [vmem:[#allocation2 + $0x30] sm:$0xf] }
 0x187   : > { %v2882_v2 = vld [vmem:[#allocation2 + $0x18] sm:$0xf]  ;;  %v2935_v31 = vor.u32 %v2934_v8, %v2931_v63  ;;  %v2938_v9 = vshll.u32 %v7187_v38, 16  ;;  %v6213_v19 = vld [vmem:[%s7603_s4 + $0xf0] sm:$0xff]  ;;  %v2883_v47 = vld [vmem:[#allocation2 + $0x1c] sm:$0x1]  ;;  %v1933_v36 = vadd.f32 %v1921_v12, %v1760_v29 }
 0x188   : > { %v2537_v32 = vor.u32 %v2535_v4, %v2534_v15  ;;  %v2538_v56 = vrot.slane %v2534_v15, 4  ;;  %v2470_v57 = vmax.f32 %v2460_v21, 0.0  ;;  %v3196_v33 = vsel %vm7115_vm12, %v5632_v37, %v3195_v26  ;;  %3446 = vmatpush.bf16.msrb.mxu1 %v6213_v19  ;;  %v6212_v17 = vld [vmem:[%s7603_s4 + $0xe8] sm:$0xff]  ;;  %v7218_v53 = vld [vmem:[#allocation2 + $0x20] sm:$0xe] }
 0x189   : > { %v2400_v28 = vpop.f32.mrf.mxu0  ;;  %v3233_v6 = vunpack.c.l.b16 %v3196_v33  ;;  %v2943_v42 = vshrl.u32 %v2882_v2, 16  ;;  %v2936_v5 = vrot.slane %v2935_v31, 4  ;;  %v2631_v60 = vld [vmem:[#allocation2 + $0x38] sm:$0xf]  ;;  %v2946_v11 = vshll.u32 %v2882_v2, 16  ;;  %v6220_v38 = vld [vmem:[%s7603_s4 + $0x128] sm:$0xff] }
 0x18a   : > { %v2664_v25 = vld [vmem:[#allocation2 + $0x28] sm:$0x1]  ;;  %v2626_v52 = vsel %vm7006_vm7, %v2537_v32, %v2625_v59  ;;  %v2629_v61 = vsel %vm7015_vm8, %v2538_v56, %v2628_v30  ;;  %v2480_v45 = vpack.c.bf16 %v2470_v57, %v2470_v57  ;;  %v2413_v37 = vadd.f32 %v2400_v28, %v2104_v51  ;;  %v2634_v18 = vld [vmem:[#allocation2 + $0x3c] sm:$0x1]  ;;  %v5871_v21 = vld [vmem:[#allocation2 + $0x10] sm:$0xf]  ;;  %3709 = vmatpush.bf16.msrb.mxu2 %v6220_v38 }
 0x18b   : > { %v2665_v34 = vsel %vm7015_vm8, 0, %v2664_v25  ;;  %2627 = vst [vmem:[#allocation2 + $0x30] sm:$0xf] %v2626_v52  ;;  %v3239_v50 = vpack.c.b16 %v3233_v6, %v3232_v41  ;;  %v2945_v10 = vrot.slane %v2943_v42, 4  ;;  %v2952_v14 = vshll.u32 %v2883_v47, 16  ;;  %v6228_v22 = vld [vmem:[%s7603_s4 + $0x168] sm:$0xff] }
 0x18c   : > { %2666 = vst [vmem:[#allocation2 + $0x28] sm:$0x1] %v2665_v34  ;;  %v2695_v20 = vld [vmem:[#allocation2 + $0x2c] sm:$0x1]  ;;  %v2540_v54 = vshrl.u32 %v2480_v45, 16  ;;  %v2447_v46 = vmul.f32 %v6959_v55, %v2413_v37  ;;  %v2543_v0 = vshll.u32 %v2480_v45, 16  ;;  %v2105_v4 = vadd.f32 %v2093_v7, %v1933_v36  ;;  %3447 = vmatpush.bf16.msrb.mxu1 %v6212_v17  ;;  %3907 = vmatpush.bf16.msrb.mxu3 %v6228_v22 }
 0x18d   : > { %v2696_v58 = vsel %vm7058_vm9, 0, %v2695_v20  ;;  %2630 = vst [vmem:[#allocation2 + $0x34] sm:$0x1] %v2629_v61  ;;  %v2940_v35 = vrot.slane %v2938_v9, 5  ;;  %v2948_v49 = vrot.slane %v2946_v11, 5  ;;  %v2954_v51 = vrot.slane %v2952_v14, 5 }
 0x18e   : > { %2697 = vst [vmem:[#allocation2 + $0x2c] sm:$0x1] %v2696_v58  ;;  %v2542_v63 = vrot.slane %v2540_v54, 7  ;;  %v2461_v3 = vadd.f32 %v6966_v62, %v2447_v46  ;;  %v6231_v13 = vld [vmem:[#allocation2 + $0x14] sm:$0xf0]  ;;  %v6219_v29 = vld [vmem:[%s7603_s4 + $0x120] sm:$0xff] }
 0x18f   : > { %v2941_v15 = vsel %vm6524_vm2, %v2936_v5, %v2940_v35  ;;  %v3147_v24 = vld [vmem:[#allocation2 + $0x24] sm:$0x1]  ;;  %v2949_v27 = vor.u32 %v2948_v49, %v2945_v10  ;;  %v5633_v59 = vrot.slane %v7218_v53, 9  ;;  %v5543_v28 = vld [vmem:[#allocation2 + $0x20] sm:$0xf]  ;;  %v5872_v52 = vor.u32 %v6231_v13, %v5871_v21  ;;  %v6218_v61 = vld [vmem:[%s7603_s4 + $0x118] sm:$0xff]  ;;  %3710 = vmatpush.bf16.msrb.mxu2 %v6219_v29 }
 0x190   : > { %v2545_v16 = vor.u32 %v2543_v0, %v2542_v63  ;;  %v2546_v39 = vrot.slane %v2542_v63, 4  ;;  %v2471_v8 = vmax.f32 %v2461_v3, 0.0  ;;  %3307 = vmatmul.bf16.gmra.mxu3 %v3239_v50  ;;  %v3199_v30 = vrot.slane %v3147_v24, 5  ;;  %v6227_v2 = vld [vmem:[%s7603_s4 + $0x160] sm:$0xff]  ;;  %v3148_v41 = vld [vmem:[#allocation2 + $0x28] sm:$0xe] }
 0x191   : > { %v2402_v26 = vpop.f32.mrf.mxu0  ;;  %v6211_v31 = vld [vmem:[%s7603_s4 + $0xe0] sm:$0xff]  ;;  %v2950_v42 = vrot.slane %v2949_v27, 4  ;;  %v3031_v19 = vunpack.c.l.b16 %v2941_v15  ;;  %v6226_v45 = vld [vmem:[%s7603_s4 + $0x158] sm:$0xff]  ;;  %3908 = vmatpush.bf16.msrb.mxu3 %v6227_v2  ;;  %v5634_v63 = vrot.slane %v3148_v41, 9  ;;  %v6217_v21 = vld [vmem:[%s7603_s4 + $0x110] sm:$0xff] }
 0x192   : > { %v2667_v12 = vld [vmem:[#allocation2 + $0x30] sm:$0x1]  ;;  %v2632_v32 = vsel %vm7006_vm7, %v2545_v16, %v2631_v60  ;;  %v2635_v56 = vsel %vm7015_vm8, %v2546_v39, %v2634_v18  ;;  %v2481_v57 = vpack.c.bf16 %v2471_v8, %v2471_v8  ;;  %v2414_v33 = vadd.f32 %v2402_v26, %v2105_v4  ;;  %v2884_v6 = vld [vmem:[#allocation2 + $0x20] sm:$0xf]  ;;  %3448 = vmatpush.bf16.msrb.mxu1 %v6211_v31  ;;  %v7254_v7 = vld [vmem:[#allocation2 + $0x24] sm:$0x1] }
 0x193   : > { %v2668_v9 = vsel %vm7015_vm8, 0, %v2667_v12  ;;  %2633 = vst [vmem:[#allocation2 + $0x38] sm:$0xf] %v2632_v32  ;;  %v6177_v25 = vld [vmem:[#allocation2 + $0x24] sm:$0xf0]  ;;  %v2955_v46 = vsel %vm6524_vm2, %v2950_v42, %v2954_v51  ;;  %v3200_v5 = vsel %vm7115_vm12, %v5633_v59, %v3199_v30  ;;  %v2957_v53 = vshrl.u32 %v2884_v6, 16  ;;  %3711 = vmatpush.bf16.msrb.mxu2 %v6218_v61 }
 0x194   : > { %2669 = vst [vmem:[#allocation2 + $0x30] sm:$0x1] %v2668_v9  ;;  %v2698_v37 = vld [vmem:[#allocation2 + $0x34] sm:$0x1]  ;;  %v2548_v47 = vshrl.u32 %v2481_v57, 16  ;;  %v2551_v36 = vshll.u32 %v2481_v57, 16  ;;  %v2448_v34 = vmul.f32 %v6959_v55, %v2414_v33  ;;  %v5544_v17 = vor.u32 %v6177_v25, %v5543_v28 }
 0x195   : > { %v2699_v20 = vsel %vm7058_vm9, 0, %v2698_v37  ;;  %2636 = vst [vmem:[#allocation2 + $0x3c] sm:$0x1] %v2635_v56  ;;  %v2637_v54 = vld [vmem:[#allocation2 + $0x40] sm:$0xf]  ;;  %v3032_v60 = vunpack.c.l.b16 %v2955_v46  ;;  %v2959_v0 = vrot.slane %v2957_v53, 4  ;;  %v3234_v16 = vunpack.c.l.b16 %v3200_v5  ;;  %3909 = vmatpush.bf16.msrb.mxu3 %v6226_v45 }
 0x196   : > { %v3149_v50 = vld [vmem:[#allocation2 + $0x2c] sm:$0x1]  ;;  %2700 = vst [vmem:[#allocation2 + $0x34] sm:$0x1] %v2699_v20  ;;  %v2550_v55 = vrot.slane %v2548_v47, 7  ;;  %v2462_v58 = vadd.f32 %v6966_v62, %v2448_v34  ;;  %2849 = vmatmul.bf16.vlgmr.msra.gmra.mxu1 %v5544_v17  ;;  %4064 = vmatmul.bf16.vlgmr.msra.gmra.mxu0 %v5872_v52  ;;  %v2960_v3 = vshll.u32 %v2884_v6, 16 }
 0x197   : > { %v3203_v10 = vrot.slane %v3149_v50, 5  ;;  %v2886_v11 = vld [vmem:[#allocation2 + $0x28] sm:$0xf]  ;;  %v2640_v14 = vld [vmem:[#allocation2 + $0x44] sm:$0x1]  ;;  %v3038_v38 = vpack.c.b16 %v3032_v60, %v3031_v19  ;;  %v6210_v22 = vld [vmem:[%s7603_s4 + $0xd8] sm:$0xff]  ;;  %3712 = vmatpush.bf16.msrb.mxu2 %v6217_v21 }
 0x198   : > { %v2971_v35 = vshrl.u32 %v2886_v11, 16  ;;  %v2553_v4 = vor.u32 %v2551_v36, %v2550_v55  ;;  %v2554_v18 = vrot.slane %v2550_v55, 4  ;;  %v2472_v49 = vmax.f32 %v2462_v58, 0.0  ;;  %v2887_v39 = vld [vmem:[#allocation2 + $0x2c] sm:$0x1]  ;;  %3449 = vmatpush.bf16.msrb.mxu1 %v6210_v22  ;;  %v6209_v29 = vld [vmem:[%s7603_s4 + $0xd0] sm:$0xff] }
 0x199   : > { %v3204_v62 = vsel %vm7115_vm12, %v5634_v63, %v3203_v10  ;;  %v2962_v8 = vrot.slane %v2960_v3, 5  ;;  %v2966_v15 = vshll.u32 %v7254_v7, 16  ;;  %3106 = vmatmul.bf16.gmra.mxu2 %v3038_v38  ;;  %v6225_v59 = vld [vmem:[%s7603_s4 + $0x150] sm:$0xff]  ;;  %v2974_v12 = vshll.u32 %v2886_v11, 16  ;;  %v2643_v41 = vld [vmem:[#allocation2 + $0x48] sm:$0xf] }
 0x19a   : > { %v2670_v13 = vld [vmem:[#allocation2 + $0x38] sm:$0x1]  ;;  %v2638_v24 = vsel %vm7006_vm7, %v2553_v4, %v2637_v54  ;;  %v2641_v26 = vsel %vm7015_vm8, %v2554_v18, %v2640_v14  ;;  %v2482_v27 = vpack.c.bf16 %v2472_v49, %v2472_v49  ;;  %v3235_v51 = vunpack.c.l.b16 %v3204_v62  ;;  %v2646_v6 = vld [vmem:[#allocation2 + $0x4c] sm:$0x1]  ;;  %v3150_v19 = vld [vmem:[#allocation2 + $0x30] sm:$0xe]  ;;  %3910 = vmatpush.bf16.msrb.mxu3 %v6225_v59 }
 0x19b   : > { %v2671_v30 = vsel %vm7015_vm8, 0, %v2670_v13  ;;  %2639 = vst [vmem:[#allocation2 + $0x40] sm:$0xf] %v2638_v24  ;;  %v2963_v2 = vor.u32 %v2962_v8, %v2959_v0  ;;  %v2973_v31 = vrot.slane %v2971_v35, 4  ;;  %v2980_v33 = vshll.u32 %v2887_v39, 16  ;;  %v6208_v61 = vld [vmem:[%s7603_s4 + $0xc8] sm:$0xff] }
 0x19c   : > { %2672 = vst [vmem:[#allocation2 + $0x38] sm:$0x1] %v2671_v30  ;;  %v2701_v32 = vld [vmem:[#allocation2 + $0x3c] sm:$0x1]  ;;  %v2556_v56 = vshrl.u32 %v2482_v27, 16  ;;  %v3240_v57 = vpack.c.b16 %v3235_v51, %v3234_v16  ;;  %v2976_v42 = vrot.slane %v2974_v12, 5  ;;  %3450 = vmatpush.bf16.msrb.mxu1 %v6209_v29 }
 0x19d   : > { %v2702_v28 = vsel %vm7058_vm9, 0, %v2701_v32  ;;  %2642 = vst [vmem:[#allocation2 + $0x44] sm:$0x1] %v2641_v26  ;;  %v2964_v9 = vrot.slane %v2963_v2, 4  ;;  %v2559_v52 = vshll.u32 %v2482_v27, 16  ;;  %v2968_v45 = vrot.slane %v2966_v15, 5 }
 0x19e   : > { %2703 = vst [vmem:[#allocation2 + $0x3c] sm:$0x1] %v2702_v28  ;;  %v2558_v25 = vrot.slane %v2556_v56, 7  ;;  %v2977_v37 = vor.u32 %v2976_v42, %v2973_v31  ;;  %v3151_v47 = vld [vmem:[#allocation2 + $0x34] sm:$0x1]  ;;  %v6216_v34 = vld [vmem:[%s7603_s4 + $0x108] sm:$0xff] }
 0x19f   : > { %v2888_v36 = vld [vmem:[#allocation2 + $0x30] sm:$0xf]  ;;  %v2982_v20 = vrot.slane %v2980_v33, 5  ;;  %v6232_v54 = vld [vmem:[#allocation2 + $0x24] sm:$0xf0]  ;;  %v2969_v50 = vsel %vm6524_vm2, %v2964_v9, %v2968_v45  ;;  %3713 = vmatpush.bf16.msrb.mxu2 %v6216_v34  ;;  %v5635_v0 = vrot.slane %v3150_v19, 9 }
 0x1a0   : > { %v2561_v17 = vor.u32 %v2559_v52, %v2558_v25  ;;  %v2562_v7 = vrot.slane %v2558_v25, 4  ;;  %3312 = vmatmul.bf16.gmra.mxu3 %v3240_v57  ;;  %v6224_v46 = vld [vmem:[%s7603_s4 + $0x148] sm:$0xff]  ;;  %v2978_v5 = vrot.slane %v2977_v37, 4  ;;  %v5547_v53 = vld [vmem:[#allocation2 + $0x30] sm:$0xf]  ;;  %v2985_v60 = vshrl.u32 %v2888_v36, 16  ;;  %3451 = vmatpush.bf16.msrb.mxu1 %v6208_v61 }
 0x1a1   : > { %v5875_v55 = vld [vmem:[#allocation2 + $0x20] sm:$0xf]  ;;  %v3152_v58 = vld [vmem:[#allocation2 + $0x38] sm:$0xe]  ;;  %v2988_v10 = vshll.u32 %v2888_v36, 16  ;;  %v3207_v3 = vrot.slane %v3151_v47, 5  ;;  %3911 = vmatpush.bf16.msrb.mxu3 %v6224_v46  ;;  %v3033_v62 = vunpack.c.l.b16 %v2969_v50 }
 0x1a2   : > { %v2673_v11 = vld [vmem:[#allocation2 + $0x40] sm:$0x1]  ;;  %v2644_v14 = vsel %vm7006_vm7, %v2561_v17, %v2643_v41  ;;  %v2647_v63 = vsel %vm7015_vm8, %v2562_v7, %v2646_v6  ;;  %v2983_v43 = vsel %vm6524_vm2, %v2978_v5, %v2982_v20  ;;  %v2987_v38 = vrot.slane %v2985_v60, 4  ;;  %v2889_v32 = vld [vmem:[#allocation2 + $0x34] sm:$0x1]  ;;  %v6258_v52 = vld [vmem:[%s7603_s4 + $0x238] sm:$0xff] }
 0x1a3   : > { %v6207_v35 = vld [vmem:[%s7603_s4 + $0xc0] sm:$0xff]  ;;  %v2674_v18 = vsel %vm7015_vm8, 0, %v2673_v11  ;;  %2645 = vst [vmem:[#allocation2 + $0x48] sm:$0xf] %v2644_v14  ;;  %v6178_v49 = vld [vmem:[#allocation2 + $0x34] sm:$0xf0]  ;;  %v3034_v16 = vunpack.c.l.b16 %v2983_v43  ;;  %v5876_v8 = vor.u32 %v6232_v54, %v5875_v55  ;;  %v3208_v59 = vsel %vm7115_vm12, %v5635_v0, %v3207_v3 }
 0x1a4   : > { %v6223_v4 = vld [vmem:[%s7603_s4 + $0x140] sm:$0xff]  ;;  %2675 = vst [vmem:[#allocation2 + $0x40] sm:$0x1] %v2674_v18  ;;  %v5548_v39 = vor.u32 %v6178_v49, %v5547_v53  ;;  %v2890_v15 = vld [vmem:[#allocation2 + $0x38] sm:$0xf]  ;;  %v2990_v24 = vrot.slane %v2988_v10, 5  ;;  %3452 = vmatpush.bf16.msrb.mxu1 %v6207_v35  ;;  %v3236_v9 = vunpack.c.l.b16 %v3208_v59 }
 0x1a5   : > { %v2704_v22 = vld [vmem:[#allocation2 + $0x44] sm:$0x1]  ;;  %2648 = vst [vmem:[#allocation2 + $0x4c] sm:$0x1] %v2647_v63  ;;  %v3153_v13 = vld [vmem:[#allocation2 + $0x3c] sm:$0x1]  ;;  %v3039_v26 = vpack.c.b16 %v3034_v16, %v3033_v62  ;;  %3912 = vmatpush.bf16.msrb.mxu3 %v6223_v4 }
 0x1a6   : > { %v2705_v21 = vsel %vm7058_vm9, 0, %v2704_v22  ;;  %2854 = vmatmul.bf16.gmra.mxu1 %v5548_v39  ;;  %4069 = vmatmul.bf16.gmra.mxu0 %v5876_v8  ;;  %v5636_v27 = vrot.slane %v3152_v58, 9  ;;  %v3211_v51 = vrot.slane %v3153_v13, 5  ;;  %v2891_v29 = vld [vmem:[#allocation2 + $0x3c] sm:$0x1]  ;;  %v2999_v30 = vshrl.u32 %v2890_v15, 16 }
 0x1a7   : > { %2706 = vst [vmem:[#allocation2 + $0x44] sm:$0x1] %v2705_v21  ;;  %v3002_v2 = vshll.u32 %v2890_v15, 16  ;;  %v6215_v31 = vld [vmem:[%s7603_s4 + $0x100] sm:$0xff]  ;;  %v2991_v56 = vor.u32 %v2990_v24, %v2987_v38  ;;  %v3008_v57 = vshll.u32 %v2891_v29, 16  ;;  %v2994_v19 = vshll.u32 %v2889_v32, 16 }
 0x1a8   : > { %v3212_v12 = vsel %vm7115_vm12, %v5636_v27, %v3211_v51  ;;  %v3001_v28 = vrot.slane %v2999_v30, 4  ;;  %3714 = vmatpush.bf16.msrb.mxu2 %v6215_v31  ;;  %v6250_v17 = vld [vmem:[%s7603_s4 + $0x1f8] sm:$0xff]  ;;  %v3492_v7 = vld [vmem:[#allocation2 + $0x10] sm:$0xf]  ;;  %v3755_v46 = vld [vmem:[#allocation2 + $0x14] sm:$0x1] }
 0x1a9   : > { %v3237_v33 = vunpack.c.l.b16 %v3212_v12  ;;  %v3004_v41 = vrot.slane %v3002_v2, 5  ;;  %3111 = vmatmul.bf16.gmra.mxu2 %v3039_v26  ;;  %v2992_v37 = vrot.slane %v2991_v56, 4  ;;  %v3010_v47 = vrot.slane %v3008_v57, 5  ;;  %v6203_v54 = vld [vmem:[#allocation2 + $0xc] sm:$0xf0]  ;;  %4657 = vmatpush.bf16.msra.mxu3 %v6270_v48  ;;  %v6256_v2 = vld [vmem:[%s7603_s4 + $0x228] sm:$0xff] }
 0x1aa   : > { %v2676_v6 = vld [vmem:[#allocation2 + $0x48] sm:$0x1]  ;;  %v2996_v20 = vrot.slane %v2994_v19, 5  ;;  %4318 = vmatpush.bf16.msra.mxu1 %v6250_v17  ;;  %v6257_v5 = vld [vmem:[%s7603_s4 + $0x230] sm:$0xff]  ;;  %v6233_v55 = vld [vmem:[#allocation2 + $0x34] sm:$0xf0] }
 0x1ab   : > { %v2677_v42 = vsel %vm7015_vm8, 0, %v2676_v6  ;;  %v3005_v25 = vor.u32 %v3004_v41, %v3001_v28  ;;  %v3241_v45 = vpack.c.b16 %v3237_v33, %v3236_v9  ;;  %v3490_v50 = vld [vmem:[#allocation2 + $0x8] sm:$0xf]  ;;  %v3529_v58 = vshrl.u32 %v3492_v7, 16  ;;  %v6269_v60 = vld [vmem:[%s7607_s8 + $0x30] sm:$0xff]  ;;  %v6255_v28 = vld [vmem:[%s7603_s4 + $0x220] sm:$0xff] }
 0x1ac   : > { %2678 = vst [vmem:[#allocation2 + $0x48] sm:$0x1] %v2677_v42  ;;  %v2707_v61 = vld [vmem:[#allocation2 + $0x4c] sm:$0x1]  ;;  %4516 = vmatpush.bf16.msra.mxu2 %v6258_v52  ;;  %v2997_v53 = vsel %vm6524_vm2, %v2992_v37, %v2996_v20  ;;  %v5703_v11 = vld [vmem:[#allocation2 + $0x8] sm:$0xf] }
 0x1ad   : > { %v2708_v36 = vsel %vm7058_vm9, 0, %v2707_v61  ;;  %2717 = vst [vmem:[#allocation2 + $0x48] sm:$0xf] %v6358_v1  ;;  %v3006_v34 = vrot.slane %v3005_v25, 4  ;;  %v3753_v14 = vld [vmem:[#allocation2 + $0xc] sm:$0x1]  ;;  %4658 = vmatpush.bf16.msra.mxu3 %v6269_v60  ;;  %v3035_v43 = vunpack.c.l.b16 %v2997_v53  ;;  %v5704_v49 = vor.u32 %v6203_v54, %v5703_v11 }
 0x1ae   : > { %2709 = vst [vmem:[#allocation2 + $0x4c] sm:$0x1] %v2708_v36  ;;  %v3754_v63 = vld [vmem:[#allocation2 + $0x10] sm:$0xe]  ;;  %v3798_v3 = vrot.slane %v3755_v46, 5  ;;  %v3515_v35 = vshrl.u32 %v3490_v50, 16 }
 0x1af   : > { %2718 = vst [vmem:[#allocation2 + $0x4c] sm:$0x1] %v6358_v1  ;;  %v3011_v40 = vsel %vm6524_vm2, %v3006_v34, %v3010_v47  ;;  %v3532_v1 = vshll.u32 %v3492_v7, 16  ;;  %v5879_v0 = vld [vmem:[#allocation2 + $0x30] sm:$0xf]  ;;  %v3518_v4 = vshll.u32 %v3490_v50, 16 }
 0x1b0   : > { %3317 = vmatmul.bf16.gmra.mxu3 %v3241_v45  ;;  %v3036_v10 = vunpack.c.l.b16 %v3011_v40  ;;  %4517 = vmatpush.bf16.msra.mxu2 %v6257_v5  ;;  %v6249_v18 = vld [vmem:[%s7603_s4 + $0x1f0] sm:$0xff]  ;;  %v5880_v38 = vor.u32 %v6233_v55, %v5879_v0  ;;  %v3752_v22 = vld [vmem:[#allocation2 + $0x8] sm:$0xe]  ;;  %v3794_v62 = vrot.slane %v3753_v14, 5  ;;  %v5798_v16 = vrot.slane %v3754_v63, 9  ;;  %v6267_v45 = vld [vmem:[%s7607_s8 + $0x20] sm:$0xff] }
 0x1b1   : > { %v3531_v39 = vrot.slane %v3529_v58, 4  ;;  %v3534_v8 = vrot.slane %v3532_v1, 5  ;;  %4319 = vmatpush.bf16.msra.mxu1 %v6249_v18  ;;  %v5797_v21 = vrot.slane %v3752_v22, 9  ;;  %v3517_v24 = vrot.slane %v3515_v35, 4  ;;  %v3493_v27 = vld [vmem:[#allocation2 + $0x14] sm:$0x1] }
 0x1b2   : > { %v3040_v15 = vpack.c.b16 %v3036_v10, %v3035_v43  ;;  %v3799_v13 = vsel %vm7115_vm12, %v5798_v16, %v3798_v3  ;;  %v3520_v26 = vrot.slane %v3518_v4, 5  ;;  %v3491_v29 = vld [vmem:[#allocation2 + $0xc] sm:$0x1]  ;;  %v3538_v56 = vshll.u32 %v3493_v27, 16  ;;  %v3496_v9 = vld [vmem:[#allocation2 + $0x20] sm:$0xf] }
 0x1b3   : > { %v3795_v51 = vsel %vm7115_vm12, %v5797_v21, %v3794_v62  ;;  %v3535_v59 = vor.u32 %v3534_v8, %v3531_v39  ;;  %v3842_v30 = vunpack.c.l.b16 %v3799_v13  ;;  %v6268_v31 = vld [vmem:[%s7607_s8 + $0x28] sm:$0xff]  ;;  %v3524_v33 = vshll.u32 %v3491_v29, 16  ;;  %v3759_v25 = vld [vmem:[#allocation2 + $0x24] sm:$0x1]  ;;  %v3494_v61 = vld [vmem:[#allocation2 + $0x18] sm:$0xf] }
 0x1b4   : > { %v6248_v12 = vld [vmem:[%s7603_s4 + $0x1e8] sm:$0xff]  ;;  %v3521_v32 = vor.u32 %v3520_v26, %v3517_v24  ;;  %v3841_v57 = vunpack.c.l.b16 %v3795_v51  ;;  %4518 = vmatpush.bf16.msra.mxu2 %v6256_v2  ;;  %4659 = vmatpush.bf16.msra.mxu3 %v6268_v31  ;;  %v3540_v19 = vrot.slane %v3538_v56, 5  ;;  %v6247_v37 = vld [vmem:[%s7603_s4 + $0x1e0] sm:$0xff]  ;;  %v3557_v48 = vshrl.u32 %v3496_v9, 16  ;;  %v5707_v7 = vld [vmem:[#allocation2 + $0x18] sm:$0xf] }
 0x1b5   : > { %v3536_v41 = vrot.slane %v3535_v59, 4  ;;  %4320 = vmatpush.bf16.msra.mxu1 %v6248_v12  ;;  %v3526_v52 = vrot.slane %v3524_v33, 5  ;;  %v6204_v36 = vld [vmem:[#allocation2 + $0x1c] sm:$0xf0]  ;;  %v6234_v34 = vld [vmem:[#allocation2 + $0x44] sm:$0xf0] }
 0x1b6   : > { %3453 = vmatmul.bf16.vlgmr.msrb.gmra.mxu1 %v5704_v49  ;;  %4074 = vmatmul.bf16.gmra.mxu0 %v5880_v38  ;;  %v3849_v6 = vpack.c.b16 %v3842_v30, %v3841_v57  ;;  %v3522_v42 = vrot.slane %v3521_v32, 4  ;;  %v3560_v17 = vshll.u32 %v3496_v9, 16  ;;  %v3757_v20 = vld [vmem:[#allocation2 + $0x1c] sm:$0x1]  ;;  %v3758_v40 = vld [vmem:[#allocation2 + $0x20] sm:$0xe]  ;;  %v5708_v58 = vor.u32 %v6204_v36, %v5707_v7 }
 0x1b7   : > { %v3541_v47 = vsel %vm6524_vm2, %v3536_v41, %v3540_v19  ;;  %v5883_v46 = vld [vmem:[#allocation2 + $0x40] sm:$0xf]  ;;  %v3806_v50 = vrot.slane %v3759_v25, 5  ;;  %v3543_v5 = vshrl.u32 %v3494_v61, 16  ;;  %v3546_v53 = vshll.u32 %v3494_v61, 16  ;;  %v6254_v39 = vld [vmem:[%s7603_s4 + $0x218] sm:$0xff] }
 0x1b8   : > { %4519 = vmatpush.bf16.msra.mxu2 %v6255_v28  ;;  %4660 = vmatpush.bf16.msra.mxu3 %v6267_v45  ;;  %v3527_v54 = vsel %vm6524_vm2, %v3522_v42, %v3526_v52  ;;  %v3644_v55 = vunpack.c.l.b16 %v3541_v47  ;;  %v5884_v1 = vor.u32 %v6234_v34, %v5883_v46  ;;  %v3756_v60 = vld [vmem:[#allocation2 + $0x18] sm:$0xe]  ;;  %v3802_v10 = vrot.slane %v3757_v20, 5  ;;  %v3497_v49 = vld [vmem:[#allocation2 + $0x24] sm:$0x1]  ;;  %v6253_v26 = vld [vmem:[%s7603_s4 + $0x210] sm:$0xff] }
 0x1b9   : > { %3116 = vmatmul.bf16.gmra.mxu2 %v3040_v15  ;;  %4321 = vmatpush.bf16.msra.mxu1 %v6247_v37  ;;  %v5800_v11 = vrot.slane %v3758_v40, 9  ;;  %v3559_v14 = vrot.slane %v3557_v48, 4  ;;  %v3562_v63 = vrot.slane %v3560_v17, 5  ;;  %v3643_v0 = vunpack.c.l.b16 %v3527_v54  ;;  %v3495_v22 = vld [vmem:[#allocation2 + $0x1c] sm:$0x1]  ;;  %v6245_v57 = vld [vmem:[%s7603_s4 + $0x1d0] sm:$0xff] }
 0x1ba   : > { %v5799_v3 = vrot.slane %v3756_v60, 9  ;;  %v3545_v4 = vrot.slane %v3543_v5, 4  ;;  %v3548_v18 = vrot.slane %v3546_v53, 5  ;;  %v6266_v8 = vld [vmem:[%s7607_s8 + $0x18] sm:$0xff]  ;;  %v3566_v13 = vshll.u32 %v3497_v49, 16  ;;  %v6265_v33 = vld [vmem:[%s7607_s8 + $0x10] sm:$0xff] }
 0x1bb   : > { %v3807_v35 = vsel %vm7115_vm12, %v5800_v11, %v3806_v50  ;;  %v3651_v43 = vpack.c.b16 %v3644_v55, %v3643_v0  ;;  %v3563_v62 = vor.u32 %v3562_v63, %v3559_v14  ;;  %v6246_v15 = vld [vmem:[%s7603_s4 + $0x1d8] sm:$0xff]  ;;  %v3552_v27 = vshll.u32 %v3495_v22, 16  ;;  %v3500_v29 = vld [vmem:[#allocation2 + $0x30] sm:$0xf]  ;;  %v3763_v31 = vld [vmem:[#allocation2 + $0x34] sm:$0x1] }
 0x1bc   : > { %v3803_v38 = vsel %vm7115_vm12, %v5799_v3, %v3802_v10  ;;  %v3844_v16 = vunpack.c.l.b16 %v3807_v35  ;;  %v3549_v21 = vor.u32 %v3548_v18, %v3545_v4  ;;  %4520 = vmatpush.bf16.msra.mxu2 %v6254_v39  ;;  %4661 = vmatpush.bf16.msra.mxu3 %v6266_v8  ;;  %v3568_v2 = vrot.slane %v3566_v13, 5  ;;  %v3498_v12 = vld [vmem:[#allocation2 + $0x28] sm:$0xf]  ;;  %v3761_v9 = vld [vmem:[#allocation2 + $0x2c] sm:$0x1]  ;;  %v6243_v0 = vld [vmem:[%s7603_s4 + $0x1c0] sm:$0xff] }
 0x1bd   : > { %v3843_v24 = vunpack.c.l.b16 %v3803_v38  ;;  %v3564_v51 = vrot.slane %v3563_v62, 4  ;;  %4322 = vmatpush.bf16.msra.mxu1 %v6246_v15  ;;  %v3585_v32 = vshrl.u32 %v3500_v29, 16  ;;  %v3588_v56 = vshll.u32 %v3500_v29, 16  ;;  %v3762_v42 = vld [vmem:[#allocation2 + $0x30] sm:$0xe]  ;;  %v6244_v37 = vld [vmem:[%s7603_s4 + $0x1c8] sm:$0xff] }
 0x1be   : > { %v3550_v30 = vrot.slane %v3549_v21, 4  ;;  %v3554_v28 = vrot.slane %v3552_v27, 5  ;;  %v5711_v25 = vld [vmem:[#allocation2 + $0x28] sm:$0xf]  ;;  %v3814_v52 = vrot.slane %v3763_v31, 5  ;;  %v3571_v61 = vshrl.u32 %v3498_v12, 16 }
 0x1bf   : > { %v3850_v59 = vpack.c.b16 %v3844_v16, %v3843_v24  ;;  %v3569_v41 = vsel %vm6524_vm2, %v3564_v51, %v3568_v2  ;;  %v3574_v45 = vshll.u32 %v3498_v12, 16  ;;  %v3760_v34 = vld [vmem:[#allocation2 + $0x28] sm:$0xe]  ;;  %v3587_v48 = vrot.slane %v3585_v32, 4  ;;  %v3501_v50 = vld [vmem:[#allocation2 + $0x34] sm:$0x1] }
 0x1c0   : > { %3913 = vmatmul.bf16.vlgmr.msrb.gmra.mxu3 %v3849_v6  ;;  %4521 = vmatpush.bf16.msra.mxu2 %v6253_v26  ;;  %v6205_v6 = vld [vmem:[#allocation2 + $0x2c] sm:$0xf0]  ;;  %v3555_v19 = vsel %vm6524_vm2, %v3550_v30, %v3554_v28  ;;  %v3646_v47 = vunpack.c.l.b16 %v3569_v41  ;;  %v3590_v17 = vrot.slane %v3588_v56, 5  ;;  %v3810_v7 = vrot.slane %v3761_v9, 5  ;;  %v3499_v60 = vld [vmem:[#allocation2 + $0x2c] sm:$0x1] }
 0x1c1   : > { %4323 = vmatpush.bf16.msra.mxu1 %v6245_v57  ;;  %4662 = vmatpush.bf16.msra.mxu3 %v6265_v33  ;;  %v5712_v36 = vor.u32 %v6205_v6, %v5711_v25  ;;  %v5802_v20 = vrot.slane %v3762_v42, 9  ;;  %v3645_v40 = vunpack.c.l.b16 %v3555_v19  ;;  %v5801_v54 = vrot.slane %v3760_v34, 9  ;;  %v4103_v10 = vld [vmem:[#allocation2 + $0x18] sm:$0xf]  ;;  %v6252_v63 = vld [vmem:[%s7603_s4 + $0x208] sm:$0xff]  ;;  %v6251_v38 = vld [vmem:[%s7603_s4 + $0x200] sm:$0xff] }
 0x1c2   : > { %v3573_v5 = vrot.slane %v3571_v61, 4  ;;  %v3576_v53 = vrot.slane %v3574_v45, 5  ;;  %v3594_v14 = vshll.u32 %v3501_v50, 16  ;;  %v6264_v3 = vld [vmem:[%s7607_s8 + $0x8] sm:$0xff]  ;;  %v3580_v18 = vshll.u32 %v3499_v60, 16  ;;  %v6263_v16 = vld [vmem:[%s7607_s8] sm:$0xff] }
 0x1c3   : > { %v3815_v46 = vsel %vm7115_vm12, %v5802_v20, %v3814_v52  ;;  %v3652_v55 = vpack.c.b16 %v3646_v47, %v3645_v40  ;;  %v4101_v49 = vld [vmem:[#allocation2 + $0x10] sm:$0xf]  ;;  %v4140_v22 = vshrl.u32 %v4103_v10, 16  ;;  %v4143_v62 = vshll.u32 %v4103_v10, 16  ;;  %v3504_v15 = vld [vmem:[#allocation2 + $0x40] sm:$0xf] }
 0x1c4   : > { %v3846_v11 = vunpack.c.l.b16 %v3815_v46  ;;  %v3577_v35 = vor.u32 %v3576_v53, %v3573_v5  ;;  %4522 = vmatpush.bf16.msra.mxu2 %v6252_v63  ;;  %v3596_v8 = vrot.slane %v3594_v14, 5  ;;  %v3502_v13 = vld [vmem:[#allocation2 + $0x38] sm:$0xf]  ;;  %v4126_v24 = vshrl.u32 %v4101_v49, 16  ;;  %v3765_v29 = vld [vmem:[#allocation2 + $0x3c] sm:$0x1] }
 0x1c5   : > { %4324 = vmatpush.bf16.msra.mxu1 %v6244_v37  ;;  %4663 = vmatpush.bf16.msra.mxu3 %v6264_v3  ;;  %v4129_v26 = vshll.u32 %v4101_v49, 16  ;;  %v3582_v27 = vrot.slane %v3580_v18, 5  ;;  %v6206_v30 = vld [vmem:[#allocation2 + $0x3c] sm:$0xf0]  ;;  %v3613_v2 = vshrl.u32 %v3504_v15, 16  ;;  %v3616_v31 = vshll.u32 %v3504_v15, 16 }
 0x1c6   : > { %3458 = vmatmul.bf16.gmra.mxu1 %v5708_v58  ;;  %4079 = vmatmul.bf16.gmra.mxu0 %v5884_v1  ;;  %v3591_v58 = vor.u32 %v3590_v17, %v3587_v48  ;;  %v3811_v1 = vsel %vm7115_vm12, %v5801_v54, %v3810_v7  ;;  %v3578_v21 = vrot.slane %v3577_v35, 4  ;;  %v4142_v12 = vrot.slane %v4140_v22, 4  ;;  %v3766_v56 = vld [vmem:[#allocation2 + $0x40] sm:$0xe]  ;;  %v5715_v41 = vld [vmem:[#allocation2 + $0x38] sm:$0xf] }
 0x1c7   : > { %v3845_v4 = vunpack.c.l.b16 %v3811_v1  ;;  %v4145_v32 = vrot.slane %v4143_v62, 5  ;;  %v3599_v57 = vshrl.u32 %v3502_v13, 16  ;;  %v3602_v33 = vshll.u32 %v3502_v13, 16  ;;  %v3764_v52 = vld [vmem:[#allocation2 + $0x38] sm:$0xe] }
 0x1c8   : > { %4523 = vmatpush.bf16.msra.mxu2 %v6251_v38  ;;  %v3583_v28 = vsel %vm6524_vm2, %v3578_v21, %v3582_v27  ;;  %v4128_v9 = vrot.slane %v4126_v24, 4  ;;  %v4131_v42 = vrot.slane %v4129_v26, 5  ;;  %v5716_v25 = vor.u32 %v6206_v30, %v5715_v41  ;;  %v4104_v45 = vld [vmem:[#allocation2 + $0x1c] sm:$0x1]  ;;  %v4102_v34 = vld [vmem:[#allocation2 + $0x14] sm:$0x1] }
 0x1c9   : > { %3715 = vmatmul.bf16.vlgmr.msrb.gmra.mxu2 %v3651_v43  ;;  %v3592_v43 = vrot.slane %v3591_v58, 4  ;;  %4325 = vmatpush.bf16.msra.mxu1 %v6243_v0  ;;  %v3851_v39 = vpack.c.b16 %v3846_v11, %v3845_v4  ;;  %v3818_v61 = vrot.slane %v3765_v29, 5  ;;  %v5804_v37 = vrot.slane %v3766_v56, 9  ;;  %v3505_v53 = vld [vmem:[#allocation2 + $0x44] sm:$0x1] }
 0x1ca   : > { %4664 = vmatpush.bf16.msra.mxu3 %v6263_v16  ;;  %v3615_v47 = vrot.slane %v3613_v2, 4  ;;  %v4146_v48 = vor.u32 %v4145_v32, %v4142_v12  ;;  %v3647_v17 = vunpack.c.l.b16 %v3583_v28  ;;  %v3601_v7 = vrot.slane %v3599_v57, 4  ;;  %v3503_v1 = vld [vmem:[#allocation2 + $0x3c] sm:$0x1]  ;;  %v4107_v63 = vld [vmem:[#allocation2 + $0x28] sm:$0xf] }
 0x1cb   : > { %v3597_v51 = vsel %vm6524_vm2, %v3592_v43, %v3596_v8  ;;  %v3604_v20 = vrot.slane %v3602_v33, 5  ;;  %v5803_v40 = vrot.slane %v3764_v52, 9  ;;  %v4132_v46 = vor.u32 %v4131_v42, %v4128_v9  ;;  %v4105_v49 = vld [vmem:[#allocation2 + $0x20] sm:$0xf]  ;;  %v4108_v57 = vld [vmem:[#allocation2 + $0x2c] sm:$0x1] }
 0x1cc   : > { %v3648_v19 = vunpack.c.l.b16 %v3597_v51  ;;  %v4149_v50 = vshll.u32 %v4104_v45, 16  ;;  %v4147_v10 = vrot.slane %v4146_v48, 4  ;;  %v3622_v0 = vshll.u32 %v3505_v53, 16  ;;  %v4106_v41 = vld [vmem:[#allocation2 + $0x24] sm:$0x1] }
 0x1cd   : > { %v3819_v58 = vsel %vm7115_vm12, %v5803_v40, %v3818_v61  ;;  %v3605_v14 = vor.u32 %v3604_v20, %v3601_v7  ;;  %v4133_v3 = vrot.slane %v4132_v46, 4  ;;  %v3608_v18 = vshll.u32 %v3503_v1, 16  ;;  %v4111_v61 = vld [vmem:[#allocation2 + $0x38] sm:$0xf]  ;;  %v4364_v45 = vld [vmem:[#allocation2 + $0x14] sm:$0x1] }
 0x1ce   : > { %v3653_v5 = vpack.c.b16 %v3648_v19, %v3647_v17  ;;  %v4151_v35 = vrot.slane %v4149_v50, 5  ;;  %v3847_v4 = vunpack.c.l.b16 %v3819_v58  ;;  %v4168_v62 = vshrl.u32 %v4107_v63, 16  ;;  %v4366_v19 = vld [vmem:[#allocation2 + $0x1c] sm:$0x1]  ;;  %v4109_v17 = vld [vmem:[#allocation2 + $0x30] sm:$0xf] }
 0x1cf   : > { %v4171_v16 = vshll.u32 %v4107_v63, 16  ;;  %v3606_v8 = vrot.slane %v3605_v14, 4  ;;  %v3624_v15 = vrot.slane %v3622_v0, 5  ;;  %v4154_v13 = vshrl.u32 %v4105_v49, 16  ;;  %v4363_v46 = vld [vmem:[#allocation2 + $0x10] sm:$0xe] }
 0x1d0   : > { %3918 = vmatmul.bf16.gmra.mxu3 %v3850_v59  ;;  %v3767_v59 = vld [vmem:[#allocation2 + $0x44] sm:$0x1]  ;;  %v4152_v22 = vsel %vm6524_vm2, %v4147_v10, %v4151_v35  ;;  %v4157_v24 = vshll.u32 %v4105_v49, 16  ;;  %v3610_v27 = vrot.slane %v3608_v18, 5  ;;  %v4170_v29 = vrot.slane %v4168_v62, 4 }
 0x1d1   : > { %v3822_v6 = vrot.slane %v3767_v59, 5  ;;  %v4255_v26 = vunpack.c.l.b16 %v4152_v22  ;;  %v4173_v59 = vrot.slane %v4171_v16, 5  ;;  %v4177_v9 = vshll.u32 %v4108_v57, 16  ;;  %v4112_v49 = vld [vmem:[#allocation2 + $0x3c] sm:$0x1] }
 0x1d2   : > { %v3611_v2 = vsel %vm6524_vm2, %v3606_v8, %v3610_v27  ;;  %v4159_v12 = vrot.slane %v4157_v24, 5  ;;  %v4409_v48 = vrot.slane %v4366_v19, 5  ;;  %v4196_v40 = vshrl.u32 %v4111_v61, 16  ;;  %v4110_v62 = vld [vmem:[#allocation2 + $0x34] sm:$0x1] }
 0x1d3   : > { %v3823_v54 = vsel %vm7115_vm12, %v5804_v37, %v3822_v6  ;;  %v4174_v33 = vor.u32 %v4173_v59, %v4170_v29  ;;  %v3649_v28 = vunpack.c.l.b16 %v3611_v2  ;;  %v4405_v50 = vrot.slane %v4364_v45, 5  ;;  %v6260_v2 = vld [vmem:[%s7448_s30 + $0x8] sm:$0xff] }
 0x1d4   : > { %v3848_v11 = vunpack.c.l.b16 %v3823_v54  ;;  %v4199_v54 = vshll.u32 %v4111_v61, 16  ;;  %v4185_v58 = vshll.u32 %v4109_v17, 16 }
 0x1d5   : > { %v4175_v52 = vrot.slane %v4174_v33, 4 }
 0x1d6   : > { %3463 = vmatmul.bf16.gmra.mxu1 %v5712_v36  ;;  %v3618_v36 = vrot.slane %v3616_v31, 5  ;;  %v4156_v31 = vrot.slane %v4154_v13, 4  ;;  %v4201_v14 = vrot.slane %v4199_v54, 5 }
 0x1d8   : > { %v3619_v60 = vor.u32 %v3618_v36, %v3615_v47  ;;  %v4160_v6 = vor.u32 %v4159_v12, %v4156_v31  ;;  %v4179_v47 = vrot.slane %v4177_v9, 5  ;;  %v6259_v36 = vld [vmem:[%s7448_s30] sm:$0xff]  ;;  %v4369_v31 = vld [vmem:[#allocation2 + $0x28] sm:$0xe] }
 0x1d9   : > { %3720 = vmatmul.bf16.gmra.mxu2 %v3652_v55  ;;  %v4135_v55 = vshll.u32 %v4102_v34, 16  ;;  %v4365_v34 = vld [vmem:[#allocation2 + $0x18] sm:$0xe]  ;;  %v5968_v9 = vrot.slane %v4369_v31, 9 }
 0x1da   : > { %v3620_v38 = vrot.slane %v3619_v60, 4  ;;  %v4161_v37 = vrot.slane %v4160_v6, 4  ;;  %v4180_v20 = vsel %vm6524_vm2, %v4175_v52, %v4179_v47  ;;  %v5965_v60 = vrot.slane %v4363_v46, 9 }
 0x1db   : > { %v4137_v43 = vrot.slane %v4135_v55, 5  ;;  %v4182_v55 = vshrl.u32 %v4109_v17, 16  ;;  %v4257_v1 = vunpack.c.l.b16 %v4180_v20 }
 0x1dc   : > { %v3625_v51 = vsel %vm6524_vm2, %v3620_v38, %v3624_v15  ;;  %v4370_v15 = vld [vmem:[#allocation2 + $0x2c] sm:$0x1] }
 0x1dd   : > { %v4138_v21 = vsel %vm6524_vm2, %v4133_v3, %v4137_v43  ;;  %v3650_v32 = vunpack.c.l.b16 %v3625_v51  ;;  %v4406_v3 = vsel %vm7115_vm12, %v5965_v60, %v4405_v50  ;;  %v4184_v35 = vrot.slane %v4182_v55, 4  ;;  %v4368_v51 = vld [vmem:[#allocation2 + $0x24] sm:$0x1] }
 0x1de   : > { %v4254_v30 = vunpack.c.l.b16 %v4138_v21  ;;  %v4452_v22 = vunpack.c.l.b16 %v4406_v3  ;;  %v4191_v21 = vshll.u32 %v4110_v62, 16  ;;  %v4417_v12 = vrot.slane %v4370_v15, 5  ;;  %v4114_v60 = vld [vmem:[#allocation2 + $0x44] sm:$0x1]  ;;  %v4372_v62 = vld [vmem:[#allocation2 + $0x34] sm:$0x1] }
 0x1df   : > { %v3654_v42 = vpack.c.b16 %v3650_v32, %v3649_v28  ;;  %v4113_v32 = vld [vmem:[#allocation2 + $0x40] sm:$0xf]  ;;  %v4413_v6 = vrot.slane %v4368_v51, 5 }
 0x1e0   : > { %3923 = vmatmul.bf16.gmra.mxu3 %v3851_v39  ;;  %v3852_v39 = vpack.c.b16 %v3848_v11, %v3847_v4  ;;  %v4262_v56 = vpack.c.b16 %v4255_v26, %v4254_v30  ;;  %v4198_v11 = vrot.slane %v4196_v40, 4  ;;  %v4187_v4 = vrot.slane %v4185_v58, 5  ;;  %v4115_v26 = vld [vmem:[#allocation2 + $0x48] sm:$0xf] }
 0x1e1   : > { %v4224_v33 = vshrl.u32 %v4115_v26, 16  ;;  %v4227_v28 = vshll.u32 %v4115_v26, 16  ;;  %v4210_v19 = vshrl.u32 %v4113_v32, 16  ;;  %v4418_v45 = vsel %vm7115_vm12, %v5968_v9, %v4417_v12 }
 0x1e2   : > { %v4202_v38 = vor.u32 %v4201_v14, %v4198_v11  ;;  %v4188_v16 = vor.u32 %v4187_v4, %v4184_v35  ;;  %v4455_v46 = vunpack.c.l.b16 %v4418_v45  ;;  %v4219_v14 = vshll.u32 %v4114_v60, 16  ;;  %v4374_v4 = vld [vmem:[#allocation2 + $0x3c] sm:$0x1] }
 0x1e3   : > { %v4229_v47 = vrot.slane %v4227_v28, 5  ;;  %v4212_v40 = vrot.slane %v4210_v19, 4  ;;  %v4421_v26 = vrot.slane %v4372_v62, 5  ;;  %v4378_v19 = vld [vmem:[#allocation2 + $0x4c] sm:$0x1]  ;;  %v6262_v45 = vld [vmem:[%s7448_s30 + $0x18] sm:$0xff] }
 0x1e4   : > { %v4203_v13 = vrot.slane %v4202_v38, 4  ;;  %v4189_v29 = vrot.slane %v4188_v16, 4  ;;  %v4373_v16 = vld [vmem:[#allocation2 + $0x38] sm:$0xe]  ;;  %v4221_v15 = vrot.slane %v4219_v14, 5 }
 0x1e5   : > { %v5970_v51 = vrot.slane %v4373_v16, 9 }
 0x1e6   : > { %3468 = vmatmul.bf16.gmra.mxu1 %v5716_v25  ;;  %v4163_v25 = vshll.u32 %v4106_v41, 16  ;;  %v4367_v41 = vld [vmem:[#allocation2 + $0x20] sm:$0xe] }
 0x1e7   : > { %v5967_v61 = vrot.slane %v4367_v41, 9 }
 0x1e8   : > { %v4165_v7 = vrot.slane %v4163_v25, 5  ;;  %v4213_v25 = vshll.u32 %v4113_v32, 16 }
 0x1e9   : > { %3725 = vmatmul.bf16.gmra.mxu2 %v3653_v5  ;;  %v5966_v5 = vrot.slane %v4365_v34, 9 }
 0x1ea   : > { %v4166_v53 = vsel %vm6524_vm2, %v4161_v37, %v4165_v7  ;;  %v4226_v37 = vrot.slane %v4224_v33, 4  ;;  %v4414_v7 = vsel %vm7115_vm12, %v5967_v61, %v4413_v6  ;;  %v4215_v54 = vrot.slane %v4213_v25, 5 }
 0x1eb   : > { %v4410_v10 = vsel %vm7115_vm12, %v5966_v5, %v4409_v48  ;;  %v4256_v63 = vunpack.c.l.b16 %v4166_v53  ;;  %v4116_v48 = vld [vmem:[#allocation2 + $0x4c] sm:$0x1] }
 0x1ec   : > { %v4453_v18 = vunpack.c.l.b16 %v4410_v10  ;;  %v4230_v5 = vor.u32 %v4229_v47, %v4226_v37  ;;  %v4233_v53 = vshll.u32 %v4116_v48, 16  ;;  %v4216_v10 = vor.u32 %v4215_v54, %v4212_v40  ;;  %v4376_v37 = vld [vmem:[#allocation2 + $0x44] sm:$0x1] }
 0x1ed   : > { %v4263_v43 = vpack.c.b16 %v4257_v1, %v4256_v63  ;;  %v4454_v1 = vunpack.c.l.b16 %v4414_v7  ;;  %v4375_v7 = vld [vmem:[#allocation2 + $0x40] sm:$0xe]  ;;  %v4429_v40 = vrot.slane %v4376_v37, 5 }
 0x1ee   : > { %v4460_v8 = vpack.c.b16 %v4453_v18, %v4452_v22  ;;  %v4231_v63 = vrot.slane %v4230_v5, 4  ;;  %v4235_v3 = vrot.slane %v4233_v53, 5  ;;  %v4217_v38 = vrot.slane %v4216_v10, 4  ;;  %v6261_v22 = vld [vmem:[%s7448_s30 + $0x10] sm:$0xff] }
 0x1ef   : > { %v4461_v11 = vpack.c.b16 %v4455_v46, %v4454_v1 }
 0x1f0   : > { %3928 = vmatmul.bf16.gmra.mxu3 %v3852_v39  ;;  %v4205_v39 = vshll.u32 %v4112_v49, 16 }
 0x1f2   : > { %v4207_v59 = vrot.slane %v4205_v39, 5 }
 0x1f3   : > { %v2840_v30 = vpop.f32.mrf.mxu0 }
 0x1f4   : > { %v4208_v57 = vsel %vm6524_vm2, %v4203_v13, %v4207_v59  ;;  %v4371_v13 = vld [vmem:[#allocation2 + $0x30] sm:$0xe] }
 0x1f5   : > { %v4259_v52 = vunpack.c.l.b16 %v4208_v57 }
 0x1f6   : > { %4326 = vmatmul.bf16.vlgmr.msra.gmra.mxu1 %v4262_v56  ;;  %v4193_v56 = vrot.slane %v4191_v21, 5  ;;  %v4236_v21 = vsel %vm6524_vm2, %v4231_v63, %v4235_v3 }
 0x1f7   : > { %v4261_v59 = vunpack.c.l.b16 %v4236_v21 }
 0x1f9   : > { %3730 = vmatmul.bf16.gmra.mxu2 %v3654_v42  ;;  %v4194_v42 = vsel %vm6524_vm2, %v4189_v29, %v4193_v56 }
 0x1fa   : > { %v4258_v34 = vunpack.c.l.b16 %v4194_v42  ;;  %v4377_v42 = vld [vmem:[#allocation2 + $0x48] sm:$0xe] }
 0x1fb   : > { %v2842_v55 = vpop.f32.mrf.mxu0 }
 0x1fc   : > { %v4264_v50 = vpack.c.b16 %v4259_v52, %v4258_v34  ;;  %v4433_v34 = vrot.slane %v4378_v19, 5 }
 0x200   : > { %4665 = vmatmul.bf16.vlgmr.msra.gmra.mxu3 %v6259_v36 }
 0x203   : > { %v7457_v0 = vpop.f32.mrf.mxu3  ;;  %v2845_v29 = vpop.f32.mrf.mxu0 }
 0x206   : > { %4331 = vmatmul.bf16.gmra.mxu1 %v4263_v43 }
 0x208   : > { %v3102_v24 = vpop.f32.mrf.mxu2 }
 0x209   : > { %4524 = vmatmul.bf16.vlgmr.msra.gmra.mxu2 %v4460_v8  ;;  %v3122_v58 = vadd.f32 %v3102_v24, %v2840_v30  ;;  %v4425_v8 = vrot.slane %v4374_v4, 5  ;;  %v5969_v30 = vrot.slane %v4371_v13, 9 }
 0x20b   : > { %v3305_v27 = vpop.f32.mrf.mxu3  ;;  %v3323_v18 = vadd.f32 %v7457_v0, %v3122_v58  ;;  %v4222_v0 = vsel %vm6524_vm2, %v4217_v38, %v4221_v15  ;;  %v4422_v56 = vsel %vm7115_vm12, %v5969_v30, %v4421_v26  ;;  %v2847_v9 = vpop.f32.mrf.mxu0 }
 0x20c   : > { %v4260_v12 = vunpack.c.l.b16 %v4222_v0  ;;  %v4456_v44 = vunpack.c.l.b16 %v4422_v56 }
 0x20e   : > { %v4265_v33 = vpack.c.b16 %v4261_v59, %v4260_v12 }
 0x210   : > { %4670 = vmatmul.bf16.gmra.mxu3 %v6260_v2  ;;  %v3104_v36 = vpop.f32.mrf.mxu2  ;;  %v4426_v2 = vsel %vm7115_vm12, %v5970_v51, %v4425_v8 }
 0x211   : > { %v3123_v35 = vadd.f32 %v3104_v36, %v2842_v55  ;;  %v4457_v57 = vunpack.c.l.b16 %v4426_v2  ;;  %v5972_v36 = vrot.slane %v4377_v42, 9 }
 0x213   : > { %v3308_v17 = vpop.f32.mrf.mxu3  ;;  %v7470_v20 = vpop.f32.mrf.mxu1  ;;  %v7476_v24 = vadd.f32 %v3305_v27, %v3123_v35  ;;  %v4462_v6 = vpack.c.b16 %v4457_v57, %v4456_v44  ;;  %v4434_v46 = vsel %vm7115_vm12, %v5972_v36, %v4433_v34 }
 0x214   : > { %v4459_v55 = vunpack.c.l.b16 %v4434_v46  ;;  %v4065_v42 = vpop.f32.mrf.mxu0 }
 0x216   : > { %4336 = vmatmul.bf16.gmra.mxu1 %v4264_v50 }
 0x219   : > { %4529 = vmatmul.bf16.gmra.mxu2 %v4461_v11 }
 0x21b   : > { %v3310_v43 = vpop.f32.mrf.mxu3  ;;  %v2852_v49 = vpop.f32.mrf.mxu1 }
 0x21c   : > { %v3107_v39 = vpop.f32.mrf.mxu2 }
 0x21d   : > { %v3124_v31 = vadd.f32 %v3107_v39, %v2845_v29 }
 0x21f   : > { %v3325_v41 = vadd.f32 %v3308_v17, %v3124_v31  ;;  %v5971_v17 = vrot.slane %v4375_v7, 9 }
 0x220   : > { %4675 = vmatmul.bf16.gmra.mxu3 %v6261_v22 }
 0x221   : > { %v4430_v5 = vsel %vm7115_vm12, %v5971_v17, %v4429_v40 }
 0x222   : > { %v4458_v10 = vunpack.c.l.b16 %v4430_v5 }
 0x223   : > { %v3313_v32 = vpop.f32.mrf.mxu3  ;;  %v2855_v27 = vpop.f32.mrf.mxu1 }
 0x224   : > { %v3109_v28 = vpop.f32.mrf.mxu2 }
 0x225   : > { %v3125_v61 = vadd.f32 %v3109_v28, %v2847_v9 }
 0x226   : > { %4341 = vmatmul.bf16.gmra.mxu1 %v4265_v33 }
 0x227   : > { %v7486_v54 = vadd.f32 %v3310_v43, %v3125_v61 }
 0x229   : > { %4534 = vmatmul.bf16.gmra.mxu2 %v4462_v6 }
 0x22b   : > { %v3315_v25 = vpop.f32.mrf.mxu3  ;;  %v2857_v52 = vpop.f32.mrf.mxu1 }
 0x22c   : > { %v3112_v47 = vpop.f32.mrf.mxu2 }
 0x22d   : > { %v3126_v48 = vadd.f32 %v3112_v47, %v7470_v20  ;;  %v4463_v20 = vpack.c.b16 %v4459_v55, %v4458_v10  ;;  %v4067_v47 = vpop.f32.mrf.mxu0  ;;  %v7518_v55 = vld [vmem:[%s7608_s9] ss:$0 sm:$0xff] }
 0x22f   : > { %v3327_v11 = vadd.f32 %v3313_v32, %v3126_v48 }
 0x230   : > { %4680 = vmatmul.bf16.gmra.mxu3 %v6262_v45 }
 0x233   : > { %v3318_v50 = vpop.f32.mrf.mxu3  ;;  %v3454_v53 = vpop.f32.mrf.mxu1 }
 0x234   : > { %v3474_v58 = vadd.f32 %v3454_v53, %v3323_v18  ;;  %v3114_v1 = vpop.f32.mrf.mxu2 }
 0x235   : > { %v3127_v60 = vadd.f32 %v3114_v1, %v2852_v49  ;;  %v4070_v5 = vpop.f32.mrf.mxu0  ;;  %v7523_v1 = vld [vmem:[%s7604_s5] ss:$0 sm:$0xff] }
 0x237   : > { %v7492_v4 = vadd.f32 %v3315_v25, %v3127_v60 }
 0x239   : > { %4539 = vmatmul.bf16.gmra.mxu2 %v4463_v20  ;;  %v7529_v20 = vld [vmem:[%s7609_s10] ss:$0 sm:$0xff] }
 0x23b   : > { %v3320_v14 = vpop.f32.mrf.mxu3  ;;  %v3456_v63 = vpop.f32.mrf.mxu1 }
 0x23c   : > { %v3117_v3 = vpop.f32.mrf.mxu2  ;;  %v3475_v48 = vadd.f32 %v3456_v63, %v7476_v24 }
 0x23d   : > { %v3128_v35 = vadd.f32 %v3117_v3, %v2855_v27 }
 0x23f   : > { %v3329_v16 = vadd.f32 %v3318_v50, %v3128_v35 }
 0x243   : > { %v3914_v43 = vpop.f32.mrf.mxu3  ;;  %v3459_v38 = vpop.f32.mrf.mxu1 }
 0x244   : > { %v3476_v22 = vadd.f32 %v3459_v38, %v3325_v41  ;;  %v3119_v23 = vpop.f32.mrf.mxu2 }
 0x245   : > { %v3129_v62 = vadd.f32 %v3119_v23, %v2857_v52 }
 0x247   : > { %v7494_v21 = vadd.f32 %v3320_v14, %v3129_v62  ;;  %v7535_v14 = vld [vmem:[%s7605_s6] ss:$0 sm:$0xff] }
 0x24b   : > { %v3916_v39 = vpop.f32.mrf.mxu3  ;;  %v3461_v18 = vpop.f32.mrf.mxu1 }
 0x24c   : > { %v3716_v8 = vpop.f32.mrf.mxu2  ;;  %v3477_v62 = vadd.f32 %v3461_v18, %v7486_v54 }
 0x24d   : > { %v3736_v49 = vadd.f32 %v3716_v8, %v3474_v58 }
 0x24f   : > { %v3934_v15 = vadd.f32 %v3914_v43, %v3736_v49 }
 0x251   : > { %v4085_v40 = vadd.f32 %v4065_v42, %v3934_v15 }
 0x253   : > { %v3919_v13 = vpop.f32.mrf.mxu3  ;;  %v3464_v26 = vpop.f32.mrf.mxu1 }
 0x254   : > { %v3478_v51 = vadd.f32 %v3464_v26, %v3327_v11  ;;  %v3718_v0 = vpop.f32.mrf.mxu2 }
 0x255   : > { %v3737_v7 = vadd.f32 %v3718_v0, %v3475_v48 }
 0x257   : > { %v3935_v53 = vadd.f32 %v3916_v39, %v3737_v7 }
 0x259   : > { %v4086_v24 = vadd.f32 %v4067_v47, %v3935_v53 }
 0x25b   : > { %v7496_v29 = vpop.f32.mrf.mxu3  ;;  %v7498_v59 = vpop.f32.mrf.mxu1 }
 0x25c   : > { %v3721_v30 = vpop.f32.mrf.mxu2  ;;  %v3479_v48 = vadd.f32 %v7498_v59, %v7492_v4 }
 0x25d   : > { %v3738_v2 = vadd.f32 %v3721_v30, %v3476_v22 }
 0x25f   : > { %v3936_v31 = vadd.f32 %v3919_v13, %v3738_v2 }
 0x261   : > { %v4087_v15 = vadd.f32 %v4070_v5, %v3936_v31 }
 0x263   : > { %v3924_v12 = vpop.f32.mrf.mxu3  ;;  %v3469_v32 = vpop.f32.mrf.mxu1 }
 0x264   : > { %v3480_v56 = vadd.f32 %v3469_v32, %v3329_v16  ;;  %v3723_v27 = vpop.f32.mrf.mxu2  ;;  %v4072_v16 = vpop.f32.mrf.mxu0 }
 0x265   : > { %v3739_v8 = vadd.f32 %v3723_v27, %v3477_v62 }
 0x267   : > { %v3937_v32 = vadd.f32 %v7496_v29, %v3739_v8 }
 0x26b   : > { %v7500_v57 = vpop.f32.mrf.mxu3  ;;  %v7504_v41 = vpop.f32.mrf.mxu1 }
 0x26c   : > { %v3726_v33 = vpop.f32.mrf.mxu2  ;;  %v4075_v27 = vpop.f32.mrf.mxu0  ;;  %v3481_v8 = vadd.f32 %v7504_v41, %v7494_v21 }
 0x26d   : > { %v3740_v28 = vadd.f32 %v3726_v33, %v3478_v51  ;;  %v4088_v33 = vadd.f32 %v4072_v16, %v3937_v32 }
 0x26f   : > { %v7502_v44 = vadd.f32 %v3924_v12, %v3740_v28 }
 0x273   : > { %v3929_v6 = vpop.f32.mrf.mxu3  ;;  %v4327_v19 = vpop.f32.mrf.mxu1 }
 0x274   : > { %v7506_v9 = vpop.f32.mrf.mxu2  ;;  %v4347_v46 = vadd.f32 %v4327_v19, %v4085_v40  ;;  %v4077_v53 = vpop.f32.mrf.mxu0 }
 0x275   : > { %v3741_v40 = vadd.f32 %v7506_v9, %v3479_v48 }
 0x27b   : > { %v7508_v25 = vpop.f32.mrf.mxu3  ;;  %v4329_v36 = vpop.f32.mrf.mxu1 }
 0x27c   : > { %v3731_v52 = vpop.f32.mrf.mxu2  ;;  %v4348_v3 = vadd.f32 %v4329_v36, %v4086_v24 }
 0x27d   : > { %v3742_v61 = vadd.f32 %v3731_v52, %v3480_v56 }
 0x27f   : > { %v7510_v45 = vadd.f32 %v3929_v6, %v3742_v61 }
 0x283   : > { %v4666_v37 = vpop.f32.mrf.mxu3  ;;  %v4332_v60 = vpop.f32.mrf.mxu1 }
 0x284   : > { %v7512_v34 = vpop.f32.mrf.mxu2  ;;  %v4690_v10 = vmul.f32 %v7518_v55, %v4666_v37  ;;  %v4349_v30 = vadd.f32 %v4332_v60, %v4087_v15 }
 0x286   : > { %v4702_v43 = vadd.f32 %v7529_v20, %v4690_v10 }
 0x28b   : > { %v4668_v17 = vpop.f32.mrf.mxu3  ;;  %v4334_v49 = vpop.f32.mrf.mxu1 }
 0x28c   : > { %v4525_v50 = vpop.f32.mrf.mxu2  ;;  %v4691_v22 = vmul.f32 %v7518_v55, %v4668_v17  ;;  %v4350_v29 = vadd.f32 %v4334_v49, %v4088_v33  ;;  %v4089_v17 = vadd.f32 %v4075_v27, %v7502_v44 }
 0x28d   : > { %v4545_v58 = vadd.f32 %v4525_v50, %v4347_v46 }
 0x28e   : > { %v4703_v26 = vadd.f32 %v7529_v20, %v4691_v22 }
 0x28f   : > { %v4722_v11 = vmul.f32 %v7523_v1, %v4545_v58 }
 0x291   : > { %v4734_v38 = vadd.f32 %v7535_v14, %v4722_v11  ;;  %v3939_v11 = vadd.f32 %v7500_v57, %v3741_v40 }
 0x293   : > { %v4671_v63 = vpop.f32.mrf.mxu3  ;;  %v4742_v13 = vadd.f32 %v4734_v38, %v4702_v43  ;;  %v4337_v42 = vpop.f32.mrf.mxu1 }
 0x294   : > { %v4527_v35 = vpop.f32.mrf.mxu2  ;;  %v4692_v28 = vmul.f32 %v7518_v55, %v4671_v63  ;;  %v4351_v58 = vadd.f32 %v4337_v42, %v4089_v17 }
 0x295   : > { %v4546_v23 = vadd.f32 %v4527_v35, %v4348_v3  ;;  %v4750_v56 = vmax.f32 %v4742_v13, 0.0  ;;  %v4090_v35 = vadd.f32 %v4077_v53, %v3939_v11  ;;  %v3743_v13 = vadd.f32 %v7512_v34, %v3481_v8 }
 0x296   : > { %v4704_v61 = vadd.f32 %v7529_v20, %v4692_v28 }
 0x297   : > { %v4723_v39 = vmul.f32 %v7523_v1, %v4546_v23 }
 0x299   : > { %v4735_v51 = vadd.f32 %v7535_v14, %v4723_v39  ;;  %v4080_v39 = vpop.f32.mrf.mxu0 }
 0x29b   : > { %v4673_v0 = vpop.f32.mrf.mxu3  ;;  %v4743_v2 = vadd.f32 %v4735_v51, %v4703_v26  ;;  %v4339_v24 = vpop.f32.mrf.mxu1  ;;  %v4091_v51 = vadd.f32 %v4080_v39, %v7510_v45 }
 0x29c   : > { %v4530_v12 = vpop.f32.mrf.mxu2  ;;  %v4693_v47 = vmul.f32 %v7518_v55, %v4673_v0  ;;  %v4352_v38 = vadd.f32 %v4339_v24, %v4090_v35 }
 0x29d   : > { %v4751_v54 = vmax.f32 %v4743_v2, 0.0  ;;  %v4547_v18 = vadd.f32 %v4530_v12, %v4349_v30 }
 0x29e   : > { %v4705_v50 = vadd.f32 %v7529_v20, %v4693_v47 }
 0x29f   : > { %v6274_v31 = vpack.c.bf16 %v4751_v54, %v4750_v56  ;;  %v4724_v6 = vmul.f32 %v7523_v1, %v4547_v18  ;;  %v3941_v54 = vadd.f32 %v7508_v25, %v3743_v13 }
 0x2a1   : > { %6275 = vst [vmem:[%s7550_s23] sm:$0xff] %v6274_v31   ;;  %v4736_v37 = vadd.f32 %v7535_v14, %v4724_v6  ;;  %v4082_v27 = vpop.f32.mrf.mxu0 }
 0x2a2   : > { %v4092_v33 = vadd.f32 %v4082_v27, %v3941_v54 }
 0x2a3   : > { %v4676_v52 = vpop.f32.mrf.mxu3  ;;  %v4744_v46 = vadd.f32 %v4736_v37, %v4704_v61  ;;  %v4342_v49 = vpop.f32.mrf.mxu1 }
 0x2a4   : > { %v4532_v19 = vpop.f32.mrf.mxu2  ;;  %v4694_v44 = vmul.f32 %v7518_v55, %v4676_v52  ;;  %v4353_v12 = vadd.f32 %v4342_v49, %v4091_v51 }
 0x2a5   : > { %v4548_v36 = vadd.f32 %v4532_v19, %v4350_v29  ;;  %v4752_v4 = vmax.f32 %v4744_v46, 0.0 }
 0x2a6   : > { %v4706_v23 = vadd.f32 %v7529_v20, %v4694_v44 }
 0x2a7   : > { %v4725_v7 = vmul.f32 %v7523_v1, %v4548_v36 }
 0x2a9   : > { %v4737_v5 = vadd.f32 %v7535_v14, %v4725_v7 }
 0x2ab   : > { %v4745_v60 = vadd.f32 %v4737_v5, %v4705_v50  ;;  %v4678_v3 = vpop.f32.mrf.mxu3  ;;  %v4344_v34 = vpop.f32.mrf.mxu1 }
 0x2ac   : > { %v4535_v10 = vpop.f32.mrf.mxu2  ;;  %v4695_v16 = vmul.f32 %v7518_v55, %v4678_v3  ;;  %v4354_v42 = vadd.f32 %v4344_v34, %v4092_v33 }
 0x2ad   : > { %v4753_v59 = vmax.f32 %v4745_v60, 0.0  ;;  %v4549_v63 = vadd.f32 %v4535_v10, %v4351_v58 }
 0x2ae   : > { %v4707_v30 = vadd.f32 %v7529_v20, %v4695_v16 }
 0x2af   : > { %v6279_v9 = vpack.c.bf16 %v4753_v59, %v4752_v4  ;;  %v4726_v43 = vmul.f32 %v7523_v1, %v4549_v63 }
 0x2b1   : > { %6291 = vst [vmem:[%s7550_s23 + $0x8] sm:$0xff] %v6279_v9   ;;  %v4738_v62 = vadd.f32 %v7535_v14, %v4726_v43 }
 0x2b3   : > { %v4681_v26 = vpop.f32.mrf.mxu3  ;;  %v4746_v0 = vadd.f32 %v4738_v62, %v4706_v23 }
 0x2b4   : > { %v4537_v22 = vpop.f32.mrf.mxu2  ;;  %v4696_v45 = vmul.f32 %v7518_v55, %v4681_v26 }
 0x2b5   : > { %v4550_v57 = vadd.f32 %v4537_v22, %v4352_v38  ;;  %v4754_v21 = vmax.f32 %v4746_v0, 0.0 }
 0x2b6   : > { %v4708_v19 = vadd.f32 %v7529_v20, %v4696_v45 }
 0x2b7   : > { %v4727_v15 = vmul.f32 %v7523_v1, %v4550_v57 }
 0x2b9   : > { %v4739_v2 = vadd.f32 %v7535_v14, %v4727_v15 }
 0x2bb   : > { %v4747_v32 = vadd.f32 %v4739_v2, %v4707_v30  ;;  %v4683_v6 = vpop.f32.mrf.mxu3 }
 0x2bc   : > { %v4540_v56 = vpop.f32.mrf.mxu2  ;;  %v4697_v52 = vmul.f32 %v7518_v55, %v4683_v6 }
 0x2bd   : > { %v4755_v41 = vmax.f32 %v4747_v32, 0.0  ;;  %v4551_v18 = vadd.f32 %v4540_v56, %v4353_v12 }
 0x2be   : > { %v4709_v36 = vadd.f32 %v7529_v20, %v4697_v52 }
 0x2bf   : > { %v6284_v31 = vpack.c.bf16 %v4755_v41, %v4754_v21  ;;  %v4728_v28 = vmul.f32 %v7523_v1, %v4551_v18 }
 0x2c1   : > { %6292 = vst [vmem:[%s7550_s23 + $0x10] sm:$0xff] %v6284_v31   ;;  %v4740_v25 = vadd.f32 %v7535_v14, %v4728_v28 }
 0x2c3   : > { %v4748_v47 = vadd.f32 %v4740_v25, %v4708_v19 }
 0x2c4   : > { %v4542_v29 = vpop.f32.mrf.mxu2 }
 0x2c5   : > { %v4552_v61 = vadd.f32 %v4542_v29, %v4354_v42  ;;  %v4756_v40 = vmax.f32 %v4748_v47, 0.0 }
 0x2c7   : > { %v4729_v37 = vmul.f32 %v7523_v1, %v4552_v61 }
 0x2c9   : > { %v4741_v48 = vadd.f32 %v7535_v14, %v4729_v37 }
 0x2cb   : > { %v4749_v7 = vadd.f32 %v4741_v48, %v4709_v36 }
 0x2cd   : > { %v4757_v17 = vmax.f32 %v4749_v7, 0.0 }
 0x2cf   : > { %v6289_v46 = vpack.c.bf16 %v4757_v17, %v4756_v40 }
 0x2d1   : > { %6293 = vst [vmem:[%s7550_s23 + $0x18] sm:$0xff] %v6289_v46  }
 0x2d2 PF: > { %s21_s19 = sadd.s32 1, %s6356_s19   ;;  %s7621_s17 = smov %s6352_s18 }
 0x2d3   : > { %p18_p6 = scmp.ge.s32.totalorder %s21_s19, 4   ;;  %s7622_s18 = smov %s7624_s20 }
 0x2d5   :  { %20 = sbr.rel (!%p18_p6) target bundleno = 2 (0x2), region = 126 }

</bundles_post_ra>
